<compile_context>
chip_gen: v7x
topology: tpu7x:2x2x1
jax: 0.10.0
libtpu: 0.0.40
codegen_flags: <defaults>
</compile_context>

<pallas_src>
import jax
import jax.numpy as jnp
import numpy as np
from jax.experimental import pallas as pl
from jax.experimental.pallas import tpu as pltpu


def _round_up(x, m):
    return ((x + m - 1) // m) * m


# ----------------------------------------------------------------------------
# Fused kernel: all LSTM layers + folded-BN + FC head in one pallas_call.
# ----------------------------------------------------------------------------
def _make_fused_kernel(T, Bp, HP, num_layers):
    def kernel(*refs):
        x_ref = refs[0]
        pos = 1
        layer_refs = []
        for _ in range(num_layers):
            layer_refs.append((refs[pos], refs[pos + 1], refs[pos + 2]))
            pos += 3
        fcw_ref, fcb_ref = refs[pos], refs[pos + 1]
        out_ref = refs[pos + 2]
        seq_scr, gates_scr, h_scr, c_scr = refs[pos + 3:pos + 7]

        for l, (wih_ref, whh_ref, b_ref) in enumerate(layer_refs):
            # Input sequence for this layer: original x for layer 0, previous layer's
            # outputs (kept in VMEM scratch) otherwise.
            in_seq = x_ref[...] if l == 0 else seq_scr[...]

            # Hoisted input projection: one (T*Bp, in_f) @ (in_f, 4*HP) MXU matmul for
            # all T steps; the recurrence below only adds h @ W_hh^T.
            gates_scr[...] = (
                jnp.dot(in_seq, wih_ref[...], preferred_element_type=jnp.float32)
                + b_ref[...])

            h_scr[...] = jnp.zeros_like(h_scr)
            c_scr[...] = jnp.zeros_like(c_scr)
            last_layer = (l == num_layers - 1)

            def step(t, carry, _whh=whh_ref, _last=last_layer):
                row = pl.multiple_of(t * Bp, Bp)
                g = gates_scr[pl.ds(row, Bp), :] + jnp.dot(
                    h_scr[...], _whh[...], preferred_element_type=jnp.float32)
                # PyTorch gate order [i, f, g, o]; each gate is a whole 128-lane block.
                i_g = jax.nn.sigmoid(g[:, 0 * HP:1 * HP])
                f_g = jax.nn.sigmoid(g[:, 1 * HP:2 * HP])
                g_g = jnp.tanh(g[:, 2 * HP:3 * HP])
                o_g = jax.nn.sigmoid(g[:, 3 * HP:4 * HP])
                c_new = f_g * c_scr[...] + i_g * g_g
                h_new = o_g * jnp.tanh(c_new)
                c_scr[...] = c_new
                h_scr[...] = h_new
                if not _last:
                    # Only intermediate layers need the full sequence; the last layer's
                    # per-step outputs are never materialized.
                    seq_scr[pl.ds(row, Bp), :] = h_new
                return carry

            jax.lax.fori_loop(0, T, step, 0, unroll=True)

        # Folded BN + FC head: Dropout(0) is identity; BN(eval) has been folded into
        # fcw/fcb at prep time.  VPU multiply + lane reduction instead of a 1-column
        # MXU matmul.  Only this (Bp, 1) result goes back to HBM.
        out_ref[...] = (jnp.sum(h_scr[...] * fcw_ref[...], axis=-1, keepdims=True)
                        + fcb_ref[...])

    return kernel


def lstm_model_forward_impl(x, fused):
    """x: (B, T, input_size) batch-first, like PyTorch.  Returns (B, 1)."""
    B, T, F = x.shape
    num_layers = len(fused["layers"])
    HP = fused["fc_w"].shape[1]
    Bp = _round_up(B, 8)                     # pad batch to the f32 sublane tile

    x_tm = jnp.transpose(x, (1, 0, 2))                    # (T, B, F) time-major
    x_tm = jnp.pad(x_tm, ((0, 0), (0, Bp - B), (0, 0)))   # (T, Bp, F)
    x2d = x_tm.reshape(T * Bp, F)                         # flat rows for hoisted matmul

    flat_args = [x2d]
    for (w_ih, w_hh, b) in fused["layers"]:
        flat_args += [w_ih, w_hh, b]
    flat_args += [fused["fc_w"], fused["fc_b"]]

    out = pl.pallas_call(
        _make_fused_kernel(T, Bp, HP, num_layers),
        out_shape=jax.ShapeDtypeStruct((Bp, 1), jnp.float32),
        scratch_shapes=[
            pltpu.VMEM((T * Bp, HP), jnp.float32),       # layer-output sequence
            pltpu.VMEM((T * Bp, 4 * HP), jnp.float32),   # hoisted pre-activations
            pltpu.VMEM((Bp, HP), jnp.float32),           # h state
            pltpu.VMEM((Bp, HP), jnp.float32),           # c state
        ],
    )(*flat_args)
    return out[:B]


lstm_model_forward = jax.jit(lstm_model_forward_impl)


# ----------------------------------------------------------------------------
# Parameter construction (PyTorch-like layout) and fused-kernel prep.
# ----------------------------------------------------------------------------
def make_params(key, input_size, hidden_size, num_layers):
    bound = 1.0 / np.sqrt(hidden_size)
    lstm = []
    for layer in range(num_layers):
        in_f = input_size if layer == 0 else hidden_size
        key, k1, k2, k3, k4 = jax.random.split(key, 5)
        w_ih = jax.random.uniform(k1, (4 * hidden_size, in_f),
                                  minval=-bound, maxval=bound, dtype=jnp.float32)
        w_hh = jax.random.uniform(k2, (4 * hidden_size, hidden_size),
                                  minval=-bound, maxval=bound, dtype=jnp.float32)
        b_ih = jax.random.uniform(k3, (4 * hidden_size,),
                                  minval=-bound, maxval=bound, dtype=jnp.float32)
        b_hh = jax.random.uniform(k4, (4 * hidden_size,),
                                  minval=-bound, maxval=bound, dtype=jnp.float32)
        lstm.append({"w_ih": w_ih, "w_hh": w_hh, "b": b_ih + b_hh})

    key, kw, kb = jax.random.split(key, 3)
    fc_w = jax.random.uniform(kw, (1, hidden_size),
                              minval=-bound, maxval=bound, dtype=jnp.float32)
    fc_b = jax.random.uniform(kb, (1,),
                              minval=-bound, maxval=bound, dtype=jnp.float32)
    return {
        "lstm": lstm,
        # Eval-mode BatchNorm1d (fresh-init running stats, PyTorch defaults).
        "bn_gamma": jnp.ones((hidden_size,), jnp.float32),
        "bn_beta": jnp.zeros((hidden_size,), jnp.float32),
        "bn_mean": jnp.zeros((hidden_size,), jnp.float32),
        "bn_var": jnp.ones((hidden_size,), jnp.float32),
        "fc_w": fc_w,
        "fc_b": fc_b,
    }


def prepare_fused_params(params):
    """Transpose weights, pad each gate to a 128-lane block, fold BN into the FC head."""
    H = params["lstm"][0]["w_hh"].shape[1]
    HP = _round_up(H, 128)

    def pad_gate_cols(w_t):
        # (in_f, 4H) -> (in_f, 4*HP); each gate's H columns at the start of its own
        # 128-lane block, zeros elsewhere (padded lanes produce h = c = 0 forever).
        in_f = w_t.shape[0]
        out = jnp.zeros((in_f, 4 * HP), jnp.float32)
        for k in range(4):
            out = out.at[:, k * HP:k * HP + H].set(w_t[:, k * H:(k + 1) * H])
        return out

    layers = []
    for idx, lp in enumerate(params["lstm"]):
        w_ih_t = pad_gate_cols(lp["w_ih"].T)                     # (in_f, 4HP)
        if idx > 0:
            # Layers >= 1 consume the HP-padded hidden sequence -> pad contraction rows.
            w_ih_t = jnp.pad(w_ih_t, ((0, HP - H), (0, 0)))
        w_hh_t = jnp.pad(pad_gate_cols(lp["w_hh"].T), ((0, HP - H), (0, 0)))  # (HP,4HP)
        b = pad_gate_cols(lp["b"].reshape(1, -1))                # (1, 4HP)
        layers.append((w_ih_t, w_hh_t, b))

    # Fold eval-mode BatchNorm1d into the FC head:
    #   y = ((h - mean) * rsqrt(var+eps) * gamma + beta) @ fc_w^T + fc_b
    #     = h @ (fc_w * scale)^T + (fc_b + sum((beta - mean*scale) * fc_w))
    eps = 1e-5
    scale = params["bn_gamma"] * jax.lax.rsqrt(params["bn_var"] + eps)
    w_eff = params["fc_w"][0] * scale                            # (H,)
    b_eff = params["fc_b"][0] + jnp.sum(
        (params["bn_beta"] - params["bn_mean"] * scale) * params["fc_w"][0])
    fc_w = jnp.zeros((1, HP), jnp.float32).at[0, :H].set(w_eff)
    fc_b = jnp.reshape(b_eff, (1, 1)).astype(jnp.float32)

    return {"layers": tuple(layers), "fc_w": fc_w, "fc_b": fc_b}


# ----------------------------------------------------------------------------
# Pure-JAX reference (independent of the padded/folded kernel layout).
# ----------------------------------------------------------------------------
def reference_forward(x, params):
    B = x.shape[0]
    out = jnp.transpose(x, (1, 0, 2))
    for lp in params["lstm"]:
        H = lp["w_hh"].shape[1]
        w_ih_t, w_hh_t, b = lp["w_ih"].T, lp["w_hh"].T, lp["b"].reshape(1, -1)
        h = jnp.zeros((B, H), jnp.float32)
        c = jnp.zeros((B, H), jnp.float32)
        ys = []
        for t in range(out.shape[0]):
            gates = out[t] @ w_ih_t + h @ w_hh_t + b
            i = jax.nn.sigmoid(gates[:, 0 * H:1 * H])
            f = jax.nn.sigmoid(gates[:, 1 * H:2 * H])
            g = jnp.tanh(gates[:, 2 * H:3 * H])
            o = jax.nn.sigmoid(gates[:, 3 * H:4 * H])
            c = f * c + i * g
            h = o * jnp.tanh(c)
            ys.append(h)
        out = jnp.stack(ys, axis=0)
    h_last = out[-1]
    y = (h_last - params["bn_mean"]) / jnp.sqrt(params["bn_var"] + 1e-5)
    y = y * params["bn_gamma"] + params["bn_beta"]
    return y @ params["fc_w"].T + params["fc_b"]


if __name__ == "__main__":
    batch, seq_len = 2, 8
    input_size, hidden_size, num_layers = 16, 32, 2

    key = jax.random.PRNGKey(0)
    key, kx, kp = jax.random.split(key, 3)
    x = jax.random.normal(kx, (batch, seq_len, input_size), dtype=jnp.float32)
    params = make_params(kp, input_size, hidden_size, num_layers)
    fused = prepare_fused_params(params)

    out = jax.block_until_ready(lstm_model_forward(x, fused))
    assert out.shape == (batch, 1), out.shape

    ref = jax.block_until_ready(reference_forward(x, params))
    np.testing.assert_allclose(np.asarray(out), np.asarray(ref), rtol=1e-4, atol=1e-5)

    print("KERNEL_OK")
</pallas_src>

<mosaic_0001>
module attributes {stable_mosaic.version = 11 : i64} {
  func.func @kernel(%arg0: memref<64x16xf32, #tpu.memory_space<vmem>>, %arg1: memref<16x512xf32, #tpu.memory_space<vmem>>, %arg2: memref<128x512xf32, #tpu.memory_space<vmem>>, %arg3: memref<1x512xf32, #tpu.memory_space<vmem>>, %arg4: memref<128x512xf32, #tpu.memory_space<vmem>>, %arg5: memref<128x512xf32, #tpu.memory_space<vmem>>, %arg6: memref<1x512xf32, #tpu.memory_space<vmem>>, %arg7: memref<1x128xf32, #tpu.memory_space<vmem>>, %arg8: memref<1x1xf32, #tpu.memory_space<vmem>>, %arg9: memref<8x1xf32, #tpu.memory_space<vmem>>, %arg10: memref<64x128xf32, #tpu.memory_space<vmem>>, %arg11: memref<64x512xf32, #tpu.memory_space<vmem>>, %arg12: memref<8x128xf32, #tpu.memory_space<vmem>>, %arg13: memref<8x128xf32, #tpu.memory_space<vmem>>) attributes {dimension_semantics = [], scalar_prefetch = 0 : i64, scratch_operands = 4 : i64, tpu.core_type = #tpu.core_type<tc>} {
    %c0 = arith.constant 0 : index
    %c0_0 = arith.constant 0 : index
    %0 = vector.load %arg0[%c0, %c0_0] : memref<64x16xf32, #tpu.memory_space<vmem>>, vector<64x16xf32>
    %c0_1 = arith.constant 0 : index
    %c0_2 = arith.constant 0 : index
    %1 = vector.load %arg1[%c0_1, %c0_2] : memref<16x512xf32, #tpu.memory_space<vmem>>, vector<16x512xf32>
    %cst = arith.constant dense<0.000000e+00> : vector<64x512xf32>
    %2 = tpu.matmul %0, %1, %cst {dimension_numbers = #tpu.dot_dimension_numbers<[1], [0], [0], [1], [0, 0, 1, 1], [], []>} : vector<64x16xf32>, vector<16x512xf32>, vector<64x512xf32> -> vector<64x512xf32>
    %c0_3 = arith.constant 0 : index
    %c0_4 = arith.constant 0 : index
    %3 = vector.load %arg3[%c0_3, %c0_4] : memref<1x512xf32, #tpu.memory_space<vmem>>, vector<1x512xf32>
    %4 = vector.broadcast %3 : vector<1x512xf32> to vector<64x512xf32>
    %5 = arith.addf %2, %4 : vector<64x512xf32>
    %c0_5 = arith.constant 0 : index
    %c0_6 = arith.constant 0 : index
    %6 = vector.load %arg11[%c0_5, %c0_6] : memref<64x512xf32, #tpu.memory_space<vmem>>, vector<64x512xf32>
    tpu.vector_store %arg11[%c0_5, %c0_6], %5 {strides = array<i32>} : memref<64x512xf32, #tpu.memory_space<vmem>>, vector<64x512xf32>,
    %cst_7 = arith.constant 0.000000e+00 : f32
    %7 = vector.broadcast %cst_7 : f32 to vector<8x128xf32>
    %c0_8 = arith.constant 0 : index
    %c0_9 = arith.constant 0 : index
    %8 = vector.load %arg12[%c0_8, %c0_9] : memref<8x128xf32, #tpu.memory_space<vmem>>, vector<8x128xf32>
    tpu.vector_store %arg12[%c0_8, %c0_9], %7 {strides = array<i32>} : memref<8x128xf32, #tpu.memory_space<vmem>>, vector<8x128xf32>,
    %cst_10 = arith.constant 0.000000e+00 : f32
    %9 = vector.broadcast %cst_10 : f32 to vector<8x128xf32>
    %c0_11 = arith.constant 0 : index
    %c0_12 = arith.constant 0 : index
    %10 = vector.load %arg13[%c0_11, %c0_12] : memref<8x128xf32, #tpu.memory_space<vmem>>, vector<8x128xf32>
    tpu.vector_store %arg13[%c0_11, %c0_12], %9 {strides = array<i32>} : memref<8x128xf32, #tpu.memory_space<vmem>>, vector<8x128xf32>,
    %c0_i32 = arith.constant 0 : i32
    %c8_i32 = arith.constant 8 : i32
    %11 = arith.muli %c0_i32, %c8_i32 : i32
    %12 = tpu.assume_multiple %11, 8 : i32
    %13 = arith.index_cast %12 : i32 to index
    %c0_13 = arith.constant 0 : index
    %14 = vector.load %arg11[%13, %c0_13] : memref<64x512xf32, #tpu.memory_space<vmem>>, vector<8x512xf32>
    %c0_14 = arith.constant 0 : index
    %c0_15 = arith.constant 0 : index
    %15 = vector.load %arg12[%c0_14, %c0_15] : memref<8x128xf32, #tpu.memory_space<vmem>>, vector<8x128xf32>
    %c0_16 = arith.constant 0 : index
    %c0_17 = arith.constant 0 : index
    %16 = vector.load %arg2[%c0_16, %c0_17] : memref<128x512xf32, #tpu.memory_space<vmem>>, vector<128x512xf32>
    %cst_18 = arith.constant dense<0.000000e+00> : vector<8x512xf32>
    %17 = tpu.matmul %15, %16, %cst_18 {dimension_numbers = #tpu.dot_dimension_numbers<[1], [0], [0], [1], [0, 0, 1, 1], [], []>} : vector<8x128xf32>, vector<128x512xf32>, vector<8x512xf32> -> vector<8x512xf32>
    %18 = arith.addf %14, %17 : vector<8x512xf32>
    %19 = vector.extract_strided_slice %18 {offsets = [0, 0], sizes = [8, 128], strides = [1, 1]} : vector<8x512xf32> to vector<8x128xf32>
    %20 = arith.negf %19 : vector<8x128xf32>
    %21 = math.exp %20 : vector<8x128xf32>
    %cst_19 = arith.constant 1.000000e+00 : f32
    %22 = vector.broadcast %cst_19 : f32 to vector<8x128xf32>
    %23 = arith.addf %22, %21 : vector<8x128xf32>
    %24 = arith.divf %22, %23 : vector<8x128xf32>
    %25 = vector.extract_strided_slice %18 {offsets = [0, 128], sizes = [8, 128], strides = [1, 1]} : vector<8x512xf32> to vector<8x128xf32>
    %26 = arith.negf %25 : vector<8x128xf32>
    %27 = math.exp %26 : vector<8x128xf32>
    %cst_20 = arith.constant 1.000000e+00 : f32
    %28 = vector.broadcast %cst_20 : f32 to vector<8x128xf32>
    %29 = arith.addf %28, %27 : vector<8x128xf32>
    %30 = arith.divf %28, %29 : vector<8x128xf32>
    %31 = vector.extract_strided_slice %18 {offsets = [0, 256], sizes = [8, 128], strides = [1, 1]} : vector<8x512xf32> to vector<8x128xf32>
    %32 = math.tanh %31 : vector<8x128xf32>
    %33 = vector.extract_strided_slice %18 {offsets = [0, 384], sizes = [8, 128], strides = [1, 1]} : vector<8x512xf32> to vector<8x128xf32>
    %34 = arith.negf %33 : vector<8x128xf32>
    %35 = math.exp %34 : vector<8x128xf32>
    %cst_21 = arith.constant 1.000000e+00 : f32
    %36 = vector.broadcast %cst_21 : f32 to vector<8x128xf32>
    %37 = arith.addf %36, %35 : vector<8x128xf32>
    %38 = arith.divf %36, %37 : vector<8x128xf32>
    %c0_22 = arith.constant 0 : index
    %c0_23 = arith.constant 0 : index
    %39 = vector.load %arg13[%c0_22, %c0_23] : memref<8x128xf32, #tpu.memory_space<vmem>>, vector<8x128xf32>
    %40 = arith.mulf %30, %39 : vector<8x128xf32>
    %41 = arith.mulf %24, %32 : vector<8x128xf32>
    %42 = arith.addf %40, %41 : vector<8x128xf32>
    %43 = math.tanh %42 : vector<8x128xf32>
    %44 = arith.mulf %38, %43 : vector<8x128xf32>
    %c0_24 = arith.constant 0 : index
    %c0_25 = arith.constant 0 : index
    %45 = vector.load %arg13[%c0_24, %c0_25] : memref<8x128xf32, #tpu.memory_space<vmem>>, vector<8x128xf32>
    tpu.vector_store %arg13[%c0_24, %c0_25], %42 {strides = array<i32>} : memref<8x128xf32, #tpu.memory_space<vmem>>, vector<8x128xf32>,
    %c0_26 = arith.constant 0 : index
    %c0_27 = arith.constant 0 : index
    %46 = vector.load %arg12[%c0_26, %c0_27] : memref<8x128xf32, #tpu.memory_space<vmem>>, vector<8x128xf32>
    tpu.vector_store %arg12[%c0_26, %c0_27], %44 {strides = array<i32>} : memref<8x128xf32, #tpu.memory_space<vmem>>, vector<8x128xf32>,
    %47 = arith.index_cast %12 : i32 to index
    %c0_28 = arith.constant 0 : index
    %48 = vector.load %arg10[%47, %c0_28] : memref<64x128xf32, #tpu.memory_space<vmem>>, vector<8x128xf32>
    tpu.vector_store %arg10[%47, %c0_28], %44 {strides = array<i32>} : memref<64x128xf32, #tpu.memory_space<vmem>>, vector<8x128xf32>,
    %c1_i32 = arith.constant 1 : i32
    %c8_i32_29 = arith.constant 8 : i32
    %49 = arith.muli %c1_i32, %c8_i32_29 : i32
    %50 = tpu.assume_multiple %49, 8 : i32
    %51 = arith.index_cast %50 : i32 to index
    %c0_30 = arith.constant 0 : index
    %52 = vector.load %arg11[%51, %c0_30] : memref<64x512xf32, #tpu.memory_space<vmem>>, vector<8x512xf32>
    %c0_31 = arith.constant 0 : index
    %c0_32 = arith.constant 0 : index
    %53 = vector.load %arg12[%c0_31, %c0_32] : memref<8x128xf32, #tpu.memory_space<vmem>>, vector<8x128xf32>
    %c0_33 = arith.constant 0 : index
    %c0_34 = arith.constant 0 : index
    %54 = vector.load %arg2[%c0_33, %c0_34] : memref<128x512xf32, #tpu.memory_space<vmem>>, vector<128x512xf32>
    %cst_35 = arith.constant dense<0.000000e+00> : vector<8x512xf32>
    %55 = tpu.matmul %53, %54, %cst_35 {dimension_numbers = #tpu.dot_dimension_numbers<[1], [0], [0], [1], [0, 0, 1, 1], [], []>} : vector<8x128xf32>, vector<128x512xf32>, vector<8x512xf32> -> vector<8x512xf32>
    %56 = arith.addf %52, %55 : vector<8x512xf32>
    %57 = vector.extract_strided_slice %56 {offsets = [0, 0], sizes = [8, 128], strides = [1, 1]} : vector<8x512xf32> to vector<8x128xf32>
    %58 = arith.negf %57 : vector<8x128xf32>
    %59 = math.exp %58 : vector<8x128xf32>
    %cst_36 = arith.constant 1.000000e+00 : f32
    %60 = vector.broadcast %cst_36 : f32 to vector<8x128xf32>
    %61 = arith.addf %60, %59 : vector<8x128xf32>
    %62 = arith.divf %60, %61 : vector<8x128xf32>
    %63 = vector.extract_strided_slice %56 {offsets = [0, 128], sizes = [8, 128], strides = [1, 1]} : vector<8x512xf32> to vector<8x128xf32>
    %64 = arith.negf %63 : vector<8x128xf32>
    %65 = math.exp %64 : vector<8x128xf32>
    %cst_37 = arith.constant 1.000000e+00 : f32
    %66 = vector.broadcast %cst_37 : f32 to vector<8x128xf32>
    %67 = arith.addf %66, %65 : vector<8x128xf32>
    %68 = arith.divf %66, %67 : vector<8x128xf32>
    %69 = vector.extract_strided_slice %56 {offsets = [0, 256], sizes = [8, 128], strides = [1, 1]} : vector<8x512xf32> to vector<8x128xf32>
    %70 = math.tanh %69 : vector<8x128xf32>
    %71 = vector.extract_strided_slice %56 {offsets = [0, 384], sizes = [8, 128], strides = [1, 1]} : vector<8x512xf32> to vector<8x128xf32>
    %72 = arith.negf %71 : vector<8x128xf32>
    %73 = math.exp %72 : vector<8x128xf32>
    %cst_38 = arith.constant 1.000000e+00 : f32
    %74 = vector.broadcast %cst_38 : f32 to vector<8x128xf32>
    %75 = arith.addf %74, %73 : vector<8x128xf32>
    %76 = arith.divf %74, %75 : vector<8x128xf32>
    %c0_39 = arith.constant 0 : index
    %c0_40 = arith.constant 0 : index
    %77 = vector.load %arg13[%c0_39, %c0_40] : memref<8x128xf32, #tpu.memory_space<vmem>>, vector<8x128xf32>
    %78 = arith.mulf %68, %77 : vector<8x128xf32>
    %79 = arith.mulf %62, %70 : vector<8x128xf32>
    %80 = arith.addf %78, %79 : vector<8x128xf32>
    %81 = math.tanh %80 : vector<8x128xf32>
    %82 = arith.mulf %76, %81 : vector<8x128xf32>
    %c0_41 = arith.constant 0 : index
    %c0_42 = arith.constant 0 : index
    %83 = vector.load %arg13[%c0_41, %c0_42] : memref<8x128xf32, #tpu.memory_space<vmem>>, vector<8x128xf32>
    tpu.vector_store %arg13[%c0_41, %c0_42], %80 {strides = array<i32>} : memref<8x128xf32, #tpu.memory_space<vmem>>, vector<8x128xf32>,
    %c0_43 = arith.constant 0 : index
    %c0_44 = arith.constant 0 : index
    %84 = vector.load %arg12[%c0_43, %c0_44] : memref<8x128xf32, #tpu.memory_space<vmem>>, vector<8x128xf32>
    tpu.vector_store %arg12[%c0_43, %c0_44], %82 {strides = array<i32>} : memref<8x128xf32, #tpu.memory_space<vmem>>, vector<8x128xf32>,
    %85 = arith.index_cast %50 : i32 to index
    %c0_45 = arith.constant 0 : index
    %86 = vector.load %arg10[%85, %c0_45] : memref<64x128xf32, #tpu.memory_space<vmem>>, vector<8x128xf32>
    tpu.vector_store %arg10[%85, %c0_45], %82 {strides = array<i32>} : memref<64x128xf32, #tpu.memory_space<vmem>>, vector<8x128xf32>,
    %c2_i32 = arith.constant 2 : i32
    %c8_i32_46 = arith.constant 8 : i32
    %87 = arith.muli %c2_i32, %c8_i32_46 : i32
    %88 = tpu.assume_multiple %87, 8 : i32
    %89 = arith.index_cast %88 : i32 to index
    %c0_47 = arith.constant 0 : index
    %90 = vector.load %arg11[%89, %c0_47] : memref<64x512xf32, #tpu.memory_space<vmem>>, vector<8x512xf32>
    %c0_48 = arith.constant 0 : index
    %c0_49 = arith.constant 0 : index
    %91 = vector.load %arg12[%c0_48, %c0_49] : memref<8x128xf32, #tpu.memory_space<vmem>>, vector<8x128xf32>
    %c0_50 = arith.constant 0 : index
    %c0_51 = arith.constant 0 : index
    %92 = vector.load %arg2[%c0_50, %c0_51] : memref<128x512xf32, #tpu.memory_space<vmem>>, vector<128x512xf32>
    %cst_52 = arith.constant dense<0.000000e+00> : vector<8x512xf32>
    %93 = tpu.matmul %91, %92, %cst_52 {dimension_numbers = #tpu.dot_dimension_numbers<[1], [0], [0], [1], [0, 0, 1, 1], [], []>} : vector<8x128xf32>, vector<128x512xf32>, vector<8x512xf32> -> vector<8x512xf32>
    %94 = arith.addf %90, %93 : vector<8x512xf32>
    %95 = vector.extract_strided_slice %94 {offsets = [0, 0], sizes = [8, 128], strides = [1, 1]} : vector<8x512xf32> to vector<8x128xf32>
    %96 = arith.negf %95 : vector<8x128xf32>
    %97 = math.exp %96 : vector<8x128xf32>
    %cst_53 = arith.constant 1.000000e+00 : f32
    %98 = vector.broadcast %cst_53 : f32 to vector<8x128xf32>
    %99 = arith.addf %98, %97 : vector<8x128xf32>
    %100 = arith.divf %98, %99 : vector<8x128xf32>
    %101 = vector.extract_strided_slice %94 {offsets = [0, 128], sizes = [8, 128], strides = [1, 1]} : vector<8x512xf32> to vector<8x128xf32>
    %102 = arith.negf %101 : vector<8x128xf32>
    %103 = math.exp %102 : vector<8x128xf32>
    %cst_54 = arith.constant 1.000000e+00 : f32
    %104 = vector.broadcast %cst_54 : f32 to vector<8x128xf32>
    %105 = arith.addf %104, %103 : vector<8x128xf32>
    %106 = arith.divf %104, %105 : vector<8x128xf32>
    %107 = vector.extract_strided_slice %94 {offsets = [0, 256], sizes = [8, 128], strides = [1, 1]} : vector<8x512xf32> to vector<8x128xf32>
    %108 = math.tanh %107 : vector<8x128xf32>
    %109 = vector.extract_strided_slice %94 {offsets = [0, 384], sizes = [8, 128], strides = [1, 1]} : vector<8x512xf32> to vector<8x128xf32>
    %110 = arith.negf %109 : vector<8x128xf32>
    %111 = math.exp %110 : vector<8x128xf32>
    %cst_55 = arith.constant 1.000000e+00 : f32
    %112 = vector.broadcast %cst_55 : f32 to vector<8x128xf32>
    %113 = arith.addf %112, %111 : vector<8x128xf32>
    %114 = arith.divf %112, %113 : vector<8x128xf32>
    %c0_56 = arith.constant 0 : index
    %c0_57 = arith.constant 0 : index
    %115 = vector.load %arg13[%c0_56, %c0_57] : memref<8x128xf32, #tpu.memory_space<vmem>>, vector<8x128xf32>
    %116 = arith.mulf %106, %115 : vector<8x128xf32>
    %117 = arith.mulf %100, %108 : vector<8x128xf32>
    %118 = arith.addf %116, %117 : vector<8x128xf32>
    %119 = math.tanh %118 : vector<8x128xf32>
    %120 = arith.mulf %114, %119 : vector<8x128xf32>
    %c0_58 = arith.constant 0 : index
    %c0_59 = arith.constant 0 : index
    %121 = vector.load %arg13[%c0_58, %c0_59] : memref<8x128xf32, #tpu.memory_space<vmem>>, vector<8x128xf32>
    tpu.vector_store %arg13[%c0_58, %c0_59], %118 {strides = array<i32>} : memref<8x128xf32, #tpu.memory_space<vmem>>, vector<8x128xf32>,
    %c0_60 = arith.constant 0 : index
    %c0_61 = arith.constant 0 : index
    %122 = vector.load %arg12[%c0_60, %c0_61] : memref<8x128xf32, #tpu.memory_space<vmem>>, vector<8x128xf32>
    tpu.vector_store %arg12[%c0_60, %c0_61], %120 {strides = array<i32>} : memref<8x128xf32, #tpu.memory_space<vmem>>, vector<8x128xf32>,
    %123 = arith.index_cast %88 : i32 to index
    %c0_62 = arith.constant 0 : index
    %124 = vector.load %arg10[%123, %c0_62] : memref<64x128xf32, #tpu.memory_space<vmem>>, vector<8x128xf32>
    tpu.vector_store %arg10[%123, %c0_62], %120 {strides = array<i32>} : memref<64x128xf32, #tpu.memory_space<vmem>>, vector<8x128xf32>,
    %c3_i32 = arith.constant 3 : i32
    %c8_i32_63 = arith.constant 8 : i32
    %125 = arith.muli %c3_i32, %c8_i32_63 : i32
    %126 = tpu.assume_multiple %125, 8 : i32
    %127 = arith.index_cast %126 : i32 to index
    %c0_64 = arith.constant 0 : index
    %128 = vector.load %arg11[%127, %c0_64] : memref<64x512xf32, #tpu.memory_space<vmem>>, vector<8x512xf32>
    %c0_65 = arith.constant 0 : index
    %c0_66 = arith.constant 0 : index
    %129 = vector.load %arg12[%c0_65, %c0_66] : memref<8x128xf32, #tpu.memory_space<vmem>>, vector<8x128xf32>
    %c0_67 = arith.constant 0 : index
    %c0_68 = arith.constant 0 : index
    %130 = vector.load %arg2[%c0_67, %c0_68] : memref<128x512xf32, #tpu.memory_space<vmem>>, vector<128x512xf32>
    %cst_69 = arith.constant dense<0.000000e+00> : vector<8x512xf32>
    %131 = tpu.matmul %129, %130, %cst_69 {dimension_numbers = #tpu.dot_dimension_numbers<[1], [0], [0], [1], [0, 0, 1, 1], [], []>} : vector<8x128xf32>, vector<128x512xf32>, vector<8x512xf32> -> vector<8x512xf32>
    %132 = arith.addf %128, %131 : vector<8x512xf32>
    %133 = vector.extract_strided_slice %132 {offsets = [0, 0], sizes = [8, 128], strides = [1, 1]} : vector<8x512xf32> to vector<8x128xf32>
    %134 = arith.negf %133 : vector<8x128xf32>
    %135 = math.exp %134 : vector<8x128xf32>
    %cst_70 = arith.constant 1.000000e+00 : f32
    %136 = vector.broadcast %cst_70 : f32 to vector<8x128xf32>
    %137 = arith.addf %136, %135 : vector<8x128xf32>
    %138 = arith.divf %136, %137 : vector<8x128xf32>
    %139 = vector.extract_strided_slice %132 {offsets = [0, 128], sizes = [8, 128], strides = [1, 1]} : vector<8x512xf32> to vector<8x128xf32>
    %140 = arith.negf %139 : vector<8x128xf32>
    %141 = math.exp %140 : vector<8x128xf32>
    %cst_71 = arith.constant 1.000000e+00 : f32
    %142 = vector.broadcast %cst_71 : f32 to vector<8x128xf32>
    %143 = arith.addf %142, %141 : vector<8x128xf32>
    %144 = arith.divf %142, %143 : vector<8x128xf32>
    %145 = vector.extract_strided_slice %132 {offsets = [0, 256], sizes = [8, 128], strides = [1, 1]} : vector<8x512xf32> to vector<8x128xf32>
    %146 = math.tanh %145 : vector<8x128xf32>
    %147 = vector.extract_strided_slice %132 {offsets = [0, 384], sizes = [8, 128], strides = [1, 1]} : vector<8x512xf32> to vector<8x128xf32>
    %148 = arith.negf %147 : vector<8x128xf32>
    %149 = math.exp %148 : vector<8x128xf32>
    %cst_72 = arith.constant 1.000000e+00 : f32
    %150 = vector.broadcast %cst_72 : f32 to vector<8x128xf32>
    %151 = arith.addf %150, %149 : vector<8x128xf32>
    %152 = arith.divf %150, %151 : vector<8x128xf32>
    %c0_73 = arith.constant 0 : index
    %c0_74 = arith.constant 0 : index
    %153 = vector.load %arg13[%c0_73, %c0_74] : memref<8x128xf32, #tpu.memory_space<vmem>>, vector<8x128xf32>
    %154 = arith.mulf %144, %153 : vector<8x128xf32>
    %155 = arith.mulf %138, %146 : vector<8x128xf32>
    %156 = arith.addf %154, %155 : vector<8x128xf32>
    %157 = math.tanh %156 : vector<8x128xf32>
    %158 = arith.mulf %152, %157 : vector<8x128xf32>
    %c0_75 = arith.constant 0 : index
    %c0_76 = arith.constant 0 : index
    %159 = vector.load %arg13[%c0_75, %c0_76] : memref<8x128xf32, #tpu.memory_space<vmem>>, vector<8x128xf32>
    tpu.vector_store %arg13[%c0_75, %c0_76], %156 {strides = array<i32>} : memref<8x128xf32, #tpu.memory_space<vmem>>, vector<8x128xf32>,
    %c0_77 = arith.constant 0 : index
    %c0_78 = arith.constant 0 : index
    %160 = vector.load %arg12[%c0_77, %c0_78] : memref<8x128xf32, #tpu.memory_space<vmem>>, vector<8x128xf32>
    tpu.vector_store %arg12[%c0_77, %c0_78], %158 {strides = array<i32>} : memref<8x128xf32, #tpu.memory_space<vmem>>, vector<8x128xf32>,
    %161 = arith.index_cast %126 : i32 to index
    %c0_79 = arith.constant 0 : index
    %162 = vector.load %arg10[%161, %c0_79] : memref<64x128xf32, #tpu.memory_space<vmem>>, vector<8x128xf32>
    tpu.vector_store %arg10[%161, %c0_79], %158 {strides = array<i32>} : memref<64x128xf32, #tpu.memory_space<vmem>>, vector<8x128xf32>,
    %c4_i32 = arith.constant 4 : i32
    %c8_i32_80 = arith.constant 8 : i32
    %163 = arith.muli %c4_i32, %c8_i32_80 : i32
    %164 = tpu.assume_multiple %163, 8 : i32
    %165 = arith.index_cast %164 : i32 to index
    %c0_81 = arith.constant 0 : index
    %166 = vector.load %arg11[%165, %c0_81] : memref<64x512xf32, #tpu.memory_space<vmem>>, vector<8x512xf32>
    %c0_82 = arith.constant 0 : index
    %c0_83 = arith.constant 0 : index
    %167 = vector.load %arg12[%c0_82, %c0_83] : memref<8x128xf32, #tpu.memory_space<vmem>>, vector<8x128xf32>
    %c0_84 = arith.constant 0 : index
    %c0_85 = arith.constant 0 : index
    %168 = vector.load %arg2[%c0_84, %c0_85] : memref<128x512xf32, #tpu.memory_space<vmem>>, vector<128x512xf32>
    %cst_86 = arith.constant dense<0.000000e+00> : vector<8x512xf32>
    %169 = tpu.matmul %167, %168, %cst_86 {dimension_numbers = #tpu.dot_dimension_numbers<[1], [0], [0], [1], [0, 0, 1, 1], [], []>} : vector<8x128xf32>, vector<128x512xf32>, vector<8x512xf32> -> vector<8x512xf32>
    %170 = arith.addf %166, %169 : vector<8x512xf32>
    %171 = vector.extract_strided_slice %170 {offsets = [0, 0], sizes = [8, 128], strides = [1, 1]} : vector<8x512xf32> to vector<8x128xf32>
    %172 = arith.negf %171 : vector<8x128xf32>
    %173 = math.exp %172 : vector<8x128xf32>
    %cst_87 = arith.constant 1.000000e+00 : f32
    %174 = vector.broadcast %cst_87 : f32 to vector<8x128xf32>
    %175 = arith.addf %174, %173 : vector<8x128xf32>
    %176 = arith.divf %174, %175 : vector<8x128xf32>
    %177 = vector.extract_strided_slice %170 {offsets = [0, 128], sizes = [8, 128], strides = [1, 1]} : vector<8x512xf32> to vector<8x128xf32>
    %178 = arith.negf %177 : vector<8x128xf32>
    %179 = math.exp %178 : vector<8x128xf32>
    %cst_88 = arith.constant 1.000000e+00 : f32
    %180 = vector.broadcast %cst_88 : f32 to vector<8x128xf32>
    %181 = arith.addf %180, %179 : vector<8x128xf32>
    %182 = arith.divf %180, %181 : vector<8x128xf32>
    %183 = vector.extract_strided_slice %170 {offsets = [0, 256], sizes = [8, 128], strides = [1, 1]} : vector<8x512xf32> to vector<8x128xf32>
    %184 = math.tanh %183 : vector<8x128xf32>
    %185 = vector.extract_strided_slice %170 {offsets = [0, 384], sizes = [8, 128], strides = [1, 1]} : vector<8x512xf32> to vector<8x128xf32>
    %186 = arith.negf %185 : vector<8x128xf32>
    %187 = math.exp %186 : vector<8x128xf32>
    %cst_89 = arith.constant 1.000000e+00 : f32
    %188 = vector.broadcast %cst_89 : f32 to vector<8x128xf32>
    %189 = arith.addf %188, %187 : vector<8x128xf32>
    %190 = arith.divf %188, %189 : vector<8x128xf32>
    %c0_90 = arith.constant 0 : index
    %c0_91 = arith.constant 0 : index
    %191 = vector.load %arg13[%c0_90, %c0_91] : memref<8x128xf32, #tpu.memory_space<vmem>>, vector<8x128xf32>
    %192 = arith.mulf %182, %191 : vector<8x128xf32>
    %193 = arith.mulf %176, %184 : vector<8x128xf32>
    %194 = arith.addf %192, %193 : vector<8x128xf32>
    %195 = math.tanh %194 : vector<8x128xf32>
    %196 = arith.mulf %190, %195 : vector<8x128xf32>
    %c0_92 = arith.constant 0 : index
    %c0_93 = arith.constant 0 : index
    %197 = vector.load %arg13[%c0_92, %c0_93] : memref<8x128xf32, #tpu.memory_space<vmem>>, vector<8x128xf32>
    tpu.vector_store %arg13[%c0_92, %c0_93], %194 {strides = array<i32>} : memref<8x128xf32, #tpu.memory_space<vmem>>, vector<8x128xf32>,
    %c0_94 = arith.constant 0 : index
    %c0_95 = arith.constant 0 : index
    %198 = vector.load %arg12[%c0_94, %c0_95] : memref<8x128xf32, #tpu.memory_space<vmem>>, vector<8x128xf32>
    tpu.vector_store %arg12[%c0_94, %c0_95], %196 {strides = array<i32>} : memref<8x128xf32, #tpu.memory_space<vmem>>, vector<8x128xf32>,
    %199 = arith.index_cast %164 : i32 to index
    %c0_96 = arith.constant 0 : index
    %200 = vector.load %arg10[%199, %c0_96] : memref<64x128xf32, #tpu.memory_space<vmem>>, vector<8x128xf32>
    tpu.vector_store %arg10[%199, %c0_96], %196 {strides = array<i32>} : memref<64x128xf32, #tpu.memory_space<vmem>>, vector<8x128xf32>,
    %c5_i32 = arith.constant 5 : i32
    %c8_i32_97 = arith.constant 8 : i32
    %201 = arith.muli %c5_i32, %c8_i32_97 : i32
    %202 = tpu.assume_multiple %201, 8 : i32
    %203 = arith.index_cast %202 : i32 to index
    %c0_98 = arith.constant 0 : index
    %204 = vector.load %arg11[%203, %c0_98] : memref<64x512xf32, #tpu.memory_space<vmem>>, vector<8x512xf32>
    %c0_99 = arith.constant 0 : index
    %c0_100 = arith.constant 0 : index
    %205 = vector.load %arg12[%c0_99, %c0_100] : memref<8x128xf32, #tpu.memory_space<vmem>>, vector<8x128xf32>
    %c0_101 = arith.constant 0 : index
    %c0_102 = arith.constant 0 : index
    %206 = vector.load %arg2[%c0_101, %c0_102] : memref<128x512xf32, #tpu.memory_space<vmem>>, vector<128x512xf32>
    %cst_103 = arith.constant dense<0.000000e+00> : vector<8x512xf32>
    %207 = tpu.matmul %205, %206, %cst_103 {dimension_numbers = #tpu.dot_dimension_numbers<[1], [0], [0], [1], [0, 0, 1, 1], [], []>} : vector<8x128xf32>, vector<128x512xf32>, vector<8x512xf32> -> vector<8x512xf32>
    %208 = arith.addf %204, %207 : vector<8x512xf32>
    %209 = vector.extract_strided_slice %208 {offsets = [0, 0], sizes = [8, 128], strides = [1, 1]} : vector<8x512xf32> to vector<8x128xf32>
    %210 = arith.negf %209 : vector<8x128xf32>
    %211 = math.exp %210 : vector<8x128xf32>
    %cst_104 = arith.constant 1.000000e+00 : f32
    %212 = vector.broadcast %cst_104 : f32 to vector<8x128xf32>
    %213 = arith.addf %212, %211 : vector<8x128xf32>
    %214 = arith.divf %212, %213 : vector<8x128xf32>
    %215 = vector.extract_strided_slice %208 {offsets = [0, 128], sizes = [8, 128], strides = [1, 1]} : vector<8x512xf32> to vector<8x128xf32>
    %216 = arith.negf %215 : vector<8x128xf32>
    %217 = math.exp %216 : vector<8x128xf32>
    %cst_105 = arith.constant 1.000000e+00 : f32
    %218 = vector.broadcast %cst_105 : f32 to vector<8x128xf32>
    %219 = arith.addf %218, %217 : vector<8x128xf32>
    %220 = arith.divf %218, %219 : vector<8x128xf32>
    %221 = vector.extract_strided_slice %208 {offsets = [0, 256], sizes = [8, 128], strides = [1, 1]} : vector<8x512xf32> to vector<8x128xf32>
    %222 = math.tanh %221 : vector<8x128xf32>
    %223 = vector.extract_strided_slice %208 {offsets = [0, 384], sizes = [8, 128], strides = [1, 1]} : vector<8x512xf32> to vector<8x128xf32>
    %224 = arith.negf %223 : vector<8x128xf32>
    %225 = math.exp %224 : vector<8x128xf32>
    %cst_106 = arith.constant 1.000000e+00 : f32
    %226 = vector.broadcast %cst_106 : f32 to vector<8x128xf32>
    %227 = arith.addf %226, %225 : vector<8x128xf32>
    %228 = arith.divf %226, %227 : vector<8x128xf32>
    %c0_107 = arith.constant 0 : index
    %c0_108 = arith.constant 0 : index
    %229 = vector.load %arg13[%c0_107, %c0_108] : memref<8x128xf32, #tpu.memory_space<vmem>>, vector<8x128xf32>
    %230 = arith.mulf %220, %229 : vector<8x128xf32>
    %231 = arith.mulf %214, %222 : vector<8x128xf32>
    %232 = arith.addf %230, %231 : vector<8x128xf32>
    %233 = math.tanh %232 : vector<8x128xf32>
    %234 = arith.mulf %228, %233 : vector<8x128xf32>
    %c0_109 = arith.constant 0 : index
    %c0_110 = arith.constant 0 : index
    %235 = vector.load %arg13[%c0_109, %c0_110] : memref<8x128xf32, #tpu.memory_space<vmem>>, vector<8x128xf32>
    tpu.vector_store %arg13[%c0_109, %c0_110], %232 {strides = array<i32>} : memref<8x128xf32, #tpu.memory_space<vmem>>, vector<8x128xf32>,
    %c0_111 = arith.constant 0 : index
    %c0_112 = arith.constant 0 : index
    %236 = vector.load %arg12[%c0_111, %c0_112] : memref<8x128xf32, #tpu.memory_space<vmem>>, vector<8x128xf32>
    tpu.vector_store %arg12[%c0_111, %c0_112], %234 {strides = array<i32>} : memref<8x128xf32, #tpu.memory_space<vmem>>, vector<8x128xf32>,
    %237 = arith.index_cast %202 : i32 to index
    %c0_113 = arith.constant 0 : index
    %238 = vector.load %arg10[%237, %c0_113] : memref<64x128xf32, #tpu.memory_space<vmem>>, vector<8x128xf32>
    tpu.vector_store %arg10[%237, %c0_113], %234 {strides = array<i32>} : memref<64x128xf32, #tpu.memory_space<vmem>>, vector<8x128xf32>,
    %c6_i32 = arith.constant 6 : i32
    %c8_i32_114 = arith.constant 8 : i32
    %239 = arith.muli %c6_i32, %c8_i32_114 : i32
    %240 = tpu.assume_multiple %239, 8 : i32
    %241 = arith.index_cast %240 : i32 to index
    %c0_115 = arith.constant 0 : index
    %242 = vector.load %arg11[%241, %c0_115] : memref<64x512xf32, #tpu.memory_space<vmem>>, vector<8x512xf32>
    %c0_116 = arith.constant 0 : index
    %c0_117 = arith.constant 0 : index
    %243 = vector.load %arg12[%c0_116, %c0_117] : memref<8x128xf32, #tpu.memory_space<vmem>>, vector<8x128xf32>
    %c0_118 = arith.constant 0 : index
    %c0_119 = arith.constant 0 : index
    %244 = vector.load %arg2[%c0_118, %c0_119] : memref<128x512xf32, #tpu.memory_space<vmem>>, vector<128x512xf32>
    %cst_120 = arith.constant dense<0.000000e+00> : vector<8x512xf32>
    %245 = tpu.matmul %243, %244, %cst_120 {dimension_numbers = #tpu.dot_dimension_numbers<[1], [0], [0], [1], [0, 0, 1, 1], [], []>} : vector<8x128xf32>, vector<128x512xf32>, vector<8x512xf32> -> vector<8x512xf32>
    %246 = arith.addf %242, %245 : vector<8x512xf32>
    %247 = vector.extract_strided_slice %246 {offsets = [0, 0], sizes = [8, 128], strides = [1, 1]} : vector<8x512xf32> to vector<8x128xf32>
    %248 = arith.negf %247 : vector<8x128xf32>
    %249 = math.exp %248 : vector<8x128xf32>
    %cst_121 = arith.constant 1.000000e+00 : f32
    %250 = vector.broadcast %cst_121 : f32 to vector<8x128xf32>
    %251 = arith.addf %250, %249 : vector<8x128xf32>
    %252 = arith.divf %250, %251 : vector<8x128xf32>
    %253 = vector.extract_strided_slice %246 {offsets = [0, 128], sizes = [8, 128], strides = [1, 1]} : vector<8x512xf32> to vector<8x128xf32>
    %254 = arith.negf %253 : vector<8x128xf32>
    %255 = math.exp %254 : vector<8x128xf32>
    %cst_122 = arith.constant 1.000000e+00 : f32
    %256 = vector.broadcast %cst_122 : f32 to vector<8x128xf32>
    %257 = arith.addf %256, %255 : vector<8x128xf32>
    %258 = arith.divf %256, %257 : vector<8x128xf32>
    %259 = vector.extract_strided_slice %246 {offsets = [0, 256], sizes = [8, 128], strides = [1, 1]} : vector<8x512xf32> to vector<8x128xf32>
    %260 = math.tanh %259 : vector<8x128xf32>
    %261 = vector.extract_strided_slice %246 {offsets = [0, 384], sizes = [8, 128], strides = [1, 1]} : vector<8x512xf32> to vector<8x128xf32>
    %262 = arith.negf %261 : vector<8x128xf32>
    %263 = math.exp %262 : vector<8x128xf32>
    %cst_123 = arith.constant 1.000000e+00 : f32
    %264 = vector.broadcast %cst_123 : f32 to vector<8x128xf32>
    %265 = arith.addf %264, %263 : vector<8x128xf32>
    %266 = arith.divf %264, %265 : vector<8x128xf32>
    %c0_124 = arith.constant 0 : index
    %c0_125 = arith.constant 0 : index
    %267 = vector.load %arg13[%c0_124, %c0_125] : memref<8x128xf32, #tpu.memory_space<vmem>>, vector<8x128xf32>
    %268 = arith.mulf %258, %267 : vector<8x128xf32>
    %269 = arith.mulf %252, %260 : vector<8x128xf32>
    %270 = arith.addf %268, %269 : vector<8x128xf32>
    %271 = math.tanh %270 : vector<8x128xf32>
    %272 = arith.mulf %266, %271 : vector<8x128xf32>
    %c0_126 = arith.constant 0 : index
    %c0_127 = arith.constant 0 : index
    %273 = vector.load %arg13[%c0_126, %c0_127] : memref<8x128xf32, #tpu.memory_space<vmem>>, vector<8x128xf32>
    tpu.vector_store %arg13[%c0_126, %c0_127], %270 {strides = array<i32>} : memref<8x128xf32, #tpu.memory_space<vmem>>, vector<8x128xf32>,
    %c0_128 = arith.constant 0 : index
    %c0_129 = arith.constant 0 : index
    %274 = vector.load %arg12[%c0_128, %c0_129] : memref<8x128xf32, #tpu.memory_space<vmem>>, vector<8x128xf32>
    tpu.vector_store %arg12[%c0_128, %c0_129], %272 {strides = array<i32>} : memref<8x128xf32, #tpu.memory_space<vmem>>, vector<8x128xf32>,
    %275 = arith.index_cast %240 : i32 to index
    %c0_130 = arith.constant 0 : index
    %276 = vector.load %arg10[%275, %c0_130] : memref<64x128xf32, #tpu.memory_space<vmem>>, vector<8x128xf32>
    tpu.vector_store %arg10[%275, %c0_130], %272 {strides = array<i32>} : memref<64x128xf32, #tpu.memory_space<vmem>>, vector<8x128xf32>,
    %c7_i32 = arith.constant 7 : i32
    %c8_i32_131 = arith.constant 8 : i32
    %277 = arith.muli %c7_i32, %c8_i32_131 : i32
    %278 = tpu.assume_multiple %277, 8 : i32
    %279 = arith.index_cast %278 : i32 to index
    %c0_132 = arith.constant 0 : index
    %280 = vector.load %arg11[%279, %c0_132] : memref<64x512xf32, #tpu.memory_space<vmem>>, vector<8x512xf32>
    %c0_133 = arith.constant 0 : index
    %c0_134 = arith.constant 0 : index
    %281 = vector.load %arg12[%c0_133, %c0_134] : memref<8x128xf32, #tpu.memory_space<vmem>>, vector<8x128xf32>
    %c0_135 = arith.constant 0 : index
    %c0_136 = arith.constant 0 : index
    %282 = vector.load %arg2[%c0_135, %c0_136] : memref<128x512xf32, #tpu.memory_space<vmem>>, vector<128x512xf32>
    %cst_137 = arith.constant dense<0.000000e+00> : vector<8x512xf32>
    %283 = tpu.matmul %281, %282, %cst_137 {dimension_numbers = #tpu.dot_dimension_numbers<[1], [0], [0], [1], [0, 0, 1, 1], [], []>} : vector<8x128xf32>, vector<128x512xf32>, vector<8x512xf32> -> vector<8x512xf32>
    %284 = arith.addf %280, %283 : vector<8x512xf32>
    %285 = vector.extract_strided_slice %284 {offsets = [0, 0], sizes = [8, 128], strides = [1, 1]} : vector<8x512xf32> to vector<8x128xf32>
    %286 = arith.negf %285 : vector<8x128xf32>
    %287 = math.exp %286 : vector<8x128xf32>
    %cst_138 = arith.constant 1.000000e+00 : f32
    %288 = vector.broadcast %cst_138 : f32 to vector<8x128xf32>
    %289 = arith.addf %288, %287 : vector<8x128xf32>
    %290 = arith.divf %288, %289 : vector<8x128xf32>
    %291 = vector.extract_strided_slice %284 {offsets = [0, 128], sizes = [8, 128], strides = [1, 1]} : vector<8x512xf32> to vector<8x128xf32>
    %292 = arith.negf %291 : vector<8x128xf32>
    %293 = math.exp %292 : vector<8x128xf32>
    %cst_139 = arith.constant 1.000000e+00 : f32
    %294 = vector.broadcast %cst_139 : f32 to vector<8x128xf32>
    %295 = arith.addf %294, %293 : vector<8x128xf32>
    %296 = arith.divf %294, %295 : vector<8x128xf32>
    %297 = vector.extract_strided_slice %284 {offsets = [0, 256], sizes = [8, 128], strides = [1, 1]} : vector<8x512xf32> to vector<8x128xf32>
    %298 = math.tanh %297 : vector<8x128xf32>
    %299 = vector.extract_strided_slice %284 {offsets = [0, 384], sizes = [8, 128], strides = [1, 1]} : vector<8x512xf32> to vector<8x128xf32>
    %300 = arith.negf %299 : vector<8x128xf32>
    %301 = math.exp %300 : vector<8x128xf32>
    %cst_140 = arith.constant 1.000000e+00 : f32
    %302 = vector.broadcast %cst_140 : f32 to vector<8x128xf32>
    %303 = arith.addf %302, %301 : vector<8x128xf32>
    %304 = arith.divf %302, %303 : vector<8x128xf32>
    %c0_141 = arith.constant 0 : index
    %c0_142 = arith.constant 0 : index
    %305 = vector.load %arg13[%c0_141, %c0_142] : memref<8x128xf32, #tpu.memory_space<vmem>>, vector<8x128xf32>
    %306 = arith.mulf %296, %305 : vector<8x128xf32>
    %307 = arith.mulf %290, %298 : vector<8x128xf32>
    %308 = arith.addf %306, %307 : vector<8x128xf32>
    %309 = math.tanh %308 : vector<8x128xf32>
    %310 = arith.mulf %304, %309 : vector<8x128xf32>
    %c0_143 = arith.constant 0 : index
    %c0_144 = arith.constant 0 : index
    %311 = vector.load %arg13[%c0_143, %c0_144] : memref<8x128xf32, #tpu.memory_space<vmem>>, vector<8x128xf32>
    tpu.vector_store %arg13[%c0_143, %c0_144], %308 {strides = array<i32>} : memref<8x128xf32, #tpu.memory_space<vmem>>, vector<8x128xf32>,
    %c0_145 = arith.constant 0 : index
    %c0_146 = arith.constant 0 : index
    %312 = vector.load %arg12[%c0_145, %c0_146] : memref<8x128xf32, #tpu.memory_space<vmem>>, vector<8x128xf32>
    tpu.vector_store %arg12[%c0_145, %c0_146], %310 {strides = array<i32>} : memref<8x128xf32, #tpu.memory_space<vmem>>, vector<8x128xf32>,
    %313 = arith.index_cast %278 : i32 to index
    %c0_147 = arith.constant 0 : index
    %314 = vector.load %arg10[%313, %c0_147] : memref<64x128xf32, #tpu.memory_space<vmem>>, vector<8x128xf32>
    tpu.vector_store %arg10[%313, %c0_147], %310 {strides = array<i32>} : memref<64x128xf32, #tpu.memory_space<vmem>>, vector<8x128xf32>,
    %c8_i32_148 = arith.constant 8 : i32
    %c0_149 = arith.constant 0 : index
    %c0_150 = arith.constant 0 : index
    %315 = vector.load %arg10[%c0_149, %c0_150] : memref<64x128xf32, #tpu.memory_space<vmem>>, vector<64x128xf32>
    %c0_151 = arith.constant 0 : index
    %c0_152 = arith.constant 0 : index
    %316 = vector.load %arg4[%c0_151, %c0_152] : memref<128x512xf32, #tpu.memory_space<vmem>>, vector<128x512xf32>
    %cst_153 = arith.constant dense<0.000000e+00> : vector<64x512xf32>
    %317 = tpu.matmul %315, %316, %cst_153 {dimension_numbers = #tpu.dot_dimension_numbers<[1], [0], [0], [1], [0, 0, 1, 1], [], []>} : vector<64x128xf32>, vector<128x512xf32>, vector<64x512xf32> -> vector<64x512xf32>
    %c0_154 = arith.constant 0 : index
    %c0_155 = arith.constant 0 : index
    %318 = vector.load %arg6[%c0_154, %c0_155] : memref<1x512xf32, #tpu.memory_space<vmem>>, vector<1x512xf32>
    %319 = vector.broadcast %318 : vector<1x512xf32> to vector<64x512xf32>
    %320 = arith.addf %317, %319 : vector<64x512xf32>
    %c0_156 = arith.constant 0 : index
    %c0_157 = arith.constant 0 : index
    %321 = vector.load %arg11[%c0_156, %c0_157] : memref<64x512xf32, #tpu.memory_space<vmem>>, vector<64x512xf32>
    tpu.vector_store %arg11[%c0_156, %c0_157], %320 {strides = array<i32>} : memref<64x512xf32, #tpu.memory_space<vmem>>, vector<64x512xf32>,
    %cst_158 = arith.constant 0.000000e+00 : f32
    %322 = vector.broadcast %cst_158 : f32 to vector<8x128xf32>
    %c0_159 = arith.constant 0 : index
    %c0_160 = arith.constant 0 : index
    %323 = vector.load %arg12[%c0_159, %c0_160] : memref<8x128xf32, #tpu.memory_space<vmem>>, vector<8x128xf32>
    tpu.vector_store %arg12[%c0_159, %c0_160], %322 {strides = array<i32>} : memref<8x128xf32, #tpu.memory_space<vmem>>, vector<8x128xf32>,
    %cst_161 = arith.constant 0.000000e+00 : f32
    %324 = vector.broadcast %cst_161 : f32 to vector<8x128xf32>
    %c0_162 = arith.constant 0 : index
    %c0_163 = arith.constant 0 : index
    %325 = vector.load %arg13[%c0_162, %c0_163] : memref<8x128xf32, #tpu.memory_space<vmem>>, vector<8x128xf32>
    tpu.vector_store %arg13[%c0_162, %c0_163], %324 {strides = array<i32>} : memref<8x128xf32, #tpu.memory_space<vmem>>, vector<8x128xf32>,
    %c0_i32_164 = arith.constant 0 : i32
    %c8_i32_165 = arith.constant 8 : i32
    %326 = arith.muli %c0_i32_164, %c8_i32_165 : i32
    %327 = tpu.assume_multiple %326, 8 : i32
    %328 = arith.index_cast %327 : i32 to index
    %c0_166 = arith.constant 0 : index
    %329 = vector.load %arg11[%328, %c0_166] : memref<64x512xf32, #tpu.memory_space<vmem>>, vector<8x512xf32>
    %c0_167 = arith.constant 0 : index
    %c0_168 = arith.constant 0 : index
    %330 = vector.load %arg12[%c0_167, %c0_168] : memref<8x128xf32, #tpu.memory_space<vmem>>, vector<8x128xf32>
    %c0_169 = arith.constant 0 : index
    %c0_170 = arith.constant 0 : index
    %331 = vector.load %arg5[%c0_169, %c0_170] : memref<128x512xf32, #tpu.memory_space<vmem>>, vector<128x512xf32>
    %cst_171 = arith.constant dense<0.000000e+00> : vector<8x512xf32>
    %332 = tpu.matmul %330, %331, %cst_171 {dimension_numbers = #tpu.dot_dimension_numbers<[1], [0], [0], [1], [0, 0, 1, 1], [], []>} : vector<8x128xf32>, vector<128x512xf32>, vector<8x512xf32> -> vector<8x512xf32>
    %333 = arith.addf %329, %332 : vector<8x512xf32>
    %334 = vector.extract_strided_slice %333 {offsets = [0, 0], sizes = [8, 128], strides = [1, 1]} : vector<8x512xf32> to vector<8x128xf32>
    %335 = arith.negf %334 : vector<8x128xf32>
    %336 = math.exp %335 : vector<8x128xf32>
    %cst_172 = arith.constant 1.000000e+00 : f32
    %337 = vector.broadcast %cst_172 : f32 to vector<8x128xf32>
    %338 = arith.addf %337, %336 : vector<8x128xf32>
    %339 = arith.divf %337, %338 : vector<8x128xf32>
    %340 = vector.extract_strided_slice %333 {offsets = [0, 128], sizes = [8, 128], strides = [1, 1]} : vector<8x512xf32> to vector<8x128xf32>
    %341 = arith.negf %340 : vector<8x128xf32>
    %342 = math.exp %341 : vector<8x128xf32>
    %cst_173 = arith.constant 1.000000e+00 : f32
    %343 = vector.broadcast %cst_173 : f32 to vector<8x128xf32>
    %344 = arith.addf %343, %342 : vector<8x128xf32>
    %345 = arith.divf %343, %344 : vector<8x128xf32>
    %346 = vector.extract_strided_slice %333 {offsets = [0, 256], sizes = [8, 128], strides = [1, 1]} : vector<8x512xf32> to vector<8x128xf32>
    %347 = math.tanh %346 : vector<8x128xf32>
    %348 = vector.extract_strided_slice %333 {offsets = [0, 384], sizes = [8, 128], strides = [1, 1]} : vector<8x512xf32> to vector<8x128xf32>
    %349 = arith.negf %348 : vector<8x128xf32>
    %350 = math.exp %349 : vector<8x128xf32>
    %cst_174 = arith.constant 1.000000e+00 : f32
    %351 = vector.broadcast %cst_174 : f32 to vector<8x128xf32>
    %352 = arith.addf %351, %350 : vector<8x128xf32>
    %353 = arith.divf %351, %352 : vector<8x128xf32>
    %c0_175 = arith.constant 0 : index
    %c0_176 = arith.constant 0 : index
    %354 = vector.load %arg13[%c0_175, %c0_176] : memref<8x128xf32, #tpu.memory_space<vmem>>, vector<8x128xf32>
    %355 = arith.mulf %345, %354 : vector<8x128xf32>
    %356 = arith.mulf %339, %347 : vector<8x128xf32>
    %357 = arith.addf %355, %356 : vector<8x128xf32>
    %358 = math.tanh %357 : vector<8x128xf32>
    %359 = arith.mulf %353, %358 : vector<8x128xf32>
    %c0_177 = arith.constant 0 : index
    %c0_178 = arith.constant 0 : index
    %360 = vector.load %arg13[%c0_177, %c0_178] : memref<8x128xf32, #tpu.memory_space<vmem>>, vector<8x128xf32>
    tpu.vector_store %arg13[%c0_177, %c0_178], %357 {strides = array<i32>} : memref<8x128xf32, #tpu.memory_space<vmem>>, vector<8x128xf32>,
    %c0_179 = arith.constant 0 : index
    %c0_180 = arith.constant 0 : index
    %361 = vector.load %arg12[%c0_179, %c0_180] : memref<8x128xf32, #tpu.memory_space<vmem>>, vector<8x128xf32>
    tpu.vector_store %arg12[%c0_179, %c0_180], %359 {strides = array<i32>} : memref<8x128xf32, #tpu.memory_space<vmem>>, vector<8x128xf32>,
    %c1_i32_181 = arith.constant 1 : i32
    %c8_i32_182 = arith.constant 8 : i32
    %362 = arith.muli %c1_i32_181, %c8_i32_182 : i32
    %363 = tpu.assume_multiple %362, 8 : i32
    %364 = arith.index_cast %363 : i32 to index
    %c0_183 = arith.constant 0 : index
    %365 = vector.load %arg11[%364, %c0_183] : memref<64x512xf32, #tpu.memory_space<vmem>>, vector<8x512xf32>
    %c0_184 = arith.constant 0 : index
    %c0_185 = arith.constant 0 : index
    %366 = vector.load %arg12[%c0_184, %c0_185] : memref<8x128xf32, #tpu.memory_space<vmem>>, vector<8x128xf32>
    %c0_186 = arith.constant 0 : index
    %c0_187 = arith.constant 0 : index
    %367 = vector.load %arg5[%c0_186, %c0_187] : memref<128x512xf32, #tpu.memory_space<vmem>>, vector<128x512xf32>
    %cst_188 = arith.constant dense<0.000000e+00> : vector<8x512xf32>
    %368 = tpu.matmul %366, %367, %cst_188 {dimension_numbers = #tpu.dot_dimension_numbers<[1], [0], [0], [1], [0, 0, 1, 1], [], []>} : vector<8x128xf32>, vector<128x512xf32>, vector<8x512xf32> -> vector<8x512xf32>
    %369 = arith.addf %365, %368 : vector<8x512xf32>
    %370 = vector.extract_strided_slice %369 {offsets = [0, 0], sizes = [8, 128], strides = [1, 1]} : vector<8x512xf32> to vector<8x128xf32>
    %371 = arith.negf %370 : vector<8x128xf32>
    %372 = math.exp %371 : vector<8x128xf32>
    %cst_189 = arith.constant 1.000000e+00 : f32
    %373 = vector.broadcast %cst_189 : f32 to vector<8x128xf32>
    %374 = arith.addf %373, %372 : vector<8x128xf32>
    %375 = arith.divf %373, %374 : vector<8x128xf32>
    %376 = vector.extract_strided_slice %369 {offsets = [0, 128], sizes = [8, 128], strides = [1, 1]} : vector<8x512xf32> to vector<8x128xf32>
    %377 = arith.negf %376 : vector<8x128xf32>
    %378 = math.exp %377 : vector<8x128xf32>
    %cst_190 = arith.constant 1.000000e+00 : f32
    %379 = vector.broadcast %cst_190 : f32 to vector<8x128xf32>
    %380 = arith.addf %379, %378 : vector<8x128xf32>
    %381 = arith.divf %379, %380 : vector<8x128xf32>
    %382 = vector.extract_strided_slice %369 {offsets = [0, 256], sizes = [8, 128], strides = [1, 1]} : vector<8x512xf32> to vector<8x128xf32>
    %383 = math.tanh %382 : vector<8x128xf32>
    %384 = vector.extract_strided_slice %369 {offsets = [0, 384], sizes = [8, 128], strides = [1, 1]} : vector<8x512xf32> to vector<8x128xf32>
    %385 = arith.negf %384 : vector<8x128xf32>
    %386 = math.exp %385 : vector<8x128xf32>
    %cst_191 = arith.constant 1.000000e+00 : f32
    %387 = vector.broadcast %cst_191 : f32 to vector<8x128xf32>
    %388 = arith.addf %387, %386 : vector<8x128xf32>
    %389 = arith.divf %387, %388 : vector<8x128xf32>
    %c0_192 = arith.constant 0 : index
    %c0_193 = arith.constant 0 : index
    %390 = vector.load %arg13[%c0_192, %c0_193] : memref<8x128xf32, #tpu.memory_space<vmem>>, vector<8x128xf32>
    %391 = arith.mulf %381, %390 : vector<8x128xf32>
    %392 = arith.mulf %375, %383 : vector<8x128xf32>
    %393 = arith.addf %391, %392 : vector<8x128xf32>
    %394 = math.tanh %393 : vector<8x128xf32>
    %395 = arith.mulf %389, %394 : vector<8x128xf32>
    %c0_194 = arith.constant 0 : index
    %c0_195 = arith.constant 0 : index
    %396 = vector.load %arg13[%c0_194, %c0_195] : memref<8x128xf32, #tpu.memory_space<vmem>>, vector<8x128xf32>
    tpu.vector_store %arg13[%c0_194, %c0_195], %393 {strides = array<i32>} : memref<8x128xf32, #tpu.memory_space<vmem>>, vector<8x128xf32>,
    %c0_196 = arith.constant 0 : index
    %c0_197 = arith.constant 0 : index
    %397 = vector.load %arg12[%c0_196, %c0_197] : memref<8x128xf32, #tpu.memory_space<vmem>>, vector<8x128xf32>
    tpu.vector_store %arg12[%c0_196, %c0_197], %395 {strides = array<i32>} : memref<8x128xf32, #tpu.memory_space<vmem>>, vector<8x128xf32>,
    %c2_i32_198 = arith.constant 2 : i32
    %c8_i32_199 = arith.constant 8 : i32
    %398 = arith.muli %c2_i32_198, %c8_i32_199 : i32
    %399 = tpu.assume_multiple %398, 8 : i32
    %400 = arith.index_cast %399 : i32 to index
    %c0_200 = arith.constant 0 : index
    %401 = vector.load %arg11[%400, %c0_200] : memref<64x512xf32, #tpu.memory_space<vmem>>, vector<8x512xf32>
    %c0_201 = arith.constant 0 : index
    %c0_202 = arith.constant 0 : index
    %402 = vector.load %arg12[%c0_201, %c0_202] : memref<8x128xf32, #tpu.memory_space<vmem>>, vector<8x128xf32>
    %c0_203 = arith.constant 0 : index
    %c0_204 = arith.constant 0 : index
    %403 = vector.load %arg5[%c0_203, %c0_204] : memref<128x512xf32, #tpu.memory_space<vmem>>, vector<128x512xf32>
    %cst_205 = arith.constant dense<0.000000e+00> : vector<8x512xf32>
    %404 = tpu.matmul %402, %403, %cst_205 {dimension_numbers = #tpu.dot_dimension_numbers<[1], [0], [0], [1], [0, 0, 1, 1], [], []>} : vector<8x128xf32>, vector<128x512xf32>, vector<8x512xf32> -> vector<8x512xf32>
    %405 = arith.addf %401, %404 : vector<8x512xf32>
    %406 = vector.extract_strided_slice %405 {offsets = [0, 0], sizes = [8, 128], strides = [1, 1]} : vector<8x512xf32> to vector<8x128xf32>
    %407 = arith.negf %406 : vector<8x128xf32>
    %408 = math.exp %407 : vector<8x128xf32>
    %cst_206 = arith.constant 1.000000e+00 : f32
    %409 = vector.broadcast %cst_206 : f32 to vector<8x128xf32>
    %410 = arith.addf %409, %408 : vector<8x128xf32>
    %411 = arith.divf %409, %410 : vector<8x128xf32>
    %412 = vector.extract_strided_slice %405 {offsets = [0, 128], sizes = [8, 128], strides = [1, 1]} : vector<8x512xf32> to vector<8x128xf32>
    %413 = arith.negf %412 : vector<8x128xf32>
    %414 = math.exp %413 : vector<8x128xf32>
    %cst_207 = arith.constant 1.000000e+00 : f32
    %415 = vector.broadcast %cst_207 : f32 to vector<8x128xf32>
    %416 = arith.addf %415, %414 : vector<8x128xf32>
    %417 = arith.divf %415, %416 : vector<8x128xf32>
    %418 = vector.extract_strided_slice %405 {offsets = [0, 256], sizes = [8, 128], strides = [1, 1]} : vector<8x512xf32> to vector<8x128xf32>
    %419 = math.tanh %418 : vector<8x128xf32>
    %420 = vector.extract_strided_slice %405 {offsets = [0, 384], sizes = [8, 128], strides = [1, 1]} : vector<8x512xf32> to vector<8x128xf32>
    %421 = arith.negf %420 : vector<8x128xf32>
    %422 = math.exp %421 : vector<8x128xf32>
    %cst_208 = arith.constant 1.000000e+00 : f32
    %423 = vector.broadcast %cst_208 : f32 to vector<8x128xf32>
    %424 = arith.addf %423, %422 : vector<8x128xf32>
    %425 = arith.divf %423, %424 : vector<8x128xf32>
    %c0_209 = arith.constant 0 : index
    %c0_210 = arith.constant 0 : index
    %426 = vector.load %arg13[%c0_209, %c0_210] : memref<8x128xf32, #tpu.memory_space<vmem>>, vector<8x128xf32>
    %427 = arith.mulf %417, %426 : vector<8x128xf32>
    %428 = arith.mulf %411, %419 : vector<8x128xf32>
    %429 = arith.addf %427, %428 : vector<8x128xf32>
    %430 = math.tanh %429 : vector<8x128xf32>
    %431 = arith.mulf %425, %430 : vector<8x128xf32>
    %c0_211 = arith.constant 0 : index
    %c0_212 = arith.constant 0 : index
    %432 = vector.load %arg13[%c0_211, %c0_212] : memref<8x128xf32, #tpu.memory_space<vmem>>, vector<8x128xf32>
    tpu.vector_store %arg13[%c0_211, %c0_212], %429 {strides = array<i32>} : memref<8x128xf32, #tpu.memory_space<vmem>>, vector<8x128xf32>,
    %c0_213 = arith.constant 0 : index
    %c0_214 = arith.constant 0 : index
    %433 = vector.load %arg12[%c0_213, %c0_214] : memref<8x128xf32, #tpu.memory_space<vmem>>, vector<8x128xf32>
    tpu.vector_store %arg12[%c0_213, %c0_214], %431 {strides = array<i32>} : memref<8x128xf32, #tpu.memory_space<vmem>>, vector<8x128xf32>,
    %c3_i32_215 = arith.constant 3 : i32
    %c8_i32_216 = arith.constant 8 : i32
    %434 = arith.muli %c3_i32_215, %c8_i32_216 : i32
    %435 = tpu.assume_multiple %434, 8 : i32
    %436 = arith.index_cast %435 : i32 to index
    %c0_217 = arith.constant 0 : index
    %437 = vector.load %arg11[%436, %c0_217] : memref<64x512xf32, #tpu.memory_space<vmem>>, vector<8x512xf32>
    %c0_218 = arith.constant 0 : index
    %c0_219 = arith.constant 0 : index
    %438 = vector.load %arg12[%c0_218, %c0_219] : memref<8x128xf32, #tpu.memory_space<vmem>>, vector<8x128xf32>
    %c0_220 = arith.constant 0 : index
    %c0_221 = arith.constant 0 : index
    %439 = vector.load %arg5[%c0_220, %c0_221] : memref<128x512xf32, #tpu.memory_space<vmem>>, vector<128x512xf32>
    %cst_222 = arith.constant dense<0.000000e+00> : vector<8x512xf32>
    %440 = tpu.matmul %438, %439, %cst_222 {dimension_numbers = #tpu.dot_dimension_numbers<[1], [0], [0], [1], [0, 0, 1, 1], [], []>} : vector<8x128xf32>, vector<128x512xf32>, vector<8x512xf32> -> vector<8x512xf32>
    %441 = arith.addf %437, %440 : vector<8x512xf32>
    %442 = vector.extract_strided_slice %441 {offsets = [0, 0], sizes = [8, 128], strides = [1, 1]} : vector<8x512xf32> to vector<8x128xf32>
    %443 = arith.negf %442 : vector<8x128xf32>
    %444 = math.exp %443 : vector<8x128xf32>
    %cst_223 = arith.constant 1.000000e+00 : f32
    %445 = vector.broadcast %cst_223 : f32 to vector<8x128xf32>
    %446 = arith.addf %445, %444 : vector<8x128xf32>
    %447 = arith.divf %445, %446 : vector<8x128xf32>
    %448 = vector.extract_strided_slice %441 {offsets = [0, 128], sizes = [8, 128], strides = [1, 1]} : vector<8x512xf32> to vector<8x128xf32>
    %449 = arith.negf %448 : vector<8x128xf32>
    %450 = math.exp %449 : vector<8x128xf32>
    %cst_224 = arith.constant 1.000000e+00 : f32
    %451 = vector.broadcast %cst_224 : f32 to vector<8x128xf32>
    %452 = arith.addf %451, %450 : vector<8x128xf32>
    %453 = arith.divf %451, %452 : vector<8x128xf32>
    %454 = vector.extract_strided_slice %441 {offsets = [0, 256], sizes = [8, 128], strides = [1, 1]} : vector<8x512xf32> to vector<8x128xf32>
    %455 = math.tanh %454 : vector<8x128xf32>
    %456 = vector.extract_strided_slice %441 {offsets = [0, 384], sizes = [8, 128], strides = [1, 1]} : vector<8x512xf32> to vector<8x128xf32>
    %457 = arith.negf %456 : vector<8x128xf32>
    %458 = math.exp %457 : vector<8x128xf32>
    %cst_225 = arith.constant 1.000000e+00 : f32
    %459 = vector.broadcast %cst_225 : f32 to vector<8x128xf32>
    %460 = arith.addf %459, %458 : vector<8x128xf32>
    %461 = arith.divf %459, %460 : vector<8x128xf32>
    %c0_226 = arith.constant 0 : index
    %c0_227 = arith.constant 0 : index
    %462 = vector.load %arg13[%c0_226, %c0_227] : memref<8x128xf32, #tpu.memory_space<vmem>>, vector<8x128xf32>
    %463 = arith.mulf %453, %462 : vector<8x128xf32>
    %464 = arith.mulf %447, %455 : vector<8x128xf32>
    %465 = arith.addf %463, %464 : vector<8x128xf32>
    %466 = math.tanh %465 : vector<8x128xf32>
    %467 = arith.mulf %461, %466 : vector<8x128xf32>
    %c0_228 = arith.constant 0 : index
    %c0_229 = arith.constant 0 : index
    %468 = vector.load %arg13[%c0_228, %c0_229] : memref<8x128xf32, #tpu.memory_space<vmem>>, vector<8x128xf32>
    tpu.vector_store %arg13[%c0_228, %c0_229], %465 {strides = array<i32>} : memref<8x128xf32, #tpu.memory_space<vmem>>, vector<8x128xf32>,
    %c0_230 = arith.constant 0 : index
    %c0_231 = arith.constant 0 : index
    %469 = vector.load %arg12[%c0_230, %c0_231] : memref<8x128xf32, #tpu.memory_space<vmem>>, vector<8x128xf32>
    tpu.vector_store %arg12[%c0_230, %c0_231], %467 {strides = array<i32>} : memref<8x128xf32, #tpu.memory_space<vmem>>, vector<8x128xf32>,
    %c4_i32_232 = arith.constant 4 : i32
    %c8_i32_233 = arith.constant 8 : i32
    %470 = arith.muli %c4_i32_232, %c8_i32_233 : i32
    %471 = tpu.assume_multiple %470, 8 : i32
    %472 = arith.index_cast %471 : i32 to index
    %c0_234 = arith.constant 0 : index
    %473 = vector.load %arg11[%472, %c0_234] : memref<64x512xf32, #tpu.memory_space<vmem>>, vector<8x512xf32>
    %c0_235 = arith.constant 0 : index
    %c0_236 = arith.constant 0 : index
    %474 = vector.load %arg12[%c0_235, %c0_236] : memref<8x128xf32, #tpu.memory_space<vmem>>, vector<8x128xf32>
    %c0_237 = arith.constant 0 : index
    %c0_238 = arith.constant 0 : index
    %475 = vector.load %arg5[%c0_237, %c0_238] : memref<128x512xf32, #tpu.memory_space<vmem>>, vector<128x512xf32>
    %cst_239 = arith.constant dense<0.000000e+00> : vector<8x512xf32>
    %476 = tpu.matmul %474, %475, %cst_239 {dimension_numbers = #tpu.dot_dimension_numbers<[1], [0], [0], [1], [0, 0, 1, 1], [], []>} : vector<8x128xf32>, vector<128x512xf32>, vector<8x512xf32> -> vector<8x512xf32>
    %477 = arith.addf %473, %476 : vector<8x512xf32>
    %478 = vector.extract_strided_slice %477 {offsets = [0, 0], sizes = [8, 128], strides = [1, 1]} : vector<8x512xf32> to vector<8x128xf32>
    %479 = arith.negf %478 : vector<8x128xf32>
    %480 = math.exp %479 : vector<8x128xf32>
    %cst_240 = arith.constant 1.000000e+00 : f32
    %481 = vector.broadcast %cst_240 : f32 to vector<8x128xf32>
    %482 = arith.addf %481, %480 : vector<8x128xf32>
    %483 = arith.divf %481, %482 : vector<8x128xf32>
    %484 = vector.extract_strided_slice %477 {offsets = [0, 128], sizes = [8, 128], strides = [1, 1]} : vector<8x512xf32> to vector<8x128xf32>
    %485 = arith.negf %484 : vector<8x128xf32>
    %486 = math.exp %485 : vector<8x128xf32>
    %cst_241 = arith.constant 1.000000e+00 : f32
    %487 = vector.broadcast %cst_241 : f32 to vector<8x128xf32>
    %488 = arith.addf %487, %486 : vector<8x128xf32>
    %489 = arith.divf %487, %488 : vector<8x128xf32>
    %490 = vector.extract_strided_slice %477 {offsets = [0, 256], sizes = [8, 128], strides = [1, 1]} : vector<8x512xf32> to vector<8x128xf32>
    %491 = math.tanh %490 : vector<8x128xf32>
    %492 = vector.extract_strided_slice %477 {offsets = [0, 384], sizes = [8, 128], strides = [1, 1]} : vector<8x512xf32> to vector<8x128xf32>
    %493 = arith.negf %492 : vector<8x128xf32>
    %494 = math.exp %493 : vector<8x128xf32>
    %cst_242 = arith.constant 1.000000e+00 : f32
    %495 = vector.broadcast %cst_242 : f32 to vector<8x128xf32>
    %496 = arith.addf %495, %494 : vector<8x128xf32>
    %497 = arith.divf %495, %496 : vector<8x128xf32>
    %c0_243 = arith.constant 0 : index
    %c0_244 = arith.constant 0 : index
    %498 = vector.load %arg13[%c0_243, %c0_244] : memref<8x128xf32, #tpu.memory_space<vmem>>, vector<8x128xf32>
    %499 = arith.mulf %489, %498 : vector<8x128xf32>
    %500 = arith.mulf %483, %491 : vector<8x128xf32>
    %501 = arith.addf %499, %500 : vector<8x128xf32>
    %502 = math.tanh %501 : vector<8x128xf32>
    %503 = arith.mulf %497, %502 : vector<8x128xf32>
    %c0_245 = arith.constant 0 : index
    %c0_246 = arith.constant 0 : index
    %504 = vector.load %arg13[%c0_245, %c0_246] : memref<8x128xf32, #tpu.memory_space<vmem>>, vector<8x128xf32>
    tpu.vector_store %arg13[%c0_245, %c0_246], %501 {strides = array<i32>} : memref<8x128xf32, #tpu.memory_space<vmem>>, vector<8x128xf32>,
    %c0_247 = arith.constant 0 : index
    %c0_248 = arith.constant 0 : index
    %505 = vector.load %arg12[%c0_247, %c0_248] : memref<8x128xf32, #tpu.memory_space<vmem>>, vector<8x128xf32>
    tpu.vector_store %arg12[%c0_247, %c0_248], %503 {strides = array<i32>} : memref<8x128xf32, #tpu.memory_space<vmem>>, vector<8x128xf32>,
    %c5_i32_249 = arith.constant 5 : i32
    %c8_i32_250 = arith.constant 8 : i32
    %506 = arith.muli %c5_i32_249, %c8_i32_250 : i32
    %507 = tpu.assume_multiple %506, 8 : i32
    %508 = arith.index_cast %507 : i32 to index
    %c0_251 = arith.constant 0 : index
    %509 = vector.load %arg11[%508, %c0_251] : memref<64x512xf32, #tpu.memory_space<vmem>>, vector<8x512xf32>
    %c0_252 = arith.constant 0 : index
    %c0_253 = arith.constant 0 : index
    %510 = vector.load %arg12[%c0_252, %c0_253] : memref<8x128xf32, #tpu.memory_space<vmem>>, vector<8x128xf32>
    %c0_254 = arith.constant 0 : index
    %c0_255 = arith.constant 0 : index
    %511 = vector.load %arg5[%c0_254, %c0_255] : memref<128x512xf32, #tpu.memory_space<vmem>>, vector<128x512xf32>
    %cst_256 = arith.constant dense<0.000000e+00> : vector<8x512xf32>
    %512 = tpu.matmul %510, %511, %cst_256 {dimension_numbers = #tpu.dot_dimension_numbers<[1], [0], [0], [1], [0, 0, 1, 1], [], []>} : vector<8x128xf32>, vector<128x512xf32>, vector<8x512xf32> -> vector<8x512xf32>
    %513 = arith.addf %509, %512 : vector<8x512xf32>
    %514 = vector.extract_strided_slice %513 {offsets = [0, 0], sizes = [8, 128], strides = [1, 1]} : vector<8x512xf32> to vector<8x128xf32>
    %515 = arith.negf %514 : vector<8x128xf32>
    %516 = math.exp %515 : vector<8x128xf32>
    %cst_257 = arith.constant 1.000000e+00 : f32
    %517 = vector.broadcast %cst_257 : f32 to vector<8x128xf32>
    %518 = arith.addf %517, %516 : vector<8x128xf32>
    %519 = arith.divf %517, %518 : vector<8x128xf32>
    %520 = vector.extract_strided_slice %513 {offsets = [0, 128], sizes = [8, 128], strides = [1, 1]} : vector<8x512xf32> to vector<8x128xf32>
    %521 = arith.negf %520 : vector<8x128xf32>
    %522 = math.exp %521 : vector<8x128xf32>
    %cst_258 = arith.constant 1.000000e+00 : f32
    %523 = vector.broadcast %cst_258 : f32 to vector<8x128xf32>
    %524 = arith.addf %523, %522 : vector<8x128xf32>
    %525 = arith.divf %523, %524 : vector<8x128xf32>
    %526 = vector.extract_strided_slice %513 {offsets = [0, 256], sizes = [8, 128], strides = [1, 1]} : vector<8x512xf32> to vector<8x128xf32>
    %527 = math.tanh %526 : vector<8x128xf32>
    %528 = vector.extract_strided_slice %513 {offsets = [0, 384], sizes = [8, 128], strides = [1, 1]} : vector<8x512xf32> to vector<8x128xf32>
    %529 = arith.negf %528 : vector<8x128xf32>
    %530 = math.exp %529 : vector<8x128xf32>
    %cst_259 = arith.constant 1.000000e+00 : f32
    %531 = vector.broadcast %cst_259 : f32 to vector<8x128xf32>
    %532 = arith.addf %531, %530 : vector<8x128xf32>
    %533 = arith.divf %531, %532 : vector<8x128xf32>
    %c0_260 = arith.constant 0 : index
    %c0_261 = arith.constant 0 : index
    %534 = vector.load %arg13[%c0_260, %c0_261] : memref<8x128xf32, #tpu.memory_space<vmem>>, vector<8x128xf32>
    %535 = arith.mulf %525, %534 : vector<8x128xf32>
    %536 = arith.mulf %519, %527 : vector<8x128xf32>
    %537 = arith.addf %535, %536 : vector<8x128xf32>
    %538 = math.tanh %537 : vector<8x128xf32>
    %539 = arith.mulf %533, %538 : vector<8x128xf32>
    %c0_262 = arith.constant 0 : index
    %c0_263 = arith.constant 0 : index
    %540 = vector.load %arg13[%c0_262, %c0_263] : memref<8x128xf32, #tpu.memory_space<vmem>>, vector<8x128xf32>
    tpu.vector_store %arg13[%c0_262, %c0_263], %537 {strides = array<i32>} : memref<8x128xf32, #tpu.memory_space<vmem>>, vector<8x128xf32>,
    %c0_264 = arith.constant 0 : index
    %c0_265 = arith.constant 0 : index
    %541 = vector.load %arg12[%c0_264, %c0_265] : memref<8x128xf32, #tpu.memory_space<vmem>>, vector<8x128xf32>
    tpu.vector_store %arg12[%c0_264, %c0_265], %539 {strides = array<i32>} : memref<8x128xf32, #tpu.memory_space<vmem>>, vector<8x128xf32>,
    %c6_i32_266 = arith.constant 6 : i32
    %c8_i32_267 = arith.constant 8 : i32
    %542 = arith.muli %c6_i32_266, %c8_i32_267 : i32
    %543 = tpu.assume_multiple %542, 8 : i32
    %544 = arith.index_cast %543 : i32 to index
    %c0_268 = arith.constant 0 : index
    %545 = vector.load %arg11[%544, %c0_268] : memref<64x512xf32, #tpu.memory_space<vmem>>, vector<8x512xf32>
    %c0_269 = arith.constant 0 : index
    %c0_270 = arith.constant 0 : index
    %546 = vector.load %arg12[%c0_269, %c0_270] : memref<8x128xf32, #tpu.memory_space<vmem>>, vector<8x128xf32>
    %c0_271 = arith.constant 0 : index
    %c0_272 = arith.constant 0 : index
    %547 = vector.load %arg5[%c0_271, %c0_272] : memref<128x512xf32, #tpu.memory_space<vmem>>, vector<128x512xf32>
    %cst_273 = arith.constant dense<0.000000e+00> : vector<8x512xf32>
    %548 = tpu.matmul %546, %547, %cst_273 {dimension_numbers = #tpu.dot_dimension_numbers<[1], [0], [0], [1], [0, 0, 1, 1], [], []>} : vector<8x128xf32>, vector<128x512xf32>, vector<8x512xf32> -> vector<8x512xf32>
    %549 = arith.addf %545, %548 : vector<8x512xf32>
    %550 = vector.extract_strided_slice %549 {offsets = [0, 0], sizes = [8, 128], strides = [1, 1]} : vector<8x512xf32> to vector<8x128xf32>
    %551 = arith.negf %550 : vector<8x128xf32>
    %552 = math.exp %551 : vector<8x128xf32>
    %cst_274 = arith.constant 1.000000e+00 : f32
    %553 = vector.broadcast %cst_274 : f32 to vector<8x128xf32>
    %554 = arith.addf %553, %552 : vector<8x128xf32>
    %555 = arith.divf %553, %554 : vector<8x128xf32>
    %556 = vector.extract_strided_slice %549 {offsets = [0, 128], sizes = [8, 128], strides = [1, 1]} : vector<8x512xf32> to vector<8x128xf32>
    %557 = arith.negf %556 : vector<8x128xf32>
    %558 = math.exp %557 : vector<8x128xf32>
    %cst_275 = arith.constant 1.000000e+00 : f32
    %559 = vector.broadcast %cst_275 : f32 to vector<8x128xf32>
    %560 = arith.addf %559, %558 : vector<8x128xf32>
    %561 = arith.divf %559, %560 : vector<8x128xf32>
    %562 = vector.extract_strided_slice %549 {offsets = [0, 256], sizes = [8, 128], strides = [1, 1]} : vector<8x512xf32> to vector<8x128xf32>
    %563 = math.tanh %562 : vector<8x128xf32>
    %564 = vector.extract_strided_slice %549 {offsets = [0, 384], sizes = [8, 128], strides = [1, 1]} : vector<8x512xf32> to vector<8x128xf32>
    %565 = arith.negf %564 : vector<8x128xf32>
    %566 = math.exp %565 : vector<8x128xf32>
    %cst_276 = arith.constant 1.000000e+00 : f32
    %567 = vector.broadcast %cst_276 : f32 to vector<8x128xf32>
    %568 = arith.addf %567, %566 : vector<8x128xf32>
    %569 = arith.divf %567, %568 : vector<8x128xf32>
    %c0_277 = arith.constant 0 : index
    %c0_278 = arith.constant 0 : index
    %570 = vector.load %arg13[%c0_277, %c0_278] : memref<8x128xf32, #tpu.memory_space<vmem>>, vector<8x128xf32>
    %571 = arith.mulf %561, %570 : vector<8x128xf32>
    %572 = arith.mulf %555, %563 : vector<8x128xf32>
    %573 = arith.addf %571, %572 : vector<8x128xf32>
    %574 = math.tanh %573 : vector<8x128xf32>
    %575 = arith.mulf %569, %574 : vector<8x128xf32>
    %c0_279 = arith.constant 0 : index
    %c0_280 = arith.constant 0 : index
    %576 = vector.load %arg13[%c0_279, %c0_280] : memref<8x128xf32, #tpu.memory_space<vmem>>, vector<8x128xf32>
    tpu.vector_store %arg13[%c0_279, %c0_280], %573 {strides = array<i32>} : memref<8x128xf32, #tpu.memory_space<vmem>>, vector<8x128xf32>,
    %c0_281 = arith.constant 0 : index
    %c0_282 = arith.constant 0 : index
    %577 = vector.load %arg12[%c0_281, %c0_282] : memref<8x128xf32, #tpu.memory_space<vmem>>, vector<8x128xf32>
    tpu.vector_store %arg12[%c0_281, %c0_282], %575 {strides = array<i32>} : memref<8x128xf32, #tpu.memory_space<vmem>>, vector<8x128xf32>,
    %c7_i32_283 = arith.constant 7 : i32
    %c8_i32_284 = arith.constant 8 : i32
    %578 = arith.muli %c7_i32_283, %c8_i32_284 : i32
    %579 = tpu.assume_multiple %578, 8 : i32
    %580 = arith.index_cast %579 : i32 to index
    %c0_285 = arith.constant 0 : index
    %581 = vector.load %arg11[%580, %c0_285] : memref<64x512xf32, #tpu.memory_space<vmem>>, vector<8x512xf32>
    %c0_286 = arith.constant 0 : index
    %c0_287 = arith.constant 0 : index
    %582 = vector.load %arg12[%c0_286, %c0_287] : memref<8x128xf32, #tpu.memory_space<vmem>>, vector<8x128xf32>
    %c0_288 = arith.constant 0 : index
    %c0_289 = arith.constant 0 : index
    %583 = vector.load %arg5[%c0_288, %c0_289] : memref<128x512xf32, #tpu.memory_space<vmem>>, vector<128x512xf32>
    %cst_290 = arith.constant dense<0.000000e+00> : vector<8x512xf32>
    %584 = tpu.matmul %582, %583, %cst_290 {dimension_numbers = #tpu.dot_dimension_numbers<[1], [0], [0], [1], [0, 0, 1, 1], [], []>} : vector<8x128xf32>, vector<128x512xf32>, vector<8x512xf32> -> vector<8x512xf32>
    %585 = arith.addf %581, %584 : vector<8x512xf32>
    %586 = vector.extract_strided_slice %585 {offsets = [0, 0], sizes = [8, 128], strides = [1, 1]} : vector<8x512xf32> to vector<8x128xf32>
    %587 = arith.negf %586 : vector<8x128xf32>
    %588 = math.exp %587 : vector<8x128xf32>
    %cst_291 = arith.constant 1.000000e+00 : f32
    %589 = vector.broadcast %cst_291 : f32 to vector<8x128xf32>
    %590 = arith.addf %589, %588 : vector<8x128xf32>
    %591 = arith.divf %589, %590 : vector<8x128xf32>
    %592 = vector.extract_strided_slice %585 {offsets = [0, 128], sizes = [8, 128], strides = [1, 1]} : vector<8x512xf32> to vector<8x128xf32>
    %593 = arith.negf %592 : vector<8x128xf32>
    %594 = math.exp %593 : vector<8x128xf32>
    %cst_292 = arith.constant 1.000000e+00 : f32
    %595 = vector.broadcast %cst_292 : f32 to vector<8x128xf32>
    %596 = arith.addf %595, %594 : vector<8x128xf32>
    %597 = arith.divf %595, %596 : vector<8x128xf32>
    %598 = vector.extract_strided_slice %585 {offsets = [0, 256], sizes = [8, 128], strides = [1, 1]} : vector<8x512xf32> to vector<8x128xf32>
    %599 = math.tanh %598 : vector<8x128xf32>
    %600 = vector.extract_strided_slice %585 {offsets = [0, 384], sizes = [8, 128], strides = [1, 1]} : vector<8x512xf32> to vector<8x128xf32>
    %601 = arith.negf %600 : vector<8x128xf32>
    %602 = math.exp %601 : vector<8x128xf32>
    %cst_293 = arith.constant 1.000000e+00 : f32
    %603 = vector.broadcast %cst_293 : f32 to vector<8x128xf32>
    %604 = arith.addf %603, %602 : vector<8x128xf32>
    %605 = arith.divf %603, %604 : vector<8x128xf32>
    %c0_294 = arith.constant 0 : index
    %c0_295 = arith.constant 0 : index
    %606 = vector.load %arg13[%c0_294, %c0_295] : memref<8x128xf32, #tpu.memory_space<vmem>>, vector<8x128xf32>
    %607 = arith.mulf %597, %606 : vector<8x128xf32>
    %608 = arith.mulf %591, %599 : vector<8x128xf32>
    %609 = arith.addf %607, %608 : vector<8x128xf32>
    %610 = math.tanh %609 : vector<8x128xf32>
    %611 = arith.mulf %605, %610 : vector<8x128xf32>
    %c0_296 = arith.constant 0 : index
    %c0_297 = arith.constant 0 : index
    %612 = vector.load %arg13[%c0_296, %c0_297] : memref<8x128xf32, #tpu.memory_space<vmem>>, vector<8x128xf32>
    tpu.vector_store %arg13[%c0_296, %c0_297], %609 {strides = array<i32>} : memref<8x128xf32, #tpu.memory_space<vmem>>, vector<8x128xf32>,
    %c0_298 = arith.constant 0 : index
    %c0_299 = arith.constant 0 : index
    %613 = vector.load %arg12[%c0_298, %c0_299] : memref<8x128xf32, #tpu.memory_space<vmem>>, vector<8x128xf32>
    tpu.vector_store %arg12[%c0_298, %c0_299], %611 {strides = array<i32>} : memref<8x128xf32, #tpu.memory_space<vmem>>, vector<8x128xf32>,
    %c8_i32_300 = arith.constant 8 : i32
    %c0_301 = arith.constant 0 : index
    %c0_302 = arith.constant 0 : index
    %614 = vector.load %arg12[%c0_301, %c0_302] : memref<8x128xf32, #tpu.memory_space<vmem>>, vector<8x128xf32>
    %c0_303 = arith.constant 0 : index
    %c0_304 = arith.constant 0 : index
    %615 = vector.load %arg7[%c0_303, %c0_304] : memref<1x128xf32, #tpu.memory_space<vmem>>, vector<1x128xf32>
    %616 = vector.broadcast %615 : vector<1x128xf32> to vector<8x128xf32>
    %617 = arith.mulf %614, %616 : vector<8x128xf32>
    %cst_305 = arith.constant dense<0.000000e+00> : vector<8xf32>
    %618 = vector.multi_reduction <add>, %617, %cst_305 [1] : vector<8x128xf32> to vector<8xf32>
    %619 = vector.shape_cast %618 : vector<8xf32> to vector<8x1xf32>
    %c0_306 = arith.constant 0 : index
    %c0_307 = arith.constant 0 : index
    %620 = vector.load %arg8[%c0_306, %c0_307] : memref<1x1xf32, #tpu.memory_space<vmem>>, vector<1x1xf32>
    %621 = vector.broadcast %620 : vector<1x1xf32> to vector<8x1xf32>
    %622 = arith.addf %619, %621 : vector<8x1xf32>
    %c0_308 = arith.constant 0 : index
    %c0_309 = arith.constant 0 : index
    %623 = vector.load %arg9[%c0_308, %c0_309] : memref<8x1xf32, #tpu.memory_space<vmem>>, vector<8x1xf32>
    tpu.vector_store %arg9[%c0_308, %c0_309], %622 {strides = array<i32>} : memref<8x1xf32, #tpu.memory_space<vmem>>, vector<8x1xf32>,
    return
  }
}

</mosaic_0001>

<bundles_post_ra>
// kernel: lstm_model_forward_impl.1
= control target key start
LH: loop header
LB: loop body
LE: loop exit
PB: predicated region body
PF: predicated region fallthrough
CT: control target
= control target key end

     0   :  { %s7530_s0 = inlined_call_operand.vmem [shape: f32[64,16], index: 0, kind: input, shape index: {}]   ;;  %s7531_s1 = inlined_call_operand.vmem [shape: f32[16,512], index: 1, kind: input, shape index: {}]   ;;  %s7532_s2 = inlined_call_operand.hbm [shape: f32[128,512], index: 2, kind: input, shape index: {}]   ;;  %s7533_s3 = inlined_call_operand.vmem [shape: f32[1,512], index: 3, kind: input, shape index: {}]   ;;  %s7534_s4 = inlined_call_operand.hbm [shape: f32[128,512], index: 4, kind: input, shape index: {}]   ;;  %s7535_s5 = inlined_call_operand.hbm [shape: f32[128,512], index: 5, kind: input, shape index: {}]   ;;  %s7536_s6 = inlined_call_operand.vmem [shape: f32[1,512], index: 6, kind: input, shape index: {}]   ;;  %s7537_s7 = inlined_call_operand.vmem [shape: f32[1,128], index: 7, kind: input, shape index: {}]   ;;  %s7538_s8 = inlined_call_operand.<no memory space> [shape: f32[1,1], index: 8, kind: input, shape index: {}]   ;;  %s7539_s9 = inlined_call_operand.vmem [shape: f32[8,1], index: 9, kind: output, shape index: {}]  }
   0x1   :  { %v14_v0 = vstv %s7538_s8 }
   0x2   :  { %15 = vst [vmem:[#allocation6] sm:$0x1] %v14_v0 }
   0x3   :  { %16 = vsyncpa [#allocation8], 0 }
   0x4   :  { %17 = vsyncpa [#allocation10], 0  ;;  %s6319_s11 = smov [#allocation9]   ;;  %s6320_s13 = smov [#allocation7]  }
   0x5   :  { %s41_s12 = sshll.u32 %s6319_s11, 4  ;;  %s27_s14 = sshll.u32 %s6320_s13, 4  ;;  %s42_s12 = int_to_ptr.vmem [resolvable:$true] %s41_s12  ;;  %s6378_s14 = int_to_ptr.vmem [resolvable:$true] %s27_s14 }
   0x6   :  { %s6249_s17 = scalar_lea.hbm %s7534_s4, 8192 }
   0x7   :  { %p6250_p0 = scmp.ne.s32.totalorder %s7534_s4, %s6249_s17  ;;  %p6253_p1 = scmp.lt.u32.totalorder %s6249_s17, %s7534_s4 }
   0x9   :  { %p6255_p2 = pnand %p6253_p1, %p6250_p0 }
   0xb   :  { %6258 = shalt.err (!%p6255_p2)
}
   0xc   :  { %s6259_s21 = scalar_lea.vmem %s42_s12, 8192  ;;  %p6264_p4 = scmp.lt.s32.totalorder %s42_s12, %s42_s12 }
   0xd   :  { %p6260_p3 = scmp.ne.s32.totalorder %s42_s12, %s6259_s21  ;;  %p6265_p5 = scmp.lt.s32.totalorder %s6259_s21, %s6259_s21 }
   0xf   :  { %p6266_p6 = por %p6265_p5, %p6264_p4 }
  0x11   :  { %p6267_p7 = pnand %p6266_p6, %p6260_p3 }
  0x13   :  { %6270 = shalt.err (!%p6267_p7)
}
  0x14   :  { %s6321_s22 = smov 512   ;;  %s6322_s23 = smov 32  }
  0x15   :  { %47 = dma.hbm_to_vmem [thread:$0]  %s7534_s4, 8192, %s42_s12, [#allocation10], %s6321_s22, %s6321_s22, %s6322_s23  }
  0x16   :  { %s6271_s28 = scalar_lea.hbm %s7532_s2, 8192 }
  0x17   :  { %p6272_p8 = scmp.ne.s32.totalorder %s7532_s2, %s6271_s28  ;;  %p6275_p9 = scmp.lt.u32.totalorder %s6271_s28, %s7532_s2 }
  0x19   :  { %p6277_p10 = pnand %p6275_p9, %p6272_p8 }
  0x1b   :  { %6280 = shalt.err (!%p6277_p10)
}
  0x1c   :  { %s6281_s13 = scalar_lea.vmem %s6378_s14, 8192  ;;  %p6286_p12 = scmp.lt.s32.totalorder %s6378_s14, %s6378_s14 }
  0x1d   :  { %p6282_p11 = scmp.ne.s32.totalorder %s6378_s14, %s6281_s13  ;;  %p6287_p13 = scmp.lt.s32.totalorder %s6281_s13, %s6281_s13 }
  0x1f   :  { %p6288_p0 = por %p6287_p13, %p6286_p12 }
  0x21   :  { %p6289_p1 = pnand %p6288_p0, %p6282_p11 }
  0x23   :  { %6292 = shalt.err (!%p6289_p1)
}
  0x24   :  { %33 = dma.hbm_to_vmem [thread:$0]  %s7532_s2, 8192, %s6378_s14, [#allocation8], %s6321_s22, %s6321_s22, %s6322_s23  }
  0x25   :  { %s6323_s15 = smov [#allocation11]   ;;  %s6293_s19 = scalar_lea.hbm %s7535_s5, 8192 }
  0x26   :  { %s53_s16 = sshll.u32 %s6323_s15, 4  ;;  %p6294_p2 = scmp.ne.s32.totalorder %s7535_s5, %s6293_s19  ;;  %s54_s16 = int_to_ptr.vmem [resolvable:$true] %s53_s16 }
  0x27   :  { %p6297_p3 = scmp.lt.u32.totalorder %s6293_s19, %s7535_s5 }
  0x29   :  { %p6299_p4 = pnand %p6297_p3, %p6294_p2 }
  0x2b   :  { %6302 = shalt.err (!%p6299_p4)
}
  0x2c   :  { %s6303_s25 = scalar_lea.vmem %s54_s16, 8192  ;;  %p6308_p6 = scmp.lt.s32.totalorder %s54_s16, %s54_s16 }
  0x2d   :  { %p6304_p5 = scmp.ne.s32.totalorder %s54_s16, %s6303_s25  ;;  %p6309_p7 = scmp.lt.s32.totalorder %s6303_s25, %s6303_s25 }
  0x2f   :  { %p6310_p8 = por %p6309_p7, %p6308_p6 }
  0x31   :  { %p6311_p9 = pnand %p6310_p8, %p6304_p5 }
  0x33   :  { %6314 = shalt.err (!%p6311_p9)
}
  0x34   :  { %59 = dma.hbm_to_vmem [thread:$0]  %s7535_s5, 8192, %s54_s16, [#allocation10], %s6321_s22, %s6321_s22, %s6322_s23  }
  0x35   :  { %6315 = dma.done.wait [#allocation8], 8192  }
  0x36   :  { %6316 = vsyncadd [#allocation8], 4294959104 }
  0x37   :  { %6317 = dma.done.wait [#allocation10], 16384  }
  0x38   :  { %6318 = vsyncadd [#allocation10], 4294950912  ;;  %v6324_v1 = vmov 0.0   ;;  %v84_v2 = vld [vmem:[%s7531_s1 + $0x8] sm:$0xff]  ;;  %v86_v4 = vld [vmem:[%s7531_s1 + $0x18] sm:$0xff]  ;;  %vm113_vm0 = vcmask 130048  }
  0x39   :  { %202 = vmatprep.mubr.f32.mxu0 %v6324_v1  ;;  %315 = vmatprep.mubr.f32.mxu1 %v6324_v1  ;;  %v88_v3 = vld [vmem:[%s7531_s1 + $0x28] sm:$0xff]  ;;  %v90_v6 = vld [vmem:[%s7531_s1 + $0x38] sm:$0xff]  ;;  %v83_v7 = vld [vmem:[%s7531_s1] sm:$0xff]  ;;  %vm4682_vm1 = vcmask 7168  }
  0x3a   :  { %v4763_v5 = vpack.c.bf16 %v88_v3, %v84_v2  ;;  %v87_v8 = vld [vmem:[%s7531_s1 + $0x20] sm:$0xff]  ;;  %v4767_v9 = vpack.c.bf16 %v90_v6, %v86_v4  ;;  %v85_v11 = vld [vmem:[%s7531_s1 + $0x10] sm:$0xff]  ;;  %v76_v34 = vld [vmem:[%s7530_s0 + $0x8] sm:$0xff] }
  0x3b   :  { %v4765_v10 = vpack.c.bf16 %v87_v8, %v83_v7  ;;  %v89_v12 = vld [vmem:[%s7531_s1 + $0x30] sm:$0xff]  ;;  %v75_v13 = vld [vmem:[%s7530_s0] sm:$0xff]  ;;  %v78_v2 = vld [vmem:[%s7530_s0 + $0x18] sm:$0xff] }
  0x3c   :  { %4764 = vmatprep.subr.bf16.mxu0 %v4763_v5  ;;  %v4769_v14 = vpack.c.bf16 %v89_v12, %v85_v11  ;;  %v407_v15 = vld [vmem:[#allocation7 + $0x8] sm:$0xff]  ;;  %v409_v17 = vld [vmem:[#allocation7 + $0x18] sm:$0xff]  ;;  %4768 = vmatprep.subr.bf16.mxu1 %v4767_v9  ;;  %v406_v20 = vld [vmem:[#allocation7] sm:$0xff] }
  0x3d   :  { %v411_v16 = vld [vmem:[#allocation7 + $0x28] sm:$0xff]  ;;  %4766 = vmatpush1.bf16.msra.mxu0 %v4765_v10  ;;  %v413_v19 = vld [vmem:[#allocation7 + $0x38] sm:$0xff]  ;;  %v410_v21 = vld [vmem:[#allocation7 + $0x20] sm:$0xff] }
  0x3e   :  { %v6459_v18 = vpack.c.bf16 %v411_v16, %v407_v15  ;;  %4770 = vmatpush1.bf16.msra.mxu1 %v4769_v14  ;;  %v6461_v22 = vpack.c.bf16 %v413_v19, %v409_v17  ;;  %v6463_v23 = vpack.c.bf16 %v410_v21, %v406_v20  ;;  %v408_v24 = vld [vmem:[#allocation7 + $0x10] sm:$0xff]  ;;  %v415_v27 = vld [vmem:[#allocation7 + $0x48] sm:$0xff]  ;;  %v417_v29 = vld [vmem:[#allocation7 + $0x58] sm:$0xff] }
  0x3f   :  { %v412_v25 = vld [vmem:[#allocation7 + $0x30] sm:$0xff]  ;;  %v419_v28 = vld [vmem:[#allocation7 + $0x68] sm:$0xff]  ;;  %v421_v31 = vld [vmem:[#allocation7 + $0x78] sm:$0xff] }
  0x40   :  { %4772 = vmatprep.subr.bf16.mxu0 %v6459_v18  ;;  %v6466_v26 = vpack.c.bf16 %v412_v25, %v408_v24  ;;  %4697 = vmatmul.mubr.msk.f32.vlgmr.msra.gmra.mrb[0].mxu0 %vm113_vm0, %v75_v13  ;;  %v6470_v30 = vpack.c.bf16 %v419_v28, %v415_v27  ;;  %v414_v32 = vld [vmem:[#allocation7 + $0x40] sm:$0xff]  ;;  %v6477_v35 = vpack.c.bf16 %v421_v31, %v417_v29  ;;  %v416_v37 = vld [vmem:[#allocation7 + $0x50] sm:$0xff]  ;;  %v423_v40 = vld [vmem:[#allocation7 + $0x88] sm:$0xff] }
  0x41   :  { %4804 = vmatprep.subr.bf16.mxu1 %v6461_v22  ;;  %v418_v33 = vld [vmem:[#allocation7 + $0x60] sm:$0xff]  ;;  %4705 = vmatmul.mubr.msk.f32.vlgmr.msra.gmra.mrb[0].mxu1 %vm113_vm0, %v75_v13  ;;  %v420_v38 = vld [vmem:[#allocation7 + $0x70] sm:$0xff]  ;;  %v427_v41 = vld [vmem:[#allocation7 + $0xa8] sm:$0xff] }
  0x42   :  { %4774 = vmatpush1.bf16.msra.mxu0 %v6463_v23  ;;  %v6479_v36 = vpack.c.bf16 %v418_v33, %v414_v32  ;;  %4806 = vmatpush1.bf16.msra.mxu1 %v6466_v26  ;;  %v6483_v39 = vpack.c.bf16 %v420_v38, %v416_v37  ;;  %v425_v42 = vld [vmem:[#allocation7 + $0x98] sm:$0xff]  ;;  %v6487_v43 = vpack.c.bf16 %v427_v41, %v423_v40  ;;  %v422_v45 = vld [vmem:[#allocation7 + $0x80] sm:$0xff]  ;;  %v77_v47 = vld [vmem:[%s7530_s0 + $0x10] sm:$0xff] }
  0x43   :  { %208 = vmatprep.mubr.f32.mxu0 %v6324_v1  ;;  %321 = vmatprep.mubr.f32.mxu1 %v6324_v1  ;;  %v429_v44 = vld [vmem:[#allocation7 + $0xb8] sm:$0xff]  ;;  %v426_v46 = vld [vmem:[#allocation7 + $0xa0] sm:$0xff]  ;;  %v424_v49 = vld [vmem:[#allocation7 + $0x90] sm:$0xff] }
  0x44   :  { %4776 = vmatprep.subr.bf16.mxu0 %v6470_v30  ;;  %4698 = vmatmul.mubr.msk.f32.gmra.mrb[2].mxu0 %vm113_vm0, %v76_v34  ;;  %v6494_v48 = vpack.c.bf16 %v429_v44, %v425_v42  ;;  %v428_v50 = vld [vmem:[#allocation7 + $0xb0] sm:$0xff]  ;;  %v6498_v51 = vpack.c.bf16 %v426_v46, %v422_v45  ;;  %v431_v52 = vld [vmem:[#allocation7 + $0xc8] sm:$0xff]  ;;  %v433_v54 = vld [vmem:[#allocation7 + $0xd8] sm:$0xff] }
  0x45   :  { %4808 = vmatprep.subr.bf16.mxu1 %v6477_v35  ;;  %4706 = vmatmul.mubr.msk.f32.gmra.mrb[2].mxu1 %vm113_vm0, %v76_v34  ;;  %v435_v53 = vld [vmem:[#allocation7 + $0xe8] sm:$0xff]  ;;  %v6502_v55 = vpack.c.bf16 %v428_v50, %v424_v49  ;;  %v437_v56 = vld [vmem:[#allocation7 + $0xf8] sm:$0xff]  ;;  %v430_v57 = vld [vmem:[#allocation7 + $0xc0] sm:$0xff] }
  0x46   :  { %4778 = vmatpush1.bf16.msra.mxu0 %v6479_v36  ;;  %4810 = vmatpush1.bf16.msra.mxu1 %v6483_v39  ;;  %v434_v58 = vld [vmem:[#allocation7 + $0xe0] sm:$0xff]  ;;  %v6506_v59 = vpack.c.bf16 %v435_v53, %v431_v52  ;;  %v432_v60 = vld [vmem:[#allocation7 + $0xd0] sm:$0xff]  ;;  %v6510_v62 = vpack.c.bf16 %v437_v56, %v433_v54  ;;  %v439_v63 = vld [vmem:[#allocation7 + $0x108] sm:$0xff] }
  0x47   :  { %214 = vmatprep.mubr.f32.mxu0 %v6324_v1  ;;  %327 = vmatprep.mubr.f32.mxu1 %v6324_v1  ;;  %v436_v61 = vld [vmem:[#allocation7 + $0xf0] sm:$0xff]  ;;  %v443_v0 = vld [vmem:[#allocation7 + $0x128] sm:$0xff]  ;;  %v6517_v3 = vpack.c.bf16 %v434_v58, %v430_v57  ;;  %v441_v4 = vld [vmem:[#allocation7 + $0x118] sm:$0xff] }
  0x48   :  { %4780 = vmatprep.subr.bf16.mxu0 %v6487_v43  ;;  %4699 = vmatmul.mubr.msk.f32.gmra.mrb[4].mxu0 %vm113_vm0, %v77_v47  ;;  %v445_v5 = vld [vmem:[#allocation7 + $0x138] sm:$0xff]  ;;  %v6521_v6 = vpack.c.bf16 %v436_v61, %v432_v60  ;;  %v438_v7 = vld [vmem:[#allocation7 + $0x100] sm:$0xff]  ;;  %v6525_v9 = vpack.c.bf16 %v443_v0, %v439_v63  ;;  %v440_v10 = vld [vmem:[#allocation7 + $0x110] sm:$0xff] }
  0x49   :  { %4812 = vmatprep.subr.bf16.mxu1 %v6494_v48  ;;  %4707 = vmatmul.mubr.msk.f32.gmra.mrb[4].mxu1 %vm113_vm0, %v77_v47  ;;  %v442_v8 = vld [vmem:[#allocation7 + $0x120] sm:$0xff]  ;;  %v444_v11 = vld [vmem:[#allocation7 + $0x130] sm:$0xff]  ;;  %v6529_v12 = vpack.c.bf16 %v445_v5, %v441_v4  ;;  %v447_v13 = vld [vmem:[#allocation7 + $0x148] sm:$0xff] }
  0x4a   :  { %4782 = vmatpush1.bf16.msra.mxu0 %v6498_v51  ;;  %4814 = vmatpush1.bf16.msra.mxu1 %v6502_v55  ;;  %v451_v14 = vld [vmem:[#allocation7 + $0x168] sm:$0xff]  ;;  %v79_v15 = vld [vmem:[%s7530_s0 + $0x20] sm:$0xff]  ;;  %v6536_v16 = vpack.c.bf16 %v442_v8, %v438_v7  ;;  %v6540_v20 = vpack.c.bf16 %v444_v11, %v440_v10  ;;  %v448_v27 = vld [vmem:[#allocation7 + $0x150] sm:$0xff]  ;;  %v93_v8 = vlaneseq }
  0x4b   :  { %220 = vmatprep.mubr.f32.mxu0 %v6324_v1  ;;  %333 = vmatprep.mubr.f32.mxu1 %v6324_v1  ;;  %v449_v17 = vld [vmem:[#allocation7 + $0x158] sm:$0xff]  ;;  %v446_v21 = vld [vmem:[#allocation7 + $0x140] sm:$0xff]  ;;  %v6544_v25 = vpack.c.bf16 %v451_v14, %v447_v13  ;;  %v452_v28 = vld [vmem:[#allocation7 + $0x170] sm:$0xff] }
  0x4c   :  { %4784 = vmatprep.subr.bf16.mxu0 %v6506_v59  ;;  %4700 = vmatmul.mubr.msk.f32.gmra.mrb[6].mxu0 %vm113_vm0, %v78_v2  ;;  %v453_v19 = vld [vmem:[#allocation7 + $0x178] sm:$0xff]  ;;  %v450_v24 = vld [vmem:[#allocation7 + $0x160] sm:$0xff]  ;;  %v455_v31 = vld [vmem:[#allocation7 + $0x188] sm:$0xff]  ;;  %v6559_v40 = vpack.c.bf16 %v452_v28, %v448_v27  ;;  %v6646_v10 = vshrl.u32 %v93_v8, 7 }
  0x4d   :  { %4816 = vmatprep.subr.bf16.mxu1 %v6510_v62  ;;  %4708 = vmatmul.mubr.msk.f32.gmra.mrb[6].mxu1 %vm113_vm0, %v78_v2  ;;  %v6548_v29 = vpack.c.bf16 %v453_v19, %v449_v17  ;;  %v459_v32 = vld [vmem:[#allocation7 + $0x1a8] sm:$0xff]  ;;  %v6555_v34 = vpack.c.bf16 %v450_v24, %v446_v21  ;;  %v457_v37 = vld [vmem:[#allocation7 + $0x198] sm:$0xff]  ;;  %v454_v41 = vld [vmem:[#allocation7 + $0x180] sm:$0xff] }
  0x4e   :  { %4786 = vmatpush1.bf16.msra.mxu0 %v6517_v3  ;;  %4818 = vmatpush1.bf16.msra.mxu1 %v6521_v6  ;;  %v80_v33 = vld [vmem:[%s7530_s0 + $0x28] sm:$0xff]  ;;  %v461_v38 = vld [vmem:[#allocation7 + $0x1b8] sm:$0xff]  ;;  %v6563_v44 = vpack.c.bf16 %v459_v32, %v455_v31  ;;  %v456_v45 = vld [vmem:[#allocation7 + $0x190] sm:$0xff]  ;;  %v95_v11 = vsub.s32 0, %v6646_v10  ;;  %v99_v14 = vsub.s32 1, %v6646_v10  ;;  %v107_v17 = vsub.s32 3, %v6646_v10 }
  0x4f   :  { %226 = vmatprep.mubr.f32.mxu0 %v6324_v1  ;;  %339 = vmatprep.mubr.f32.mxu1 %v6324_v1  ;;  %v458_v42 = vld [vmem:[#allocation7 + $0x1a0] sm:$0xff]  ;;  %v460_v46 = vld [vmem:[#allocation7 + $0x1b0] sm:$0xff]  ;;  %v6567_v47 = vpack.c.bf16 %v461_v38, %v457_v37  ;;  %v463_v49 = vld [vmem:[#allocation7 + $0x1c8] sm:$0xff]  ;;  %v103_v37 = vsub.s32 2, %v6646_v10 }
  0x50   :  { %4788 = vmatprep.subr.bf16.mxu0 %v6525_v9  ;;  %4701 = vmatmul.mubr.msk.f32.gmra.mrb[8].mxu0 %vm113_vm0, %v79_v15  ;;  %v467_v50 = vld [vmem:[#allocation7 + $0x1e8] sm:$0xff]  ;;  %v6574_v53 = vpack.c.bf16 %v458_v42, %v454_v41  ;;  %v465_v54 = vld [vmem:[#allocation7 + $0x1d8] sm:$0xff]  ;;  %v6578_v57 = vpack.c.bf16 %v460_v46, %v456_v45  ;;  %v462_v58 = vld [vmem:[#allocation7 + $0x1c0] sm:$0xff] }
  0x51   :  { %4820 = vmatprep.subr.bf16.mxu1 %v6529_v12  ;;  %4709 = vmatmul.mubr.msk.f32.gmra.mrb[8].mxu1 %vm113_vm0, %v79_v15  ;;  %v81_v52 = vld [vmem:[%s7530_s0 + $0x30] sm:$0xff]  ;;  %v469_v56 = vld [vmem:[#allocation7 + $0x1f8] sm:$0xff]  ;;  %v466_v60 = vld [vmem:[#allocation7 + $0x1e0] sm:$0xff]  ;;  %v6582_v61 = vpack.c.bf16 %v467_v50, %v463_v49 }
  0x52   :  { %4790 = vmatpush1.bf16.msra.mxu0 %v6536_v16  ;;  %4822 = vmatpush1.bf16.msra.mxu1 %v6540_v20  ;;  %v464_v63 = vld [vmem:[#allocation7 + $0x1d0] sm:$0xff]  ;;  %v6586_v2 = vpack.c.bf16 %v469_v56, %v465_v54  ;;  %v6593_v5 = vpack.c.bf16 %v466_v60, %v462_v58  ;;  %v91_v13 = vld [vmem:[%s7533_s3] sm:$0xf] }
  0x53   :  { %232 = vmatprep.mubr.f32.mxu0 %v6324_v1  ;;  %345 = vmatprep.mubr.f32.mxu1 %v6324_v1  ;;  %v468_v0 = vld [vmem:[#allocation7 + $0x1f0] sm:$0xff]  ;;  %v6655_v15 = vrot.slane %v91_v13, %v95_v11  ;;  %v6672_v41 = vrot.slane %v91_v13, %v103_v37 }
  0x54   :  { %4792 = vmatprep.subr.bf16.mxu0 %v6544_v25  ;;  %4702 = vmatmul.mubr.msk.f32.gmra.mrb[10].mxu0 %vm113_vm0, %v80_v33  ;;  %v82_v4 = vld [vmem:[%s7530_s0 + $0x38] sm:$0xff]  ;;  %v6597_v7 = vpack.c.bf16 %v468_v0, %v464_v63 }
  0x55   :  { %4824 = vmatprep.subr.bf16.mxu1 %v6548_v29  ;;  %4710 = vmatmul.mubr.msk.f32.gmra.mrb[10].mxu1 %vm113_vm0, %v80_v33  ;;  %v6666_v33 = vrot.slane %v91_v13, %v107_v17 }
  0x56   :  { %4794 = vmatpush1.bf16.msra.mxu0 %v6555_v34  ;;  %4826 = vmatpush1.bf16.msra.mxu1 %v6559_v40 }
  0x57   :  { %238 = vmatprep.mubr.f32.mxu0 %v6324_v1  ;;  %351 = vmatprep.mubr.f32.mxu1 %v6324_v1 }
  0x58   :  { %4796 = vmatprep.subr.bf16.mxu0 %v6563_v44  ;;  %4703 = vmatmul.mubr.msk.f32.gmra.mrb[12].mxu0 %vm113_vm0, %v81_v52 }
  0x59   :  { %4828 = vmatprep.subr.bf16.mxu1 %v6567_v47  ;;  %4711 = vmatmul.mubr.msk.f32.gmra.mrb[12].mxu1 %vm113_vm0, %v81_v52 }
  0x5a   :  { %4798 = vmatpush1.bf16.msra.mxu0 %v6574_v53  ;;  %4830 = vmatpush1.bf16.msra.mxu1 %v6578_v57 }
  0x5b   :  { %244 = vmatprep.mubr.f32.mxu0 %v6324_v1  ;;  %357 = vmatprep.mubr.f32.mxu1 %v6324_v1 }
  0x5c   :  { %4800 = vmatprep.subr.bf16.mxu0 %v6582_v61  ;;  %4704 = vmatmul.mubr.msk.f32.gmra.mrb[14].mxu0 %vm113_vm0, %v82_v4 }
  0x5d   :  { %4832 = vmatprep.subr.bf16.mxu1 %v6586_v2  ;;  %4712 = vmatmul.mubr.msk.f32.gmra.mrb[14].mxu1 %vm113_vm0, %v82_v4 }
  0x5e   :  { %4802 = vmatpush1.bf16.msra.mxu0 %v6593_v5  ;;  %4834 = vmatpush1.bf16.msra.mxu1 %v6597_v7 }
  0x5f   :  { %534 = vmatprep.mubr.f32.mxu0 %v6324_v1  ;;  %605 = vmatprep.mubr.f32.mxu1 %v6324_v1 }
  0x60   :  { %4836 = vmatprep.subr.bf16.mxu0 %v6459_v18  ;;  %4868 = vmatprep.subr.bf16.mxu1 %v6461_v22 }
  0x61   :  { %535 = vmatmul.mubr.f32.vlgmr.msra.gmra.mrb[0].mxu0 %v6324_v1  ;;  %606 = vmatmul.mubr.f32.vlgmr.msra.gmra.mrb[0].mxu1 %v6324_v1 }
  0x62   :  { %4838 = vmatpush1.bf16.msra.mxu0 %v6463_v23  ;;  %4870 = vmatpush1.bf16.msra.mxu1 %v6466_v26 }
  0x63   :  { %4840 = vmatprep.subr.bf16.mxu0 %v6470_v30  ;;  %4872 = vmatprep.subr.bf16.mxu1 %v6477_v35 }
  0x64   :  { %780 = vmatprep.mubr.f32.mxu0 %v6324_v1  ;;  %851 = vmatprep.mubr.f32.mxu1 %v6324_v1 }
  0x66   :  { %4842 = vmatpush1.bf16.msra.mxu0 %v6479_v36  ;;  %4874 = vmatpush1.bf16.msra.mxu1 %v6483_v39 }
  0x67   :  { %4844 = vmatprep.subr.bf16.mxu0 %v6487_v43  ;;  %4876 = vmatprep.subr.bf16.mxu1 %v6494_v48 }
  0x6a   :  { %4846 = vmatpush1.bf16.msra.mxu0 %v6498_v51  ;;  %4878 = vmatpush1.bf16.msra.mxu1 %v6502_v55 }
  0x6b   :  { %4848 = vmatprep.subr.bf16.mxu0 %v6506_v59  ;;  %4880 = vmatprep.subr.bf16.mxu1 %v6510_v62 }
  0x6e   :  { %4850 = vmatpush1.bf16.msra.mxu0 %v6517_v3  ;;  %4882 = vmatpush1.bf16.msra.mxu1 %v6521_v6 }
  0x6f   :  { %4852 = vmatprep.subr.bf16.mxu0 %v6525_v9  ;;  %4884 = vmatprep.subr.bf16.mxu1 %v6529_v12 }
  0x72   :  { %4854 = vmatpush1.bf16.msra.mxu0 %v6536_v16  ;;  %4886 = vmatpush1.bf16.msra.mxu1 %v6540_v20 }
  0x73   :  { %4856 = vmatprep.subr.bf16.mxu0 %v6544_v25  ;;  %4888 = vmatprep.subr.bf16.mxu1 %v6548_v29 }
  0x76   :  { %4858 = vmatpush1.bf16.msra.mxu0 %v6555_v34  ;;  %4890 = vmatpush1.bf16.msra.mxu1 %v6559_v40 }
  0x77   :  { %4860 = vmatprep.subr.bf16.mxu0 %v6563_v44  ;;  %4892 = vmatprep.subr.bf16.mxu1 %v6567_v47 }
  0x7a   :  { %4862 = vmatpush1.bf16.msra.mxu0 %v6574_v53  ;;  %4894 = vmatpush1.bf16.msra.mxu1 %v6578_v57 }
  0x7b   :  { %4864 = vmatprep.subr.bf16.mxu0 %v6582_v61  ;;  %4896 = vmatprep.subr.bf16.mxu1 %v6586_v2 }
  0x7e   :  { %4866 = vmatpush1.bf16.msra.mxu0 %v6593_v5  ;;  %4898 = vmatpush1.bf16.msra.mxu1 %v6597_v7 }
  0x7f   :  { %4900 = vmatprep.subr.bf16.mxu0 %v6459_v18  ;;  %4932 = vmatprep.subr.bf16.mxu1 %v6461_v22  ;;  %v6659_v18 = vrot.slane %v91_v13, %v99_v14 }
 0x134   :  { %v536_v22 = vpop.f32.mrb[0].mxu0  ;;  %v607_v21 = vpop.f32.mrb[0].mxu1 }
 0x135   :  { %v5859_v19 = vadd.f32 %v536_v22, %v6655_v15  ;;  %v538_v24 = vpop.f32.mrb[1].mxu0  ;;  %v609_v28 = vpop.f32.mrb[1].mxu1  ;;  %v5875_v45 = vadd.f32 %v607_v21, %v6672_v41 }
 0x136   :  { %v5860_v27 = vadd.f32 %v538_v24, %v6659_v18  ;;  %v5876_v38 = vadd.f32 %v609_v28, %v6666_v33 }
 0x137   :  { %v4713_v31 = vmul.f32 -1.442695, %v5859_v19 }
 0x138   :  { %v4714_v32 = vmul.f32 -1.442695, %v5860_v27  ;;  %v4715_v42 = vmul.f32 -1.442695, %v5876_v38 }
 0x139   :  { %5993 = vpow2.f32 %v4713_v31 }
 0x13a   :  { %5995 = vpow2.f32 %v4714_v32 }
 0x13b   :  { %5997 = vpow2.f32 %v4715_v42 }
 0x13c   :  { %5999 = vtanh.f32 %v5875_v45 }
 0x143   :  { %v5994_v46 = vpop.eup %5993 }
 0x144   :  { %v5996_v49 = vpop.eup %5995  ;;  %v619_v50 = vadd.f32 1.0, %v5994_v46 }
 0x145   :  { %v625_v52 = vadd.f32 1.0, %v5996_v49  ;;  %v5998_v54 = vpop.eup %5997 }
 0x146   :  { %6001 = vrcp.f32 %v619_v50  ;;  %v6000_v56 = vpop.eup %5999  ;;  %v632_v0 = vadd.f32 1.0, %v5998_v54 }
 0x147   :  { %6003 = vrcp.f32 %v625_v52 }
 0x148   :  { %6005 = vrcp.f32 %v632_v0 }
 0x150   :  { %v6002_v58 = vpop.eup %6001 }
 0x151   :  { %v6004_v60 = vpop.eup %6003  ;;  %v637_v63 = vmul.f32 %v6002_v58, %v6000_v56 }
 0x152   :  { %v636_v4 = vmul.f32 0.0, %v6004_v60  ;;  %v6006_v13 = vpop.eup %6005 }
 0x154   :  { %v6675_v8 = vadd.f32 %v637_v63, %v636_v4 }
 0x156   :  { %6007 = vtanh.f32 %v6675_v8 }
 0x160   :  { %v6008_v22 = vpop.eup %6007 }
 0x161   :  { %v6678_v19 = vmul.f32 %v6008_v22, %v6006_v13  ;;  %v1147_v13 = vld [vmem:[#allocation7 + $0x8] sm:$0xff] }
 0x162   :  { %v1151_v22 = vld [vmem:[#allocation7 + $0x28] sm:$0xff] }
 0x163   :  { %781 = vmatmul.mubr.f32.vlgmr.msra.gmra.mrb[2].mxu0 %v6678_v19  ;;  %852 = vmatmul.mubr.f32.vlgmr.msra.gmra.mrb[2].mxu1 %v6678_v19 }
 0x164   :  { %4902 = vmatpush1.bf16.msra.mxu0 %v6463_v23  ;;  %4934 = vmatpush1.bf16.msra.mxu1 %v6466_v26 }
 0x165   :  { %4904 = vmatprep.subr.bf16.mxu0 %v6470_v30  ;;  %4936 = vmatprep.subr.bf16.mxu1 %v6477_v35 }
 0x166   :  { %1027 = vmatprep.mubr.f32.mxu0 %v6324_v1  ;;  %1098 = vmatprep.mubr.f32.mxu1 %v6324_v1 }
 0x168   :  { %4906 = vmatpush1.bf16.msra.mxu0 %v6479_v36  ;;  %4938 = vmatpush1.bf16.msra.mxu1 %v6483_v39 }
 0x169   :  { %4908 = vmatprep.subr.bf16.mxu0 %v6487_v43  ;;  %4940 = vmatprep.subr.bf16.mxu1 %v6494_v48 }
 0x16c   :  { %4910 = vmatpush1.bf16.msra.mxu0 %v6498_v51  ;;  %4942 = vmatpush1.bf16.msra.mxu1 %v6502_v55 }
 0x16d   :  { %4912 = vmatprep.subr.bf16.mxu0 %v6506_v59  ;;  %4944 = vmatprep.subr.bf16.mxu1 %v6510_v62 }
 0x170   :  { %4914 = vmatpush1.bf16.msra.mxu0 %v6517_v3  ;;  %4946 = vmatpush1.bf16.msra.mxu1 %v6521_v6 }
 0x171   :  { %4916 = vmatprep.subr.bf16.mxu0 %v6525_v9  ;;  %4948 = vmatprep.subr.bf16.mxu1 %v6529_v12 }
 0x174   :  { %4918 = vmatpush1.bf16.msra.mxu0 %v6536_v16  ;;  %4950 = vmatpush1.bf16.msra.mxu1 %v6540_v20 }
 0x175   :  { %4920 = vmatprep.subr.bf16.mxu0 %v6544_v25  ;;  %4952 = vmatprep.subr.bf16.mxu1 %v6548_v29 }
 0x178   :  { %4922 = vmatpush1.bf16.msra.mxu0 %v6555_v34  ;;  %4954 = vmatpush1.bf16.msra.mxu1 %v6559_v40 }
 0x179   :  { %4924 = vmatprep.subr.bf16.mxu0 %v6563_v44  ;;  %4956 = vmatprep.subr.bf16.mxu1 %v6567_v47 }
 0x17c   :  { %4926 = vmatpush1.bf16.msra.mxu0 %v6574_v53  ;;  %4958 = vmatpush1.bf16.msra.mxu1 %v6578_v57 }
 0x17d   :  { %4928 = vmatprep.subr.bf16.mxu0 %v6582_v61  ;;  %4960 = vmatprep.subr.bf16.mxu1 %v6586_v2 }
 0x180   :  { %4930 = vmatpush1.bf16.msra.mxu0 %v6593_v5  ;;  %4962 = vmatpush1.bf16.msra.mxu1 %v6597_v7 }
 0x236   :  { %v782_v23 = vpop.f32.mrb[2].mxu0  ;;  %v853_v26 = vpop.f32.mrb[2].mxu1 }
 0x237   :  { %v5861_v30 = vadd.f32 %v782_v23, %v6655_v15  ;;  %v784_v35 = vpop.f32.mrb[3].mxu0  ;;  %v855_v36 = vpop.f32.mrb[3].mxu1  ;;  %v5877_v31 = vadd.f32 %v853_v26, %v6672_v41  ;;  %v6728_v23 = vpack.c.bf16 %v1151_v22, %v1147_v13  ;;  %v1153_v26 = vld [vmem:[#allocation7 + $0x38] sm:$0xff] }
 0x238   :  { %v5862_v39 = vadd.f32 %v784_v35, %v6659_v18  ;;  %v5878_v27 = vadd.f32 %v855_v36, %v6666_v33  ;;  %v1150_v35 = vld [vmem:[#allocation7 + $0x20] sm:$0xff]  ;;  %v1412_v13 = vld [vmem:[#allocation7 + $0x98] sm:$0xff] }
 0x239   :  { %v4716_v21 = vmul.f32 -1.442695, %v5861_v30  ;;  %v1146_v30 = vld [vmem:[#allocation7] sm:$0xff]  ;;  %4964 = vmatprep.subr.bf16.mxu0 %v6728_v23 }
 0x23a   :  { %v4717_v24 = vmul.f32 -1.442695, %v5862_v39  ;;  %v4718_v28 = vmul.f32 -1.442695, %v5878_v27  ;;  %v6732_v39 = vpack.c.bf16 %v1150_v35, %v1146_v30  ;;  %v1413_v30 = vld [vmem:[#allocation7 + $0xa0] sm:$0xff] }
 0x23b   :  { %6009 = vpow2.f32 %v4716_v21  ;;  %v1148_v21 = vld [vmem:[#allocation7 + $0x10] sm:$0xff] }
 0x23c   :  { %6011 = vpow2.f32 %v4717_v24  ;;  %v1152_v24 = vld [vmem:[#allocation7 + $0x30] sm:$0xff] }
 0x23d   :  { %6013 = vpow2.f32 %v4718_v28  ;;  %v6735_v27 = vpack.c.bf16 %v1152_v24, %v1148_v21  ;;  %v1155_v28 = vld [vmem:[#allocation7 + $0x48] sm:$0xff]  ;;  %v1411_v24 = vld [vmem:[#allocation7 + $0x90] sm:$0xff] }
 0x23e   :  { %6015 = vtanh.f32 %v5877_v31  ;;  %v1159_v31 = vld [vmem:[#allocation7 + $0x68] sm:$0xff] }
 0x245   :  { %v6010_v32 = vpop.eup %6009 }
 0x246   :  { %v6012_v38 = vpop.eup %6011  ;;  %v865_v42 = vadd.f32 1.0, %v6010_v32  ;;  %v1157_v32 = vld [vmem:[#allocation7 + $0x58] sm:$0xff] }
 0x247   :  { %v871_v45 = vadd.f32 1.0, %v6012_v38  ;;  %v6014_v46 = vpop.eup %6013  ;;  %v6740_v38 = vpack.c.bf16 %v1159_v31, %v1155_v28  ;;  %v1415_v28 = vld [vmem:[#allocation7 + $0xb0] sm:$0xff] }
 0x248   :  { %6017 = vrcp.f32 %v865_v42  ;;  %v6016_v49 = vpop.eup %6015  ;;  %v878_v56 = vadd.f32 1.0, %v6014_v46  ;;  %v1161_v42 = vld [vmem:[#allocation7 + $0x78] sm:$0xff]  ;;  %v1158_v46 = vld [vmem:[#allocation7 + $0x60] sm:$0xff]  ;;  %v6805_v31 = vpack.c.bf16 %v1415_v28, %v1411_v24  ;;  %v1446_v28 = vld [vmem:[#allocation7 + $0x1a8] sm:$0xff] }
 0x249   :  { %6019 = vrcp.f32 %v871_v45  ;;  %v1154_v45 = vld [vmem:[#allocation7 + $0x40] sm:$0xff] }
 0x24a   :  { %6021 = vrcp.f32 %v878_v56 }
 0x252   :  { %v6018_v50 = vpop.eup %6017 }
 0x253   :  { %v6020_v52 = vpop.eup %6019  ;;  %v883_v54 = vmul.f32 %v6018_v50, %v6016_v49  ;;  %v6742_v49 = vpack.c.bf16 %v1161_v42, %v1157_v32  ;;  %v6744_v50 = vpack.c.bf16 %v1158_v46, %v1154_v45  ;;  %v1418_v32 = vld [vmem:[#allocation7 + $0xc8] sm:$0xff]  ;;  %v1420_v45 = vld [vmem:[#allocation7 + $0xd8] sm:$0xff] }
 0x254   :  { %v882_v58 = vmul.f32 %v6020_v52, %v6675_v8  ;;  %v6022_v63 = vpop.eup %6021  ;;  %v1149_v8 = vld [vmem:[#allocation7 + $0x18] sm:$0xff]  ;;  %v1156_v52 = vld [vmem:[#allocation7 + $0x50] sm:$0xff]  ;;  %v1422_v42 = vld [vmem:[#allocation7 + $0xe8] sm:$0xff] }
 0x255   :  { %v6730_v36 = vpack.c.bf16 %v1153_v26, %v1149_v8  ;;  %v1416_v8 = vld [vmem:[#allocation7 + $0xb8] sm:$0xff]  ;;  %v1409_v26 = vld [vmem:[#allocation7 + $0x80] sm:$0xff]  ;;  %v6810_v46 = vpack.c.bf16 %v1422_v42, %v1418_v32 }
 0x256   :  { %v6719_v60 = vadd.f32 %v883_v54, %v882_v58  ;;  %v1160_v54 = vld [vmem:[#allocation7 + $0x70] sm:$0xff]  ;;  %v6800_v35 = vpack.c.bf16 %v1416_v8, %v1412_v13  ;;  %v6802_v21 = vpack.c.bf16 %v1413_v30, %v1409_v26  ;;  %v1442_v30 = vld [vmem:[#allocation7 + $0x188] sm:$0xff]  ;;  %v1444_v32 = vld [vmem:[#allocation7 + $0x198] sm:$0xff] }
 0x257   :  { %4996 = vmatprep.subr.bf16.mxu1 %v6730_v36  ;;  %v6747_v56 = vpack.c.bf16 %v1160_v54, %v1156_v52  ;;  %v1424_v52 = vld [vmem:[#allocation7 + $0xf8] sm:$0xff]  ;;  %v1417_v54 = vld [vmem:[#allocation7 + $0xc0] sm:$0xff]  ;;  %v1435_v8 = vld [vmem:[#allocation7 + $0x150] sm:$0xff] }
 0x258   :  { %6023 = vtanh.f32 %v6719_v60  ;;  %v1439_v26 = vld [vmem:[#allocation7 + $0x170] sm:$0xff]  ;;  %v1448_v42 = vld [vmem:[#allocation7 + $0x1b8] sm:$0xff] }
 0x259   :  { %v6841_v24 = vpack.c.bf16 %v1439_v26, %v1435_v8 }
 0x262   :  { %v6024_v0 = vpop.eup %6023 }
 0x263   :  { %v6722_v4 = vmul.f32 %v6024_v0, %v6022_v63  ;;  %v1414_v0 = vld [vmem:[#allocation7 + $0xa8] sm:$0xff] }
 0x265   :  { %1028 = vmatmul.mubr.f32.vlgmr.msra.gmra.mrb[4].mxu0 %v6722_v4  ;;  %1099 = vmatmul.mubr.f32.vlgmr.msra.gmra.mrb[4].mxu1 %v6722_v4 }
 0x266   :  { %1274 = vmatprep.mubr.f32.mxu0 %v6324_v1  ;;  %1345 = vmatprep.mubr.f32.mxu1 %v6324_v1 }
 0x267   :  { %4966 = vmatpush1.bf16.msra.mxu0 %v6732_v39  ;;  %4998 = vmatpush1.bf16.msra.mxu1 %v6735_v27 }
 0x268   :  { %4968 = vmatprep.subr.bf16.mxu0 %v6740_v38  ;;  %5000 = vmatprep.subr.bf16.mxu1 %v6742_v49 }
 0x26b   :  { %4970 = vmatpush1.bf16.msra.mxu0 %v6744_v50  ;;  %5002 = vmatpush1.bf16.msra.mxu1 %v6747_v56 }
 0x26c   :  { %4972 = vmatprep.subr.bf16.mxu0 %v6487_v43  ;;  %5004 = vmatprep.subr.bf16.mxu1 %v6494_v48 }
 0x26f   :  { %4974 = vmatpush1.bf16.msra.mxu0 %v6498_v51  ;;  %5006 = vmatpush1.bf16.msra.mxu1 %v6502_v55 }
 0x270   :  { %4976 = vmatprep.subr.bf16.mxu0 %v6506_v59  ;;  %5008 = vmatprep.subr.bf16.mxu1 %v6510_v62 }
 0x273   :  { %4978 = vmatpush1.bf16.msra.mxu0 %v6517_v3  ;;  %5010 = vmatpush1.bf16.msra.mxu1 %v6521_v6 }
 0x274   :  { %4980 = vmatprep.subr.bf16.mxu0 %v6525_v9  ;;  %5012 = vmatprep.subr.bf16.mxu1 %v6529_v12 }
 0x277   :  { %4982 = vmatpush1.bf16.msra.mxu0 %v6536_v16  ;;  %5014 = vmatpush1.bf16.msra.mxu1 %v6540_v20 }
 0x278   :  { %4984 = vmatprep.subr.bf16.mxu0 %v6544_v25  ;;  %5016 = vmatprep.subr.bf16.mxu1 %v6548_v29 }
 0x27b   :  { %4986 = vmatpush1.bf16.msra.mxu0 %v6555_v34  ;;  %5018 = vmatpush1.bf16.msra.mxu1 %v6559_v40 }
 0x27c   :  { %4988 = vmatprep.subr.bf16.mxu0 %v6563_v44  ;;  %5020 = vmatprep.subr.bf16.mxu1 %v6567_v47 }
 0x27f   :  { %4990 = vmatpush1.bf16.msra.mxu0 %v6574_v53  ;;  %5022 = vmatpush1.bf16.msra.mxu1 %v6578_v57 }
 0x280   :  { %4992 = vmatprep.subr.bf16.mxu0 %v6582_v61  ;;  %5024 = vmatprep.subr.bf16.mxu1 %v6586_v2 }
 0x283   :  { %4994 = vmatpush1.bf16.msra.mxu0 %v6593_v5  ;;  %5026 = vmatpush1.bf16.msra.mxu1 %v6597_v7 }
 0x284   :  { %5028 = vmatprep.subr.bf16.mxu0 %v6728_v23  ;;  %5060 = vmatprep.subr.bf16.mxu1 %v6730_v36 }
 0x338   :  { %v1029_v43 = vpop.f32.mrb[4].mxu0  ;;  %v1100_v48 = vpop.f32.mrb[4].mxu1 }
 0x339   :  { %v5863_v51 = vadd.f32 %v1029_v43, %v6655_v15  ;;  %v1031_v55 = vpop.f32.mrb[5].mxu0  ;;  %v1102_v59 = vpop.f32.mrb[5].mxu1  ;;  %v5879_v16 = vadd.f32 %v1100_v48, %v6672_v41  ;;  %v1421_v43 = vld [vmem:[#allocation7 + $0xe0] sm:$0xff]  ;;  %v6812_v48 = vpack.c.bf16 %v1424_v52, %v1420_v45  ;;  %v6844_v45 = vpack.c.bf16 %v1446_v28, %v1442_v30 }
 0x33a   :  { %v5864_v62 = vadd.f32 %v1031_v55, %v6659_v18  ;;  %v5880_v9 = vadd.f32 %v1102_v59, %v6666_v33  ;;  %v1419_v55 = vld [vmem:[#allocation7 + $0xd0] sm:$0xff]  ;;  %v6846_v52 = vpack.c.bf16 %v1448_v42, %v1444_v32 }
 0x33b   :  { %v4719_v3 = vmul.f32 -1.442695, %v5863_v51  ;;  %v6814_v51 = vpack.c.bf16 %v1421_v43, %v1417_v54  ;;  %v1423_v59 = vld [vmem:[#allocation7 + $0xf0] sm:$0xff]  ;;  %v1441_v54 = vld [vmem:[#allocation7 + $0x180] sm:$0xff] }
 0x33c   :  { %v4720_v6 = vmul.f32 -1.442695, %v5864_v62  ;;  %v4721_v12 = vmul.f32 -1.442695, %v5880_v9  ;;  %v6817_v62 = vpack.c.bf16 %v1423_v59, %v1419_v55  ;;  %v1428_v9 = vld [vmem:[#allocation7 + $0x118] sm:$0xff]  ;;  %v1445_v43 = vld [vmem:[#allocation7 + $0x1a0] sm:$0xff] }
 0x33d   :  { %6025 = vpow2.f32 %v4719_v3  ;;  %v1426_v3 = vld [vmem:[#allocation7 + $0x108] sm:$0xff]  ;;  %v1443_v55 = vld [vmem:[#allocation7 + $0x190] sm:$0xff]  ;;  %v6849_v59 = vpack.c.bf16 %v1445_v43, %v1441_v54 }
 0x33e   :  { %6027 = vpow2.f32 %v4720_v6  ;;  %v1430_v6 = vld [vmem:[#allocation7 + $0x128] sm:$0xff] }
 0x33f   :  { %6029 = vpow2.f32 %v4721_v12  ;;  %v6822_v12 = vpack.c.bf16 %v1430_v6, %v1426_v3  ;;  %v1447_v3 = vld [vmem:[#allocation7 + $0x1b0] sm:$0xff]  ;;  %v1450_v6 = vld [vmem:[#allocation7 + $0x1c8] sm:$0xff] }
 0x340   :  { %6031 = vtanh.f32 %v5879_v16  ;;  %v1432_v16 = vld [vmem:[#allocation7 + $0x138] sm:$0xff] }
 0x347   :  { %v6026_v20 = vpop.eup %6025 }
 0x348   :  { %v6028_v25 = vpop.eup %6027  ;;  %v1112_v29 = vadd.f32 1.0, %v6026_v20  ;;  %v1425_v20 = vld [vmem:[#allocation7 + $0x100] sm:$0xff] }
 0x349   :  { %v1118_v34 = vadd.f32 1.0, %v6028_v25  ;;  %v6030_v40 = vpop.eup %6029  ;;  %v1429_v25 = vld [vmem:[#allocation7 + $0x120] sm:$0xff] }
 0x34a   :  { %6033 = vrcp.f32 %v1112_v29  ;;  %v6032_v44 = vpop.eup %6031  ;;  %v1125_v61 = vadd.f32 1.0, %v6030_v40  ;;  %v6824_v29 = vpack.c.bf16 %v1432_v16, %v1428_v9  ;;  %v1427_v40 = vld [vmem:[#allocation7 + $0x110] sm:$0xff]  ;;  %v1454_v9 = vld [vmem:[#allocation7 + $0x1e8] sm:$0xff]  ;;  %v6853_v16 = vpack.c.bf16 %v1447_v3, %v1443_v55 }
 0x34b   :  { %6035 = vrcp.f32 %v1118_v34  ;;  %v6826_v34 = vpack.c.bf16 %v1429_v25, %v1425_v20  ;;  %v6855_v20 = vpack.c.bf16 %v1454_v9, %v1450_v6  ;;  %v1452_v25 = vld [vmem:[#allocation7 + $0x1d8] sm:$0xff] }
 0x34c   :  { %6037 = vrcp.f32 %v1125_v61  ;;  %v1436_v61 = vld [vmem:[#allocation7 + $0x158] sm:$0xff] }
 0x354   :  { %v6034_v47 = vpop.eup %6033 }
 0x355   :  { %v6036_v53 = vpop.eup %6035  ;;  %v1130_v57 = vmul.f32 %v6034_v47, %v6032_v44  ;;  %v1431_v44 = vld [vmem:[#allocation7 + $0x130] sm:$0xff] }
 0x356   :  { %v1129_v2 = vmul.f32 %v6036_v53, %v6719_v60  ;;  %v6038_v7 = vpop.eup %6037  ;;  %v1410_v60 = vld [vmem:[#allocation7 + $0x88] sm:$0xff]  ;;  %v6829_v47 = vpack.c.bf16 %v1431_v44, %v1427_v40  ;;  %v1456_v40 = vld [vmem:[#allocation7 + $0x1f8] sm:$0xff]  ;;  %v1449_v44 = vld [vmem:[#allocation7 + $0x1c0] sm:$0xff] }
 0x357   :  { %v6798_v22 = vpack.c.bf16 %v1414_v0, %v1410_v60  ;;  %v1434_v53 = vld [vmem:[#allocation7 + $0x148] sm:$0xff]  ;;  %v1437_v60 = vld [vmem:[#allocation7 + $0x160] sm:$0xff] }
 0x358   :  { %v6783_v5 = vadd.f32 %v1130_v57, %v1129_v2  ;;  %v1438_v57 = vld [vmem:[#allocation7 + $0x168] sm:$0xff] }
 0x359   :  { %v6833_v2 = vpack.c.bf16 %v1438_v57, %v1434_v53  ;;  %v6858_v53 = vpack.c.bf16 %v1456_v40, %v1452_v25  ;;  %v1453_v57 = vld [vmem:[#allocation7 + $0x1e0] sm:$0xff] }
 0x35a   :  { %6039 = vtanh.f32 %v6783_v5 }
 0x364   :  { %v6040_v58 = vpop.eup %6039 }
 0x365   :  { %v6786_v63 = vmul.f32 %v6040_v58, %v6038_v7  ;;  %v1440_v7 = vld [vmem:[#allocation7 + $0x178] sm:$0xff]  ;;  %v1433_v58 = vld [vmem:[#allocation7 + $0x140] sm:$0xff] }
 0x366   :  { %v6836_v0 = vpack.c.bf16 %v1440_v7, %v1436_v61  ;;  %v6838_v13 = vpack.c.bf16 %v1437_v60, %v1433_v58  ;;  %v1451_v61 = vld [vmem:[#allocation7 + $0x1d0] sm:$0xff]  ;;  %v6861_v58 = vpack.c.bf16 %v1453_v57, %v1449_v44 }
 0x367   :  { %1275 = vmatmul.mubr.f32.vlgmr.msra.gmra.mrb[6].mxu0 %v6786_v63  ;;  %1346 = vmatmul.mubr.f32.vlgmr.msra.gmra.mrb[6].mxu1 %v6786_v63  ;;  %v1455_v7 = vld [vmem:[#allocation7 + $0x1f0] sm:$0xff] }
 0x368   :  { %5030 = vmatpush1.bf16.msra.mxu0 %v6732_v39  ;;  %5062 = vmatpush1.bf16.msra.mxu1 %v6735_v27  ;;  %v6865_v60 = vpack.c.bf16 %v1455_v7, %v1451_v61 }
 0x369   :  { %5032 = vmatprep.subr.bf16.mxu0 %v6740_v38  ;;  %5064 = vmatprep.subr.bf16.mxu1 %v6742_v49 }
 0x36a   :  { %1521 = vmatprep.mubr.f32.mxu0 %v6324_v1  ;;  %1592 = vmatprep.mubr.f32.mxu1 %v6324_v1 }
 0x36c   :  { %5034 = vmatpush1.bf16.msra.mxu0 %v6744_v50  ;;  %5066 = vmatpush1.bf16.msra.mxu1 %v6747_v56 }
 0x36d   :  { %5036 = vmatprep.subr.bf16.mxu0 %v6798_v22  ;;  %5068 = vmatprep.subr.bf16.mxu1 %v6800_v35 }
 0x370   :  { %5038 = vmatpush1.bf16.msra.mxu0 %v6802_v21  ;;  %5070 = vmatpush1.bf16.msra.mxu1 %v6805_v31 }
 0x371   :  { %5040 = vmatprep.subr.bf16.mxu0 %v6810_v46  ;;  %5072 = vmatprep.subr.bf16.mxu1 %v6812_v48 }
 0x374   :  { %5042 = vmatpush1.bf16.msra.mxu0 %v6814_v51  ;;  %5074 = vmatpush1.bf16.msra.mxu1 %v6817_v62 }
 0x375   :  { %5044 = vmatprep.subr.bf16.mxu0 %v6822_v12  ;;  %5076 = vmatprep.subr.bf16.mxu1 %v6824_v29 }
 0x378   :  { %5046 = vmatpush1.bf16.msra.mxu0 %v6826_v34  ;;  %5078 = vmatpush1.bf16.msra.mxu1 %v6829_v47 }
 0x379   :  { %5048 = vmatprep.subr.bf16.mxu0 %v6833_v2  ;;  %5080 = vmatprep.subr.bf16.mxu1 %v6836_v0 }
 0x37c   :  { %5050 = vmatpush1.bf16.msra.mxu0 %v6838_v13  ;;  %5082 = vmatpush1.bf16.msra.mxu1 %v6841_v24 }
 0x37d   :  { %5052 = vmatprep.subr.bf16.mxu0 %v6844_v45  ;;  %5084 = vmatprep.subr.bf16.mxu1 %v6846_v52 }
 0x380   :  { %5054 = vmatpush1.bf16.msra.mxu0 %v6849_v59  ;;  %5086 = vmatpush1.bf16.msra.mxu1 %v6853_v16 }
 0x381   :  { %5056 = vmatprep.subr.bf16.mxu0 %v6855_v20  ;;  %5088 = vmatprep.subr.bf16.mxu1 %v6858_v53 }
 0x384   :  { %5058 = vmatpush1.bf16.msra.mxu0 %v6861_v58  ;;  %5090 = vmatpush1.bf16.msra.mxu1 %v6865_v60 }
 0x385   :  { %5092 = vmatprep.subr.bf16.mxu0 %v6728_v23  ;;  %5124 = vmatprep.subr.bf16.mxu1 %v6730_v36 }
 0x43a   :  { %v1276_v8 = vpop.f32.mrb[6].mxu0  ;;  %v1347_v26 = vpop.f32.mrb[6].mxu1 }
 0x43b   :  { %v5865_v30 = vadd.f32 %v1276_v8, %v6655_v15  ;;  %v1278_v28 = vpop.f32.mrb[7].mxu0  ;;  %v1349_v32 = vpop.f32.mrb[7].mxu1  ;;  %v5881_v6 = vadd.f32 %v1347_v26, %v6672_v41 }
 0x43c   :  { %v5866_v42 = vadd.f32 %v1278_v28, %v6659_v18  ;;  %v5882_v55 = vadd.f32 %v1349_v32, %v6666_v33 }
 0x43d   :  { %v4722_v54 = vmul.f32 -1.442695, %v5865_v30 }
 0x43e   :  { %v4723_v43 = vmul.f32 -1.442695, %v5866_v42  ;;  %v4724_v3 = vmul.f32 -1.442695, %v5882_v55 }
 0x43f   :  { %6041 = vpow2.f32 %v4722_v54 }
 0x440   :  { %6043 = vpow2.f32 %v4723_v43 }
 0x441   :  { %6045 = vpow2.f32 %v4724_v3 }
 0x442   :  { %6047 = vtanh.f32 %v5881_v6 }
 0x449   :  { %v6042_v9 = vpop.eup %6041 }
 0x44a   :  { %v6044_v25 = vpop.eup %6043  ;;  %v1359_v40 = vadd.f32 1.0, %v6042_v9 }
 0x44b   :  { %v1365_v44 = vadd.f32 1.0, %v6044_v25  ;;  %v6046_v57 = vpop.eup %6045 }
 0x44c   :  { %6049 = vrcp.f32 %v1359_v40  ;;  %v6048_v61 = vpop.eup %6047  ;;  %v1372_v28 = vadd.f32 1.0, %v6046_v57 }
 0x44d   :  { %6051 = vrcp.f32 %v1365_v44 }
 0x44e   :  { %6053 = vrcp.f32 %v1372_v28 }
 0x456   :  { %v6050_v7 = vpop.eup %6049 }
 0x457   :  { %v6052_v8 = vpop.eup %6051  ;;  %v1377_v30 = vmul.f32 %v6050_v7, %v6048_v61 }
 0x458   :  { %v1376_v42 = vmul.f32 %v6052_v8, %v6783_v5  ;;  %v6054_v26 = vpop.eup %6053 }
 0x45a   :  { %v6877_v32 = vadd.f32 %v1377_v30, %v1376_v42 }
 0x45c   :  { %6055 = vtanh.f32 %v6877_v32 }
 0x466   :  { %v6056_v54 = vpop.eup %6055 }
 0x467   :  { %v6880_v43 = vmul.f32 %v6056_v54, %v6054_v26 }
 0x469   :  { %1522 = vmatmul.mubr.f32.vlgmr.msra.gmra.mrb[8].mxu0 %v6880_v43  ;;  %1593 = vmatmul.mubr.f32.vlgmr.msra.gmra.mrb[8].mxu1 %v6880_v43 }
 0x46a   :  { %5094 = vmatpush1.bf16.msra.mxu0 %v6732_v39  ;;  %5126 = vmatpush1.bf16.msra.mxu1 %v6735_v27 }
 0x46b   :  { %5096 = vmatprep.subr.bf16.mxu0 %v6740_v38  ;;  %5128 = vmatprep.subr.bf16.mxu1 %v6742_v49 }
 0x46c   :  { %1768 = vmatprep.mubr.f32.mxu0 %v6324_v1  ;;  %1839 = vmatprep.mubr.f32.mxu1 %v6324_v1 }
 0x46e   :  { %5098 = vmatpush1.bf16.msra.mxu0 %v6744_v50  ;;  %5130 = vmatpush1.bf16.msra.mxu1 %v6747_v56 }
 0x46f   :  { %5100 = vmatprep.subr.bf16.mxu0 %v6798_v22  ;;  %5132 = vmatprep.subr.bf16.mxu1 %v6800_v35 }
 0x472   :  { %5102 = vmatpush1.bf16.msra.mxu0 %v6802_v21  ;;  %5134 = vmatpush1.bf16.msra.mxu1 %v6805_v31 }
 0x473   :  { %5104 = vmatprep.subr.bf16.mxu0 %v6810_v46  ;;  %5136 = vmatprep.subr.bf16.mxu1 %v6812_v48 }
 0x476   :  { %5106 = vmatpush1.bf16.msra.mxu0 %v6814_v51  ;;  %5138 = vmatpush1.bf16.msra.mxu1 %v6817_v62 }
 0x477   :  { %5108 = vmatprep.subr.bf16.mxu0 %v6822_v12  ;;  %5140 = vmatprep.subr.bf16.mxu1 %v6824_v29 }
 0x47a   :  { %5110 = vmatpush1.bf16.msra.mxu0 %v6826_v34  ;;  %5142 = vmatpush1.bf16.msra.mxu1 %v6829_v47 }
 0x47b   :  { %5112 = vmatprep.subr.bf16.mxu0 %v6833_v2  ;;  %5144 = vmatprep.subr.bf16.mxu1 %v6836_v0 }
 0x47e   :  { %5114 = vmatpush1.bf16.msra.mxu0 %v6838_v13  ;;  %5146 = vmatpush1.bf16.msra.mxu1 %v6841_v24 }
 0x47f   :  { %5116 = vmatprep.subr.bf16.mxu0 %v6844_v45  ;;  %5148 = vmatprep.subr.bf16.mxu1 %v6846_v52 }
 0x482   :  { %5118 = vmatpush1.bf16.msra.mxu0 %v6849_v59  ;;  %5150 = vmatpush1.bf16.msra.mxu1 %v6853_v16 }
 0x483   :  { %5120 = vmatprep.subr.bf16.mxu0 %v6855_v20  ;;  %5152 = vmatprep.subr.bf16.mxu1 %v6858_v53 }
 0x486   :  { %5122 = vmatpush1.bf16.msra.mxu0 %v6861_v58  ;;  %5154 = vmatpush1.bf16.msra.mxu1 %v6865_v60 }
 0x487   :  { %5156 = vmatprep.subr.bf16.mxu0 %v6728_v23  ;;  %5188 = vmatprep.subr.bf16.mxu1 %v6730_v36 }
 0x53c   :  { %v1523_v5 = vpop.f32.mrb[8].mxu0  ;;  %v1594_v55 = vpop.f32.mrb[8].mxu1 }
 0x53d   :  { %v5867_v3 = vadd.f32 %v1523_v5, %v6655_v15  ;;  %v1525_v6 = vpop.f32.mrb[9].mxu0  ;;  %v1596_v9 = vpop.f32.mrb[9].mxu1  ;;  %v5883_v7 = vadd.f32 %v1594_v55, %v6672_v41 }
 0x53e   :  { %v5868_v25 = vadd.f32 %v1525_v6, %v6659_v18  ;;  %v5884_v57 = vadd.f32 %v1596_v9, %v6666_v33 }
 0x53f   :  { %v4725_v40 = vmul.f32 -1.442695, %v5867_v3 }
 0x540   :  { %v4726_v44 = vmul.f32 -1.442695, %v5868_v25  ;;  %v4727_v61 = vmul.f32 -1.442695, %v5884_v57 }
 0x541   :  { %6057 = vpow2.f32 %v4725_v40 }
 0x542   :  { %6059 = vpow2.f32 %v4726_v44 }
 0x543   :  { %6061 = vpow2.f32 %v4727_v61 }
 0x544   :  { %6063 = vtanh.f32 %v5883_v7 }
 0x54b   :  { %v6058_v23 = vpop.eup %6057 }
 0x54c   :  { %v6060_v8 = vpop.eup %6059  ;;  %v1606_v36 = vadd.f32 1.0, %v6058_v23 }
 0x54d   :  { %v1612_v30 = vadd.f32 1.0, %v6060_v8  ;;  %v6062_v28 = vpop.eup %6061 }
 0x54e   :  { %6065 = vrcp.f32 %v1606_v36  ;;  %v6064_v42 = vpop.eup %6063  ;;  %v1619_v3 = vadd.f32 1.0, %v6062_v28 }
 0x54f   :  { %6067 = vrcp.f32 %v1612_v30 }
 0x550   :  { %6069 = vrcp.f32 %v1619_v3 }
 0x558   :  { %v6066_v26 = vpop.eup %6065 }
 0x559   :  { %v6068_v54 = vpop.eup %6067  ;;  %v1624_v5 = vmul.f32 %v6066_v26, %v6064_v42 }
 0x55a   :  { %v1623_v6 = vmul.f32 %v6068_v54, %v6877_v32  ;;  %v6070_v55 = vpop.eup %6069 }
 0x55c   :  { %v6923_v9 = vadd.f32 %v1624_v5, %v1623_v6 }
 0x55e   :  { %6071 = vtanh.f32 %v6923_v9 }
 0x568   :  { %v6072_v25 = vpop.eup %6071 }
 0x569   :  { %v6926_v40 = vmul.f32 %v6072_v25, %v6070_v55 }
 0x56b   :  { %1769 = vmatmul.mubr.f32.vlgmr.msra.gmra.mrb[10].mxu0 %v6926_v40  ;;  %1840 = vmatmul.mubr.f32.vlgmr.msra.gmra.mrb[10].mxu1 %v6926_v40 }
 0x56c   :  { %5158 = vmatpush1.bf16.msra.mxu0 %v6732_v39  ;;  %5190 = vmatpush1.bf16.msra.mxu1 %v6735_v27 }
 0x56d   :  { %5160 = vmatprep.subr.bf16.mxu0 %v6740_v38  ;;  %5192 = vmatprep.subr.bf16.mxu1 %v6742_v49 }
 0x56e   :  { %2015 = vmatprep.mubr.f32.mxu0 %v6324_v1  ;;  %2086 = vmatprep.mubr.f32.mxu1 %v6324_v1 }
 0x570   :  { %5162 = vmatpush1.bf16.msra.mxu0 %v6744_v50  ;;  %5194 = vmatpush1.bf16.msra.mxu1 %v6747_v56 }
 0x571   :  { %5164 = vmatprep.subr.bf16.mxu0 %v6798_v22  ;;  %5196 = vmatprep.subr.bf16.mxu1 %v6800_v35 }
 0x574   :  { %5166 = vmatpush1.bf16.msra.mxu0 %v6802_v21  ;;  %5198 = vmatpush1.bf16.msra.mxu1 %v6805_v31 }
 0x575   :  { %5168 = vmatprep.subr.bf16.mxu0 %v6810_v46  ;;  %5200 = vmatprep.subr.bf16.mxu1 %v6812_v48 }
 0x578   :  { %5170 = vmatpush1.bf16.msra.mxu0 %v6814_v51  ;;  %5202 = vmatpush1.bf16.msra.mxu1 %v6817_v62 }
 0x579   :  { %5172 = vmatprep.subr.bf16.mxu0 %v6822_v12  ;;  %5204 = vmatprep.subr.bf16.mxu1 %v6824_v29 }
 0x57c   :  { %5174 = vmatpush1.bf16.msra.mxu0 %v6826_v34  ;;  %5206 = vmatpush1.bf16.msra.mxu1 %v6829_v47 }
 0x57d   :  { %5176 = vmatprep.subr.bf16.mxu0 %v6833_v2  ;;  %5208 = vmatprep.subr.bf16.mxu1 %v6836_v0 }
 0x580   :  { %5178 = vmatpush1.bf16.msra.mxu0 %v6838_v13  ;;  %5210 = vmatpush1.bf16.msra.mxu1 %v6841_v24 }
 0x581   :  { %5180 = vmatprep.subr.bf16.mxu0 %v6844_v45  ;;  %5212 = vmatprep.subr.bf16.mxu1 %v6846_v52 }
 0x584   :  { %5182 = vmatpush1.bf16.msra.mxu0 %v6849_v59  ;;  %5214 = vmatpush1.bf16.msra.mxu1 %v6853_v16 }
 0x585   :  { %5184 = vmatprep.subr.bf16.mxu0 %v6855_v20  ;;  %5216 = vmatprep.subr.bf16.mxu1 %v6858_v53 }
 0x588   :  { %5186 = vmatpush1.bf16.msra.mxu0 %v6861_v58  ;;  %5218 = vmatpush1.bf16.msra.mxu1 %v6865_v60 }
 0x63e   :  { %v1770_v39 = vpop.f32.mrb[10].mxu0  ;;  %v1841_v27 = vpop.f32.mrb[10].mxu1 }
 0x63f   :  { %v5869_v38 = vadd.f32 %v1770_v39, %v6655_v15  ;;  %v1772_v49 = vpop.f32.mrb[11].mxu0  ;;  %v1843_v50 = vpop.f32.mrb[11].mxu1  ;;  %v5885_v7 = vadd.f32 %v1841_v27, %v6672_v41 }
 0x640   :  { %v5870_v56 = vadd.f32 %v1772_v49, %v6659_v18  ;;  %v5886_v57 = vadd.f32 %v1843_v50, %v6666_v33  ;;  %v2139_v49 = vld [vmem:[#allocation7 + $0x28] sm:$0xff] }
 0x641   :  { %v4728_v32 = vmul.f32 -1.442695, %v5869_v38  ;;  %v2135_v38 = vld [vmem:[#allocation7 + $0x8] sm:$0xff] }
 0x642   :  { %v4729_v44 = vmul.f32 -1.442695, %v5870_v56  ;;  %v4730_v61 = vmul.f32 -1.442695, %v5886_v57  ;;  %v5219_v50 = vpack.c.bf16 %v2139_v49, %v2135_v38  ;;  %v2141_v56 = vld [vmem:[#allocation7 + $0x38] sm:$0xff] }
 0x643   :  { %6073 = vpow2.f32 %v4728_v32  ;;  %v2134_v32 = vld [vmem:[#allocation7] sm:$0xff] }
 0x644   :  { %6075 = vpow2.f32 %v4729_v44  ;;  %v2138_v44 = vld [vmem:[#allocation7 + $0x20] sm:$0xff]  ;;  %5220 = vmatprep.subr.bf16.mxu0 %v5219_v50 }
 0x645   :  { %6077 = vpow2.f32 %v4730_v61  ;;  %v5221_v61 = vpack.c.bf16 %v2138_v44, %v2134_v32  ;;  %v2381_v44 = vld [vmem:[#allocation9] sm:$0xff] }
 0x646   :  { %6079 = vtanh.f32 %v5885_v7  ;;  %v2136_v7 = vld [vmem:[#allocation7 + $0x10] sm:$0xff] }
 0x64d   :  { %v6074_v23 = vpop.eup %6073 }
 0x64e   :  { %v6076_v8 = vpop.eup %6075  ;;  %v1853_v36 = vadd.f32 1.0, %v6074_v23  ;;  %v2140_v23 = vld [vmem:[#allocation7 + $0x30] sm:$0xff] }
 0x64f   :  { %v1859_v30 = vadd.f32 1.0, %v6076_v8  ;;  %v6078_v28 = vpop.eup %6077  ;;  %v5253_v8 = vpack.c.bf16 %v2140_v23, %v2136_v7  ;;  %v2387_v7 = vld [vmem:[#allocation9 + $0x30] sm:$0xff]  ;;  %v2390_v23 = vld [vmem:[#allocation9 + $0x48] sm:$0xff] }
 0x650   :  { %6081 = vrcp.f32 %v1853_v36  ;;  %v6080_v42 = vpop.eup %6079  ;;  %v1866_v3 = vadd.f32 1.0, %v6078_v28  ;;  %v2143_v36 = vld [vmem:[#allocation7 + $0x48] sm:$0xff]  ;;  %v2145_v28 = vld [vmem:[#allocation7 + $0x58] sm:$0xff] }
 0x651   :  { %6083 = vrcp.f32 %v1859_v30  ;;  %v2147_v30 = vld [vmem:[#allocation7 + $0x68] sm:$0xff] }
 0x652   :  { %6085 = vrcp.f32 %v1866_v3 }
 0x65a   :  { %v6082_v26 = vpop.eup %6081 }
 0x65b   :  { %v6084_v54 = vpop.eup %6083  ;;  %v1871_v5 = vmul.f32 %v6082_v26, %v6080_v42  ;;  %v5223_v42 = vpack.c.bf16 %v2147_v30, %v2143_v36  ;;  %v2149_v26 = vld [vmem:[#allocation7 + $0x78] sm:$0xff] }
 0x65c   :  { %v1870_v6 = vmul.f32 %v6084_v54, %v6923_v9  ;;  %v6086_v25 = vpop.eup %6085  ;;  %v2137_v9 = vld [vmem:[#allocation7 + $0x18] sm:$0xff]  ;;  %v2142_v54 = vld [vmem:[#allocation7 + $0x40] sm:$0xff]  ;;  %v5255_v3 = vpack.c.bf16 %v2149_v26, %v2145_v28 }
 0x65d   :  { %v5251_v57 = vpack.c.bf16 %v2141_v56, %v2137_v9  ;;  %v2392_v36 = vld [vmem:[#allocation9 + $0x58] sm:$0xff] }
 0x65e   :  { %v6967_v55 = vadd.f32 %v1871_v5, %v1870_v6  ;;  %v2146_v5 = vld [vmem:[#allocation7 + $0x60] sm:$0xff]  ;;  %v2396_v30 = vld [vmem:[#allocation9 + $0x78] sm:$0xff] }
 0x65f   :  { %5252 = vmatprep.subr.bf16.mxu1 %v5251_v57  ;;  %v5225_v6 = vpack.c.bf16 %v2146_v5, %v2142_v54  ;;  %v2385_v57 = vld [vmem:[#allocation9 + $0x20] sm:$0xff] }
 0x660   :  { %6087 = vtanh.f32 %v6967_v55  ;;  %v5285_v26 = vpack.c.bf16 %v2385_v57, %v2381_v44  ;;  %v2389_v5 = vld [vmem:[#allocation9 + $0x40] sm:$0xff] }
 0x66a   :  { %v6088_v39 = vpop.eup %6087 }
 0x66b   :  { %v6970_v27 = vmul.f32 %v6088_v39, %v6086_v25  ;;  %v2144_v25 = vld [vmem:[#allocation7 + $0x50] sm:$0xff] }
 0x66c   :  { %v2148_v39 = vld [vmem:[#allocation7 + $0x70] sm:$0xff] }
 0x66d   :  { %2016 = vmatmul.mubr.f32.vlgmr.msra.gmra.mrb[12].mxu0 %v6970_v27  ;;  %2087 = vmatmul.mubr.f32.vlgmr.msra.gmra.mrb[12].mxu1 %v6970_v27  ;;  %v5257_v38 = vpack.c.bf16 %v2148_v39, %v2144_v25  ;;  %v5319_v25 = vpack.c.bf16 %v2396_v30, %v2392_v36  ;;  %v2391_v39 = vld [vmem:[#allocation9 + $0x50] sm:$0xff] }
 0x66e   :  { %2262 = vmatprep.mubr.f32.mxu0 %v6324_v1  ;;  %2333 = vmatprep.mubr.f32.mxu1 %v6324_v1  ;;  %v2415_v36 = vld [vmem:[#allocation9 + $0x110] sm:$0xff] }
 0x66f   :  { %5222 = vmatpush1.bf16.msra.mxu0 %v5221_v61  ;;  %5254 = vmatpush1.bf16.msra.mxu1 %v5253_v8  ;;  %v2383_v61 = vld [vmem:[#allocation9 + $0x10] sm:$0xff]  ;;  %v2394_v8 = vld [vmem:[#allocation9 + $0x68] sm:$0xff] }
 0x670   :  { %5224 = vmatprep.subr.bf16.mxu0 %v5223_v42  ;;  %5256 = vmatprep.subr.bf16.mxu1 %v5255_v3  ;;  %v5317_v54 = vpack.c.bf16 %v2387_v7, %v2383_v61  ;;  %v2393_v3 = vld [vmem:[#allocation9 + $0x60] sm:$0xff]  ;;  %v2419_v30 = vld [vmem:[#allocation9 + $0x130] sm:$0xff] }
 0x671   :  { %v2413_v61 = vld [vmem:[#allocation9 + $0x100] sm:$0xff] }
 0x672   :  { %v2417_v7 = vld [vmem:[#allocation9 + $0x120] sm:$0xff] }
 0x673   :  { %5226 = vmatpush1.bf16.msra.mxu0 %v5225_v6  ;;  %5258 = vmatpush1.bf16.msra.mxu1 %v5257_v38  ;;  %v5287_v6 = vpack.c.bf16 %v2394_v8, %v2390_v23  ;;  %v2395_v38 = vld [vmem:[#allocation9 + $0x70] sm:$0xff] }
 0x674   :  { %5228 = vmatprep.subr.bf16.mxu0 %v6798_v22  ;;  %5260 = vmatprep.subr.bf16.mxu1 %v6800_v35  ;;  %v2382_v22 = vld [vmem:[#allocation9 + $0x8] sm:$0xff] }
 0x675   :  { %v2386_v35 = vld [vmem:[#allocation9 + $0x28] sm:$0xff] }
 0x677   :  { %5230 = vmatpush1.bf16.msra.mxu0 %v6802_v21  ;;  %5262 = vmatpush1.bf16.msra.mxu1 %v6805_v31  ;;  %v2384_v21 = vld [vmem:[#allocation9 + $0x18] sm:$0xff] }
 0x678   :  { %5232 = vmatprep.subr.bf16.mxu0 %v6810_v46  ;;  %5264 = vmatprep.subr.bf16.mxu1 %v6812_v48  ;;  %v2388_v31 = vld [vmem:[#allocation9 + $0x38] sm:$0xff]  ;;  %v5283_v46 = vpack.c.bf16 %v2386_v35, %v2382_v22  ;;  %v2398_v22 = vld [vmem:[#allocation9 + $0x88] sm:$0xff] }
 0x679   :  { %v5315_v48 = vpack.c.bf16 %v2388_v31, %v2384_v21  ;;  %v2402_v35 = vld [vmem:[#allocation9 + $0xa8] sm:$0xff]  ;;  %v2400_v21 = vld [vmem:[#allocation9 + $0x98] sm:$0xff] }
 0x67a   :  { %v2404_v31 = vld [vmem:[#allocation9 + $0xb8] sm:$0xff] }
 0x67b   :  { %5234 = vmatpush1.bf16.msra.mxu0 %v6814_v51  ;;  %5266 = vmatpush1.bf16.msra.mxu1 %v6817_v62 }
 0x67c   :  { %5236 = vmatprep.subr.bf16.mxu0 %v6822_v12  ;;  %5268 = vmatprep.subr.bf16.mxu1 %v6824_v29 }
 0x67f   :  { %5238 = vmatpush1.bf16.msra.mxu0 %v6826_v34  ;;  %5270 = vmatpush1.bf16.msra.mxu1 %v6829_v47 }
 0x680   :  { %5240 = vmatprep.subr.bf16.mxu0 %v6833_v2  ;;  %5272 = vmatprep.subr.bf16.mxu1 %v6836_v0 }
 0x683   :  { %5242 = vmatpush1.bf16.msra.mxu0 %v6838_v13  ;;  %5274 = vmatpush1.bf16.msra.mxu1 %v6841_v24 }
 0x684   :  { %5244 = vmatprep.subr.bf16.mxu0 %v6844_v45  ;;  %5276 = vmatprep.subr.bf16.mxu1 %v6846_v52 }
 0x687   :  { %5246 = vmatpush1.bf16.msra.mxu0 %v6849_v59  ;;  %5278 = vmatpush1.bf16.msra.mxu1 %v6853_v16 }
 0x688   :  { %5248 = vmatprep.subr.bf16.mxu0 %v6855_v20  ;;  %5280 = vmatprep.subr.bf16.mxu1 %v6858_v53 }
 0x68b   :  { %5250 = vmatpush1.bf16.msra.mxu0 %v6861_v58  ;;  %5282 = vmatpush1.bf16.msra.mxu1 %v6865_v60 }
 0x68c   :  { %5284 = vmatprep.subr.bf16.mxu0 %v5283_v46  ;;  %5316 = vmatprep.subr.bf16.mxu1 %v5315_v48  ;;  %v5289_v46 = vpack.c.bf16 %v2393_v3, %v2389_v5  ;;  %v5321_v48 = vpack.c.bf16 %v2395_v38, %v2391_v39  ;;  %v5301_v5 = vpack.c.bf16 %v2417_v7, %v2413_v61  ;;  %v2734_v7 = vld [vmem:[#allocation11 + $0x10] sm:$0xff] }
 0x68d   :  { %v5333_v3 = vpack.c.bf16 %v2419_v30, %v2415_v36  ;;  %v2745_v36 = vld [vmem:[#allocation11 + $0x68] sm:$0xff]  ;;  %v2743_v30 = vld [vmem:[#allocation11 + $0x58] sm:$0xff] }
 0x740   :  { %v2017_v51 = vpop.f32.mrb[12].mxu0  ;;  %v2088_v62 = vpop.f32.mrb[12].mxu1 }
 0x741   :  { %v5871_v12 = vadd.f32 %v2017_v51, %v6655_v15  ;;  %v2019_v29 = vpop.f32.mrb[13].mxu0  ;;  %v2090_v34 = vpop.f32.mrb[13].mxu1  ;;  %v5887_v45 = vadd.f32 %v2088_v62, %v6672_v41  ;;  %v2397_v51 = vld [vmem:[#allocation9 + $0x80] sm:$0xff] }
 0x742   :  { %v5872_v47 = vadd.f32 %v2019_v29, %v6659_v18  ;;  %v5888_v13 = vadd.f32 %v2090_v34, %v6666_v33  ;;  %v2401_v62 = vld [vmem:[#allocation9 + $0xa0] sm:$0xff]  ;;  %v5323_v29 = vpack.c.bf16 %v2404_v31, %v2400_v21  ;;  %v2399_v34 = vld [vmem:[#allocation9 + $0x90] sm:$0xff]  ;;  %v2430_v21 = vld [vmem:[#allocation9 + $0x188] sm:$0xff] }
 0x743   :  { %v4731_v2 = vmul.f32 -1.442695, %v5871_v12  ;;  %v5291_v12 = vpack.c.bf16 %v2402_v35, %v2398_v22  ;;  %v2423_v22 = vld [vmem:[#allocation9 + $0x150] sm:$0xff]  ;;  %v2434_v31 = vld [vmem:[#allocation9 + $0x1a8] sm:$0xff] }
 0x744   :  { %v4732_v0 = vmul.f32 -1.442695, %v5872_v47  ;;  %v4733_v24 = vmul.f32 -1.442695, %v5888_v13  ;;  %v2403_v47 = vld [vmem:[#allocation9 + $0xb0] sm:$0xff]  ;;  %v2408_v13 = vld [vmem:[#allocation9 + $0xd8] sm:$0xff] }
 0x745   :  { %6089 = vpow2.f32 %v4731_v2  ;;  %v2406_v2 = vld [vmem:[#allocation9 + $0xc8] sm:$0xff]  ;;  %v2427_v35 = vld [vmem:[#allocation9 + $0x170] sm:$0xff] }
 0x746   :  { %6091 = vpow2.f32 %v4732_v0  ;;  %v2410_v0 = vld [vmem:[#allocation9 + $0xe8] sm:$0xff] }
 0x747   :  { %6093 = vpow2.f32 %v4733_v24  ;;  %v2412_v24 = vld [vmem:[#allocation9 + $0xf8] sm:$0xff] }
 0x748   :  { %6095 = vtanh.f32 %v5887_v45  ;;  %v5293_v45 = vpack.c.bf16 %v2401_v62, %v2397_v51  ;;  %v5337_v62 = vpack.c.bf16 %v2427_v35, %v2423_v22  ;;  %v2753_v22 = vld [vmem:[#allocation11 + $0xa8] sm:$0xff]  ;;  %v2751_v35 = vld [vmem:[#allocation11 + $0x98] sm:$0xff] }
 0x74f   :  { %v6090_v52 = vpop.eup %6089 }
 0x750   :  { %v6092_v59 = vpop.eup %6091  ;;  %v2100_v16 = vadd.f32 1.0, %v6090_v52  ;;  %v5325_v52 = vpack.c.bf16 %v2403_v47, %v2399_v34  ;;  %v5307_v34 = vpack.c.bf16 %v2434_v31, %v2430_v21  ;;  %v2755_v31 = vld [vmem:[#allocation11 + $0xb8] sm:$0xff] }
 0x751   :  { %v2106_v20 = vadd.f32 1.0, %v6092_v59  ;;  %v6094_v53 = vpop.eup %6093  ;;  %v2405_v59 = vld [vmem:[#allocation9 + $0xc0] sm:$0xff] }
 0x752   :  { %6097 = vrcp.f32 %v2100_v16  ;;  %v6096_v58 = vpop.eup %6095  ;;  %v2113_v50 = vadd.f32 1.0, %v6094_v53  ;;  %v2409_v16 = vld [vmem:[#allocation9 + $0xe0] sm:$0xff]  ;;  %v5327_v53 = vpack.c.bf16 %v2412_v24, %v2408_v13  ;;  %v2438_v13 = vld [vmem:[#allocation9 + $0x1c8] sm:$0xff] }
 0x753   :  { %6099 = vrcp.f32 %v2106_v20  ;;  %v5295_v20 = vpack.c.bf16 %v2410_v0, %v2406_v2  ;;  %v5297_v44 = vpack.c.bf16 %v2409_v16, %v2405_v59  ;;  %v2431_v2 = vld [vmem:[#allocation9 + $0x190] sm:$0xff]  ;;  %v2442_v24 = vld [vmem:[#allocation9 + $0x1e8] sm:$0xff] }
 0x754   :  { %6101 = vrcp.f32 %v2113_v50  ;;  %v2416_v50 = vld [vmem:[#allocation9 + $0x118] sm:$0xff]  ;;  %v2435_v0 = vld [vmem:[#allocation9 + $0x1b0] sm:$0xff] }
 0x755   :  { %v5341_v16 = vpack.c.bf16 %v2435_v0, %v2431_v2  ;;  %v2761_v2 = vld [vmem:[#allocation11 + $0xe8] sm:$0xff]  ;;  %v2759_v0 = vld [vmem:[#allocation11 + $0xd8] sm:$0xff] }
 0x75c   :  { %v6098_v60 = vpop.eup %6097 }
 0x75d   :  { %v6100_v49 = vpop.eup %6099  ;;  %v2118_v9 = vmul.f32 %v6098_v60, %v6096_v58  ;;  %v2407_v58 = vld [vmem:[#allocation9 + $0xd0] sm:$0xff] }
 0x75e   :  { %v2117_v56 = vmul.f32 %v6100_v49, %v6967_v55  ;;  %v6102_v28 = vpop.eup %6101  ;;  %v2411_v60 = vld [vmem:[#allocation9 + $0xf0] sm:$0xff]  ;;  %v2414_v49 = vld [vmem:[#allocation9 + $0x108] sm:$0xff] }
 0x75f   :  { %v5329_v57 = vpack.c.bf16 %v2411_v60, %v2407_v58  ;;  %v2441_v60 = vld [vmem:[#allocation9 + $0x1e0] sm:$0xff] }
 0x760   :  { %v7005_v32 = vadd.f32 %v2118_v9, %v2117_v56  ;;  %v2418_v9 = vld [vmem:[#allocation9 + $0x128] sm:$0xff]  ;;  %v2420_v56 = vld [vmem:[#allocation9 + $0x138] sm:$0xff] }
 0x761   :  { %v5299_v23 = vpack.c.bf16 %v2418_v9, %v2414_v49  ;;  %v5331_v8 = vpack.c.bf16 %v2420_v56, %v2416_v50  ;;  %v2439_v49 = vld [vmem:[#allocation9 + $0x1d0] sm:$0xff] }
 0x762   :  { %6103 = vtanh.f32 %v7005_v32  ;;  %v2443_v9 = vld [vmem:[#allocation9 + $0x1f0] sm:$0xff] }
 0x763   :  { %v5345_v56 = vpack.c.bf16 %v2443_v9, %v2439_v49  ;;  %v2769_v49 = vld [vmem:[#allocation11 + $0x128] sm:$0xff]  ;;  %v2767_v9 = vld [vmem:[#allocation11 + $0x118] sm:$0xff] }
 0x76c   :  { %v6104_v42 = vpop.eup %6103 }
 0x76d   :  { %v7008_v55 = vmul.f32 %v6104_v42, %v6102_v28  ;;  %v2422_v28 = vld [vmem:[#allocation9 + $0x148] sm:$0xff] }
 0x76e   :  { %v2426_v42 = vld [vmem:[#allocation9 + $0x168] sm:$0xff] }
 0x76f   :  { %2263 = vmatmul.mubr.f32.vlgmr.msra.gmra.mrb[14].mxu0 %v7008_v55  ;;  %2334 = vmatmul.mubr.f32.vlgmr.msra.gmra.mrb[14].mxu1 %v7008_v55  ;;  %v5303_v39 = vpack.c.bf16 %v2426_v42, %v2422_v28  ;;  %v2747_v42 = vld [vmem:[#allocation11 + $0x78] sm:$0xff] }
 0x770   :  { %5286 = vmatpush1.bf16.msra.mxu0 %v5285_v26  ;;  %5318 = vmatpush1.bf16.msra.mxu1 %v5317_v54  ;;  %v2424_v26 = vld [vmem:[#allocation9 + $0x158] sm:$0xff] }
 0x771   :  { %5288 = vmatprep.subr.bf16.mxu0 %v5287_v6  ;;  %5320 = vmatprep.subr.bf16.mxu1 %v5319_v25  ;;  %v2428_v54 = vld [vmem:[#allocation9 + $0x178] sm:$0xff]  ;;  %v2421_v6 = vld [vmem:[#allocation9 + $0x140] sm:$0xff] }
 0x772   :  { %2531 = vmatprep.mubr.f32.mxu0 %v6324_v1  ;;  %2644 = vmatprep.mubr.f32.mxu1 %v6324_v1  ;;  %v2425_v25 = vld [vmem:[#allocation9 + $0x160] sm:$0xff]  ;;  %v5335_v38 = vpack.c.bf16 %v2428_v54, %v2424_v26 }
 0x773   :  { %v5305_v51 = vpack.c.bf16 %v2425_v25, %v2421_v6  ;;  %v2740_v26 = vld [vmem:[#allocation11 + $0x40] sm:$0xff]  ;;  %v2742_v6 = vld [vmem:[#allocation11 + $0x50] sm:$0xff] }
 0x774   :  { %5290 = vmatpush1.bf16.msra.mxu0 %v5289_v46  ;;  %5322 = vmatpush1.bf16.msra.mxu1 %v5321_v48  ;;  %v2432_v46 = vld [vmem:[#allocation9 + $0x198] sm:$0xff]  ;;  %v2744_v54 = vld [vmem:[#allocation11 + $0x60] sm:$0xff]  ;;  %v2746_v25 = vld [vmem:[#allocation11 + $0x70] sm:$0xff] }
 0x775   :  { %5292 = vmatprep.subr.bf16.mxu0 %v5291_v12  ;;  %5324 = vmatprep.subr.bf16.mxu1 %v5323_v29  ;;  %v2436_v48 = vld [vmem:[#allocation9 + $0x1b8] sm:$0xff]  ;;  %v2429_v12 = vld [vmem:[#allocation9 + $0x180] sm:$0xff] }
 0x776   :  { %v2433_v29 = vld [vmem:[#allocation9 + $0x1a0] sm:$0xff]  ;;  %v5339_v47 = vpack.c.bf16 %v2436_v48, %v2432_v46 }
 0x777   :  { %v5309_v59 = vpack.c.bf16 %v2433_v29, %v2429_v12  ;;  %v2748_v46 = vld [vmem:[#allocation11 + $0x80] sm:$0xff]  ;;  %v2750_v12 = vld [vmem:[#allocation11 + $0x90] sm:$0xff] }
 0x778   :  { %5294 = vmatpush1.bf16.msra.mxu0 %v5293_v45  ;;  %5326 = vmatpush1.bf16.msra.mxu1 %v5325_v52  ;;  %v2440_v45 = vld [vmem:[#allocation9 + $0x1d8] sm:$0xff]  ;;  %v2752_v48 = vld [vmem:[#allocation11 + $0xa0] sm:$0xff]  ;;  %v2754_v29 = vld [vmem:[#allocation11 + $0xb0] sm:$0xff] }
 0x779   :  { %5296 = vmatprep.subr.bf16.mxu0 %v5295_v20  ;;  %5328 = vmatprep.subr.bf16.mxu1 %v5327_v53  ;;  %v2444_v52 = vld [vmem:[#allocation9 + $0x1f8] sm:$0xff]  ;;  %v2437_v20 = vld [vmem:[#allocation9 + $0x1c0] sm:$0xff]  ;;  %v5311_v53 = vpack.c.bf16 %v2442_v24, %v2438_v13 }
 0x77a   :  { %v5343_v58 = vpack.c.bf16 %v2444_v52, %v2440_v45  ;;  %v5313_v50 = vpack.c.bf16 %v2441_v60, %v2437_v20  ;;  %v2763_v24 = vld [vmem:[#allocation11 + $0xf8] sm:$0xff]  ;;  %v2756_v45 = vld [vmem:[#allocation11 + $0xc0] sm:$0xff]  ;;  %v2758_v20 = vld [vmem:[#allocation11 + $0xd0] sm:$0xff] }
 0x77b   :  { %v2760_v52 = vld [vmem:[#allocation11 + $0xe0] sm:$0xff] }
 0x77c   :  { %5298 = vmatpush1.bf16.msra.mxu0 %v5297_v44  ;;  %5330 = vmatpush1.bf16.msra.mxu1 %v5329_v57  ;;  %v2732_v44 = vld [vmem:[#allocation11] sm:$0xff] }
 0x77d   :  { %5300 = vmatprep.subr.bf16.mxu0 %v5299_v23  ;;  %5332 = vmatprep.subr.bf16.mxu1 %v5331_v8  ;;  %v2738_v23 = vld [vmem:[#allocation11 + $0x30] sm:$0xff]  ;;  %v2741_v8 = vld [vmem:[#allocation11 + $0x48] sm:$0xff] }
 0x77e   :  { %v7054_v28 = vpack.c.bf16 %v2745_v36, %v2741_v8 }
 0x780   :  { %5302 = vmatpush1.bf16.msra.mxu0 %v5301_v5  ;;  %5334 = vmatpush1.bf16.msra.mxu1 %v5333_v3  ;;  %v7056_v5 = vpack.c.bf16 %v2747_v42, %v2743_v30  ;;  %v7058_v3 = vpack.c.bf16 %v2744_v54, %v2740_v26  ;;  %v2775_v30 = vld [vmem:[#allocation11 + $0x158] sm:$0xff]  ;;  %v2772_v26 = vld [vmem:[#allocation11 + $0x140] sm:$0xff] }
 0x781   :  { %5304 = vmatprep.subr.bf16.mxu0 %v5303_v39  ;;  %5336 = vmatprep.subr.bf16.mxu1 %v5335_v38  ;;  %v7061_v39 = vpack.c.bf16 %v2746_v25, %v2742_v6  ;;  %v2749_v38 = vld [vmem:[#allocation11 + $0x88] sm:$0xff]  ;;  %v2779_v42 = vld [vmem:[#allocation11 + $0x178] sm:$0xff]  ;;  %v2776_v6 = vld [vmem:[#allocation11 + $0x160] sm:$0xff] }
 0x782   :  { %v7066_v21 = vpack.c.bf16 %v2753_v22, %v2749_v38  ;;  %v7102_v54 = vpack.c.bf16 %v2779_v42, %v2775_v30  ;;  %v2774_v25 = vld [vmem:[#allocation11 + $0x150] sm:$0xff]  ;;  %v7105_v22 = vpack.c.bf16 %v2776_v6, %v2772_v26 }
 0x783   :  { %v2778_v38 = vld [vmem:[#allocation11 + $0x170] sm:$0xff] }
 0x784   :  { %5306 = vmatpush1.bf16.msra.mxu0 %v5305_v51  ;;  %5338 = vmatpush1.bf16.msra.mxu1 %v5337_v62  ;;  %v7068_v51 = vpack.c.bf16 %v2755_v31, %v2751_v35  ;;  %v7070_v62 = vpack.c.bf16 %v2752_v48, %v2748_v46  ;;  %v2781_v35 = vld [vmem:[#allocation11 + $0x188] sm:$0xff]  ;;  %v2783_v46 = vld [vmem:[#allocation11 + $0x198] sm:$0xff]  ;;  %v7109_v48 = vpack.c.bf16 %v2778_v38, %v2774_v25 }
 0x785   :  { %5308 = vmatprep.subr.bf16.mxu0 %v5307_v34  ;;  %5340 = vmatprep.subr.bf16.mxu1 %v5339_v47  ;;  %v7073_v34 = vpack.c.bf16 %v2754_v29, %v2750_v12  ;;  %v2757_v47 = vld [vmem:[#allocation11 + $0xc8] sm:$0xff]  ;;  %v2787_v29 = vld [vmem:[#allocation11 + $0x1b8] sm:$0xff] }
 0x786   :  { %v7078_v13 = vpack.c.bf16 %v2761_v2, %v2757_v47  ;;  %v2785_v31 = vld [vmem:[#allocation11 + $0x1a8] sm:$0xff]  ;;  %v2780_v47 = vld [vmem:[#allocation11 + $0x180] sm:$0xff] }
 0x787   :  { %v7111_v12 = vpack.c.bf16 %v2785_v31, %v2781_v35  ;;  %v2784_v2 = vld [vmem:[#allocation11 + $0x1a0] sm:$0xff] }
 0x788   :  { %5310 = vmatpush1.bf16.msra.mxu0 %v5309_v59  ;;  %5342 = vmatpush1.bf16.msra.mxu1 %v5341_v16  ;;  %v7080_v59 = vpack.c.bf16 %v2763_v24, %v2759_v0  ;;  %v7082_v16 = vpack.c.bf16 %v2760_v52, %v2756_v45  ;;  %v7114_v0 = vpack.c.bf16 %v2787_v29, %v2783_v46  ;;  %v2782_v24 = vld [vmem:[#allocation11 + $0x190] sm:$0xff] }
 0x789   :  { %5312 = vmatprep.subr.bf16.mxu0 %v5311_v53  ;;  %5344 = vmatprep.subr.bf16.mxu1 %v5343_v58  ;;  %v2762_v53 = vld [vmem:[#allocation11 + $0xf0] sm:$0xff]  ;;  %v2765_v58 = vld [vmem:[#allocation11 + $0x108] sm:$0xff]  ;;  %v7117_v52 = vpack.c.bf16 %v2784_v2, %v2780_v47 }
 0x78a   :  { %v7085_v60 = vpack.c.bf16 %v2762_v53, %v2758_v20  ;;  %v2786_v45 = vld [vmem:[#allocation11 + $0x1b0] sm:$0xff]  ;;  %v2789_v53 = vld [vmem:[#allocation11 + $0x1c8] sm:$0xff] }
 0x78b   :  { %v7121_v20 = vpack.c.bf16 %v2786_v45, %v2782_v24 }
 0x78c   :  { %5314 = vmatpush1.bf16.msra.mxu0 %v5313_v50  ;;  %5346 = vmatpush1.bf16.msra.mxu1 %v5345_v56  ;;  %v2771_v50 = vld [vmem:[#allocation11 + $0x138] sm:$0xff]  ;;  %v7089_v56 = vpack.c.bf16 %v2769_v49, %v2765_v58  ;;  %v2793_v58 = vld [vmem:[#allocation11 + $0x1e8] sm:$0xff] }
 0x78d   :  { %v2791_v49 = vld [vmem:[#allocation11 + $0x1d8] sm:$0xff] }
 0x78f   :  { %2532 = vmatmul.mubr.f32.vlgmr.msra.gmra.mrb[16].mxu0 %v6678_v19  ;;  %2645 = vmatmul.mubr.f32.vlgmr.msra.gmra.mrb[16].mxu1 %v6678_v19  ;;  %v2733_v19 = vld [vmem:[#allocation11 + $0x8] sm:$0xff] }
 0x790   :  { %2537 = vmatprep.mubr.f32.mxu0 %v6324_v1  ;;  %2650 = vmatprep.mubr.f32.mxu1 %v6324_v1 }
 0x793   :  { %2538 = vmatmul.mubr.f32.gmra.mrb[18].mxu0 %v6722_v4  ;;  %2651 = vmatmul.mubr.f32.gmra.mrb[18].mxu1 %v6722_v4  ;;  %v2737_v4 = vld [vmem:[#allocation11 + $0x28] sm:$0xff] }
 0x794   :  { %2543 = vmatprep.mubr.f32.mxu0 %v6324_v1  ;;  %2656 = vmatprep.mubr.f32.mxu1 %v6324_v1 }
 0x797   :  { %2544 = vmatmul.mubr.f32.gmra.mrb[20].mxu0 %v6786_v63  ;;  %2657 = vmatmul.mubr.f32.gmra.mrb[20].mxu1 %v6786_v63  ;;  %v2735_v63 = vld [vmem:[#allocation11 + $0x18] sm:$0xff] }
 0x798   :  { %2549 = vmatprep.mubr.f32.mxu0 %v6324_v1  ;;  %2662 = vmatprep.mubr.f32.mxu1 %v6324_v1 }
 0x79b   :  { %2550 = vmatmul.mubr.f32.gmra.mrb[22].mxu0 %v6880_v43  ;;  %2663 = vmatmul.mubr.f32.gmra.mrb[22].mxu1 %v6880_v43  ;;  %v7042_v43 = vpack.c.bf16 %v2737_v4, %v2733_v19  ;;  %v7091_v19 = vpack.c.bf16 %v2771_v50, %v2767_v9  ;;  %v2764_v4 = vld [vmem:[#allocation11 + $0x100] sm:$0xff]  ;;  %v7126_v9 = vpack.c.bf16 %v2793_v58, %v2789_v53  ;;  %v2795_v50 = vld [vmem:[#allocation11 + $0x1f8] sm:$0xff] }
 0x79c   :  { %2555 = vmatprep.mubr.f32.mxu0 %v6324_v1  ;;  %2668 = vmatprep.mubr.f32.mxu1 %v6324_v1 }
 0x79d   :  { %5348 = vmatprep.subr.bf16.mxu0 %v7042_v43 }
 0x79f   :  { %2556 = vmatmul.mubr.f32.gmra.mrb[24].mxu0 %v6926_v40  ;;  %2669 = vmatmul.mubr.f32.gmra.mrb[24].mxu1 %v6926_v40  ;;  %v2739_v40 = vld [vmem:[#allocation11 + $0x38] sm:$0xff] }
 0x7a0   :  { %2561 = vmatprep.mubr.f32.mxu0 %v6324_v1  ;;  %2674 = vmatprep.mubr.f32.mxu1 %v6324_v1  ;;  %v7044_v57 = vpack.c.bf16 %v2739_v40, %v2735_v63  ;;  %v2768_v63 = vld [vmem:[#allocation11 + $0x120] sm:$0xff]  ;;  %v2766_v40 = vld [vmem:[#allocation11 + $0x110] sm:$0xff] }
 0x7a2   :  { %5380 = vmatprep.subr.bf16.mxu1 %v7044_v57 }
 0x7a3   :  { %2562 = vmatmul.mubr.f32.gmra.mrb[26].mxu0 %v6970_v27  ;;  %2675 = vmatmul.mubr.f32.gmra.mrb[26].mxu1 %v6970_v27  ;;  %v2736_v27 = vld [vmem:[#allocation11 + $0x20] sm:$0xff] }
 0x7a4   :  { %2567 = vmatprep.mubr.f32.mxu0 %v6324_v1  ;;  %2680 = vmatprep.mubr.f32.mxu1 %v6324_v1  ;;  %v7046_v61 = vpack.c.bf16 %v2736_v27, %v2732_v44  ;;  %v7094_v44 = vpack.c.bf16 %v2768_v63, %v2764_v4  ;;  %v2770_v27 = vld [vmem:[#allocation11 + $0x130] sm:$0xff]  ;;  %v2788_v4 = vld [vmem:[#allocation11 + $0x1c0] sm:$0xff] }
 0x7a5   :  { %v7098_v8 = vpack.c.bf16 %v2770_v27, %v2766_v40  ;;  %v2792_v63 = vld [vmem:[#allocation11 + $0x1e0] sm:$0xff]  ;;  %v7128_v40 = vpack.c.bf16 %v2795_v50, %v2791_v49 }
 0x7a6   :  { %5350 = vmatpush1.bf16.msra.mxu0 %v7046_v61  ;;  %v7130_v27 = vpack.c.bf16 %v2792_v63, %v2788_v4 }
 0x7a7   :  { %2568 = vmatmul.mubr.f32.gmra.mrb[28].mxu0 %v7008_v55  ;;  %2681 = vmatmul.mubr.f32.gmra.mrb[28].mxu1 %v7008_v55  ;;  %v7049_v55 = vpack.c.bf16 %v2738_v23, %v2734_v7  ;;  %v2773_v7 = vld [vmem:[#allocation11 + $0x148] sm:$0xff] }
 0x7a8   :  { %2573 = vmatprep.mubr.f32.mxu0 %v6324_v1  ;;  %2686 = vmatprep.mubr.f32.mxu1 %v6324_v1  ;;  %v2777_v23 = vld [vmem:[#allocation11 + $0x168] sm:$0xff] }
 0x7a9   :  { %5382 = vmatpush1.bf16.msra.mxu1 %v7049_v55  ;;  %5352 = vmatprep.subr.bf16.mxu0 %v7054_v28  ;;  %v7100_v36 = vpack.c.bf16 %v2777_v23, %v2773_v7  ;;  %v2790_v7 = vld [vmem:[#allocation11 + $0x1d0] sm:$0xff] }
 0x7aa   :  { %5384 = vmatprep.subr.bf16.mxu1 %v7056_v5  ;;  %5354 = vmatpush1.bf16.msra.mxu0 %v7058_v3  ;;  %v2794_v23 = vld [vmem:[#allocation11 + $0x1f0] sm:$0xff] }
 0x7ab   :  { %5356 = vmatprep.subr.bf16.mxu0 %v7066_v21  ;;  %v7133_v30 = vpack.c.bf16 %v2794_v23, %v2790_v7 }
 0x7ad   :  { %5386 = vmatpush1.bf16.msra.mxu1 %v7061_v39 }
 0x7ae   :  { %5388 = vmatprep.subr.bf16.mxu1 %v7068_v51  ;;  %5358 = vmatpush1.bf16.msra.mxu0 %v7070_v62 }
 0x7af   :  { %5360 = vmatprep.subr.bf16.mxu0 %v7078_v13 }
 0x7b1   :  { %5390 = vmatpush1.bf16.msra.mxu1 %v7073_v34 }
 0x7b2   :  { %5392 = vmatprep.subr.bf16.mxu1 %v7080_v59  ;;  %5362 = vmatpush1.bf16.msra.mxu0 %v7082_v16 }
 0x7b3   :  { %5364 = vmatprep.subr.bf16.mxu0 %v7089_v56 }
 0x7b5   :  { %5394 = vmatpush1.bf16.msra.mxu1 %v7085_v60 }
 0x7b6   :  { %5396 = vmatprep.subr.bf16.mxu1 %v7091_v19  ;;  %5366 = vmatpush1.bf16.msra.mxu0 %v7094_v44 }
 0x7b7   :  { %5368 = vmatprep.subr.bf16.mxu0 %v7100_v36 }
 0x7b9   :  { %5398 = vmatpush1.bf16.msra.mxu1 %v7098_v8 }
 0x7ba   :  { %5400 = vmatprep.subr.bf16.mxu1 %v7102_v54  ;;  %5370 = vmatpush1.bf16.msra.mxu0 %v7105_v22 }
 0x7bb   :  { %5372 = vmatprep.subr.bf16.mxu0 %v7111_v12 }
 0x7bd   :  { %5402 = vmatpush1.bf16.msra.mxu1 %v7109_v48 }
 0x7be   :  { %5404 = vmatprep.subr.bf16.mxu1 %v7114_v0  ;;  %5374 = vmatpush1.bf16.msra.mxu0 %v7117_v52 }
 0x7bf   :  { %5376 = vmatprep.subr.bf16.mxu0 %v7126_v9 }
 0x7c1   :  { %5406 = vmatpush1.bf16.msra.mxu1 %v7121_v20 }
 0x7c2   :  { %5408 = vmatprep.subr.bf16.mxu1 %v7128_v40  ;;  %5378 = vmatpush1.bf16.msra.mxu0 %v7130_v27 }
 0x7c3   :  { %5412 = vmatprep.subr.bf16.mxu0 %v7042_v43 }
 0x7c5   :  { %5410 = vmatpush1.bf16.msra.mxu1 %v7133_v30 }
 0x7c6   :  { %5444 = vmatprep.subr.bf16.mxu1 %v7044_v57 }
 0x842   :  { %v2264_v42 = vpop.f32.mrb[14].mxu0  ;;  %v2335_v26 = vpop.f32.mrb[14].mxu1 }
 0x843   :  { %v5873_v6 = vadd.f32 %v2264_v42, %v6655_v15  ;;  %v2266_v25 = vpop.f32.mrb[15].mxu0  ;;  %v2337_v38 = vpop.f32.mrb[15].mxu1  ;;  %v5889_v2 = vadd.f32 %v2335_v26, %v6672_v41 }
 0x844   :  { %v5874_v35 = vadd.f32 %v2266_v25, %v6659_v18  ;;  %v5890_v29 = vadd.f32 %v2337_v38, %v6666_v33 }
 0x845   :  { %v4734_v31 = vmul.f32 -1.442695, %v5873_v6 }
 0x846   :  { %v4735_v46 = vmul.f32 -1.442695, %v5874_v35  ;;  %v4736_v47 = vmul.f32 -1.442695, %v5890_v29 }
 0x847   :  { %6105 = vpow2.f32 %v4734_v31 }
 0x848   :  { %6107 = vpow2.f32 %v4735_v46 }
 0x849   :  { %6109 = vpow2.f32 %v4736_v47 }
 0x84a   :  { %6111 = vtanh.f32 %v5889_v2 }
 0x851   :  { %v6106_v24 = vpop.eup %6105 }
 0x852   :  { %v6108_v45 = vpop.eup %6107  ;;  %v2347_v53 = vadd.f32 1.0, %v6106_v24 }
 0x853   :  { %v2353_v58 = vadd.f32 1.0, %v6108_v45  ;;  %v6110_v15 = vpop.eup %6109 }
 0x854   :  { %6113 = vrcp.f32 %v2347_v53  ;;  %v6112_v49 = vpop.eup %6111  ;;  %v2360_v63 = vadd.f32 1.0, %v6110_v15 }
 0x855   :  { %6115 = vrcp.f32 %v2353_v58 }
 0x856   :  { %6117 = vrcp.f32 %v2360_v63 }
 0x85e   :  { %v6114_v18 = vpop.eup %6113 }
 0x85f   :  { %v6116_v50 = vpop.eup %6115  ;;  %v2365_v4 = vmul.f32 %v6114_v18, %v6112_v49 }
 0x860   :  { %v2364_v7 = vmul.f32 %v6116_v50, %v7005_v32  ;;  %v6118_v41 = vpop.eup %6117  ;;  %v2445_v32 = vld [vmem:[%s7536_s6] sm:$0xf] }
 0x861   :  { %v7188_v26 = vrot.slane %v2445_v32, %v95_v11  ;;  %v7192_v6 = vrot.slane %v2445_v32, %v99_v14  ;;  %v7198_v24 = vrot.slane %v2445_v32, %v107_v17  ;;  %v7203_v14 = vrot.slane %v2445_v32, %v103_v37 }
 0x862   :  { %v2366_v33 = vadd.f32 %v2365_v4, %v2364_v7 }
 0x864   :  { %6119 = vtanh.f32 %v2366_v33 }
 0x86e   :  { %v6120_v23 = vpop.eup %6119 }
 0x86f   :  { %v2368_v42 = vmul.f32 %v6120_v23, %v6118_v41 }
 0x871   :  { %2574 = vmatmul.mubr.f32.gmra.mrb[30].mxu0 %v2368_v42  ;;  %2687 = vmatmul.mubr.f32.gmra.mrb[30].mxu1 %v2368_v42 }
 0x872   :  { %2860 = vmatprep.mubr.f32.mxu0 %v6324_v1  ;;  %2931 = vmatprep.mubr.f32.mxu1 %v6324_v1 }
 0x875   :  { %2861 = vmatmul.mubr.f32.vlgmr.msra.gmra.mrb[16].mxu0 %v6324_v1  ;;  %2932 = vmatmul.mubr.f32.vlgmr.msra.gmra.mrb[16].mxu1 %v6324_v1 }
 0x876   :  { %5414 = vmatpush1.bf16.msra.mxu0 %v7046_v61  ;;  %5446 = vmatpush1.bf16.msra.mxu1 %v7049_v55 }
 0x877   :  { %5416 = vmatprep.subr.bf16.mxu0 %v7054_v28  ;;  %5448 = vmatprep.subr.bf16.mxu1 %v7056_v5 }
 0x878   :  { %3102 = vmatprep.mubr.f32.mxu0 %v6324_v1  ;;  %3173 = vmatprep.mubr.f32.mxu1 %v6324_v1 }
 0x87a   :  { %5418 = vmatpush1.bf16.msra.mxu0 %v7058_v3  ;;  %5450 = vmatpush1.bf16.msra.mxu1 %v7061_v39 }
 0x87b   :  { %5420 = vmatprep.subr.bf16.mxu0 %v7066_v21  ;;  %5452 = vmatprep.subr.bf16.mxu1 %v7068_v51 }
 0x87e   :  { %5422 = vmatpush1.bf16.msra.mxu0 %v7070_v62  ;;  %5454 = vmatpush1.bf16.msra.mxu1 %v7073_v34 }
 0x87f   :  { %5424 = vmatprep.subr.bf16.mxu0 %v7078_v13  ;;  %5456 = vmatprep.subr.bf16.mxu1 %v7080_v59 }
 0x882   :  { %5426 = vmatpush1.bf16.msra.mxu0 %v7082_v16  ;;  %5458 = vmatpush1.bf16.msra.mxu1 %v7085_v60 }
 0x883   :  { %5428 = vmatprep.subr.bf16.mxu0 %v7089_v56  ;;  %5460 = vmatprep.subr.bf16.mxu1 %v7091_v19 }
 0x886   :  { %5430 = vmatpush1.bf16.msra.mxu0 %v7094_v44  ;;  %5462 = vmatpush1.bf16.msra.mxu1 %v7098_v8 }
 0x887   :  { %5432 = vmatprep.subr.bf16.mxu0 %v7100_v36  ;;  %5464 = vmatprep.subr.bf16.mxu1 %v7102_v54 }
 0x88a   :  { %5434 = vmatpush1.bf16.msra.mxu0 %v7105_v22  ;;  %5466 = vmatpush1.bf16.msra.mxu1 %v7109_v48 }
 0x88b   :  { %5436 = vmatprep.subr.bf16.mxu0 %v7111_v12  ;;  %5468 = vmatprep.subr.bf16.mxu1 %v7114_v0 }
 0x88e   :  { %5438 = vmatpush1.bf16.msra.mxu0 %v7117_v52  ;;  %5470 = vmatpush1.bf16.msra.mxu1 %v7121_v20 }
 0x88f   :  { %5440 = vmatprep.subr.bf16.mxu0 %v7126_v9  ;;  %5472 = vmatprep.subr.bf16.mxu1 %v7128_v40 }
 0x892   :  { %5442 = vmatpush1.bf16.msra.mxu0 %v7130_v27  ;;  %5474 = vmatpush1.bf16.msra.mxu1 %v7133_v30 }
 0x893   :  { %5476 = vmatprep.subr.bf16.mxu0 %v7042_v43  ;;  %5508 = vmatprep.subr.bf16.mxu1 %v7044_v57 }
 0x948   :  { %v2862_v25 = vpop.f32.mrb[16].mxu0  ;;  %v2933_v38 = vpop.f32.mrb[16].mxu1 }
 0x949   :  { %v5891_v35 = vadd.f32 %v2862_v25, %v7188_v26  ;;  %v2864_v31 = vpop.f32.mrb[17].mxu0  ;;  %v2935_v46 = vpop.f32.mrb[17].mxu1  ;;  %v5907_v53 = vadd.f32 %v2933_v38, %v7203_v14 }
 0x94a   :  { %v5892_v29 = vadd.f32 %v2864_v31, %v7192_v6  ;;  %v5908_v11 = vadd.f32 %v2935_v46, %v7198_v24 }
 0x94b   :  { %v4737_v47 = vmul.f32 -1.442695, %v5891_v35 }
 0x94c   :  { %v4738_v2 = vmul.f32 -1.442695, %v5892_v29  ;;  %v4739_v45 = vmul.f32 -1.442695, %v5908_v11 }
 0x94d   :  { %6121 = vpow2.f32 %v4737_v47 }
 0x94e   :  { %6123 = vpow2.f32 %v4738_v2 }
 0x94f   :  { %6125 = vpow2.f32 %v4739_v45 }
 0x950   :  { %6127 = vtanh.f32 %v5907_v53 }
 0x957   :  { %v6122_v58 = vpop.eup %6121 }
 0x958   :  { %v6124_v15 = vpop.eup %6123  ;;  %v2945_v49 = vadd.f32 1.0, %v6122_v58 }
 0x959   :  { %v2951_v18 = vadd.f32 1.0, %v6124_v15  ;;  %v6126_v17 = vpop.eup %6125 }
 0x95a   :  { %6129 = vrcp.f32 %v2945_v49  ;;  %v6128_v50 = vpop.eup %6127  ;;  %v2958_v33 = vadd.f32 1.0, %v6126_v17 }
 0x95b   :  { %6131 = vrcp.f32 %v2951_v18 }
 0x95c   :  { %6133 = vrcp.f32 %v2958_v33 }
 0x964   :  { %v6130_v4 = vpop.eup %6129 }
 0x965   :  { %v6132_v63 = vpop.eup %6131  ;;  %v2963_v7 = vmul.f32 %v6130_v4, %v6128_v50 }
 0x966   :  { %v2962_v10 = vmul.f32 0.0, %v6132_v63  ;;  %v6134_v41 = vpop.eup %6133 }
 0x968   :  { %v7206_v37 = vadd.f32 %v2963_v7, %v2962_v10 }
 0x96a   :  { %6135 = vtanh.f32 %v7206_v37 }
 0x974   :  { %v6136_v23 = vpop.eup %6135 }
 0x975   :  { %v2966_v42 = vmul.f32 %v6136_v23, %v6134_v41  ;;  %v3700_v23 = vld [vmem:[#allocation11] sm:$0xff] }
 0x977   :  { %3103 = vmatmul.mubr.f32.vlgmr.msra.gmra.mrb[18].mxu0 %v2966_v42  ;;  %3174 = vmatmul.mubr.f32.vlgmr.msra.gmra.mrb[18].mxu1 %v2966_v42  ;;  %v3704_v42 = vld [vmem:[#allocation11 + $0x20] sm:$0xff] }
 0x978   :  { %5478 = vmatpush1.bf16.msra.mxu0 %v7046_v61  ;;  %5510 = vmatpush1.bf16.msra.mxu1 %v7049_v55 }
 0x979   :  { %5480 = vmatprep.subr.bf16.mxu0 %v7054_v28  ;;  %5512 = vmatprep.subr.bf16.mxu1 %v7056_v5 }
 0x97a   :  { %3344 = vmatprep.mubr.f32.mxu0 %v6324_v1  ;;  %3415 = vmatprep.mubr.f32.mxu1 %v6324_v1 }
 0x97c   :  { %5482 = vmatpush1.bf16.msra.mxu0 %v7058_v3  ;;  %5514 = vmatpush1.bf16.msra.mxu1 %v7061_v39 }
 0x97d   :  { %5484 = vmatprep.subr.bf16.mxu0 %v7066_v21  ;;  %5516 = vmatprep.subr.bf16.mxu1 %v7068_v51 }
 0x980   :  { %5486 = vmatpush1.bf16.msra.mxu0 %v7070_v62  ;;  %5518 = vmatpush1.bf16.msra.mxu1 %v7073_v34 }
 0x981   :  { %5488 = vmatprep.subr.bf16.mxu0 %v7078_v13  ;;  %5520 = vmatprep.subr.bf16.mxu1 %v7080_v59 }
 0x984   :  { %5490 = vmatpush1.bf16.msra.mxu0 %v7082_v16  ;;  %5522 = vmatpush1.bf16.msra.mxu1 %v7085_v60 }
 0x985   :  { %5492 = vmatprep.subr.bf16.mxu0 %v7089_v56  ;;  %5524 = vmatprep.subr.bf16.mxu1 %v7091_v19 }
 0x988   :  { %5494 = vmatpush1.bf16.msra.mxu0 %v7094_v44  ;;  %5526 = vmatpush1.bf16.msra.mxu1 %v7098_v8 }
 0x989   :  { %5496 = vmatprep.subr.bf16.mxu0 %v7100_v36  ;;  %5528 = vmatprep.subr.bf16.mxu1 %v7102_v54 }
 0x98c   :  { %5498 = vmatpush1.bf16.msra.mxu0 %v7105_v22  ;;  %5530 = vmatpush1.bf16.msra.mxu1 %v7109_v48 }
 0x98d   :  { %5500 = vmatprep.subr.bf16.mxu0 %v7111_v12  ;;  %5532 = vmatprep.subr.bf16.mxu1 %v7114_v0 }
 0x990   :  { %5502 = vmatpush1.bf16.msra.mxu0 %v7117_v52  ;;  %5534 = vmatpush1.bf16.msra.mxu1 %v7121_v20 }
 0x991   :  { %5504 = vmatprep.subr.bf16.mxu0 %v7126_v9  ;;  %5536 = vmatprep.subr.bf16.mxu1 %v7128_v40 }
 0x994   :  { %5506 = vmatpush1.bf16.msra.mxu0 %v7130_v27  ;;  %5538 = vmatpush1.bf16.msra.mxu1 %v7133_v30 }
 0x995   :  { %5540 = vmatprep.subr.bf16.mxu0 %v7042_v43  ;;  %5572 = vmatprep.subr.bf16.mxu1 %v7044_v57 }
 0xa4a   :  { %v3104_v32 = vpop.f32.mrb[18].mxu0  ;;  %v3175_v25 = vpop.f32.mrb[18].mxu1 }
 0xa4b   :  { %v5893_v38 = vadd.f32 %v3104_v32, %v7188_v26  ;;  %v3106_v35 = vpop.f32.mrb[19].mxu0  ;;  %v3177_v31 = vpop.f32.mrb[19].mxu1  ;;  %v5909_v45 = vadd.f32 %v3175_v25, %v7203_v14  ;;  %v7297_v25 = vpack.c.bf16 %v3704_v42, %v3700_v23  ;;  %v3743_v23 = vld [vmem:[#allocation11 + $0x158] sm:$0xff] }
 0xa4c   :  { %v5894_v46 = vadd.f32 %v3106_v35, %v7192_v6  ;;  %v5910_v2 = vadd.f32 %v3177_v31, %v7198_v24  ;;  %v3706_v35 = vld [vmem:[#allocation11 + $0x30] sm:$0xff] }
 0xa4d   :  { %v4740_v29 = vmul.f32 -1.442695, %v5893_v38  ;;  %v3702_v38 = vld [vmem:[#allocation11 + $0x10] sm:$0xff] }
 0xa4e   :  { %v4741_v47 = vmul.f32 -1.442695, %v5894_v46  ;;  %v4742_v11 = vmul.f32 -1.442695, %v5910_v2  ;;  %v7300_v31 = vpack.c.bf16 %v3706_v35, %v3702_v38  ;;  %v3709_v46 = vld [vmem:[#allocation11 + $0x48] sm:$0xff]  ;;  %v3747_v38 = vld [vmem:[#allocation11 + $0x178] sm:$0xff] }
 0xa4f   :  { %6137 = vpow2.f32 %v4740_v29  ;;  %v3713_v29 = vld [vmem:[#allocation11 + $0x68] sm:$0xff]  ;;  %v3740_v35 = vld [vmem:[#allocation11 + $0x140] sm:$0xff] }
 0xa50   :  { %6139 = vpow2.f32 %v4741_v47  ;;  %v3711_v47 = vld [vmem:[#allocation11 + $0x58] sm:$0xff]  ;;  %v7305_v2 = vpack.c.bf16 %v3713_v29, %v3709_v46  ;;  %v3744_v46 = vld [vmem:[#allocation11 + $0x160] sm:$0xff]  ;;  %v7355_v29 = vpack.c.bf16 %v3747_v38, %v3743_v23 }
 0xa51   :  { %6141 = vpow2.f32 %v4742_v11  ;;  %v3715_v11 = vld [vmem:[#allocation11 + $0x78] sm:$0xff] }
 0xa52   :  { %6143 = vtanh.f32 %v5909_v45  ;;  %v3708_v45 = vld [vmem:[#allocation11 + $0x40] sm:$0xff] }
 0xa59   :  { %v6138_v43 = vpop.eup %6137 }
 0xa5a   :  { %v6140_v53 = vpop.eup %6139  ;;  %v3187_v57 = vadd.f32 1.0, %v6138_v43  ;;  %v3712_v43 = vld [vmem:[#allocation11 + $0x60] sm:$0xff] }
 0xa5b   :  { %v3193_v58 = vadd.f32 1.0, %v6140_v53  ;;  %v6142_v15 = vpop.eup %6141  ;;  %v7307_v53 = vpack.c.bf16 %v3715_v11, %v3711_v47  ;;  %v7357_v47 = vpack.c.bf16 %v3744_v46, %v3740_v35  ;;  %v3742_v11 = vld [vmem:[#allocation11 + $0x150] sm:$0xff] }
 0xa5c   :  { %6145 = vrcp.f32 %v3187_v57  ;;  %v6144_v49 = vpop.eup %6143  ;;  %v3200_v4 = vadd.f32 1.0, %v6142_v15  ;;  %v7309_v57 = vpack.c.bf16 %v3712_v43, %v3708_v45  ;;  %v3714_v15 = vld [vmem:[#allocation11 + $0x70] sm:$0xff]  ;;  %v3749_v43 = vld [vmem:[#allocation11 + $0x188] sm:$0xff] }
 0xa5d   :  { %6147 = vrcp.f32 %v3193_v58  ;;  %v3710_v58 = vld [vmem:[#allocation11 + $0x50] sm:$0xff] }
 0xa5e   :  { %6149 = vrcp.f32 %v3200_v4  ;;  %v3746_v45 = vld [vmem:[#allocation11 + $0x170] sm:$0xff] }
 0xa66   :  { %v6146_v18 = vpop.eup %6145 }
 0xa67   :  { %v6148_v17 = vpop.eup %6147  ;;  %v3205_v50 = vmul.f32 %v6146_v18, %v6144_v49  ;;  %v7312_v49 = vpack.c.bf16 %v3714_v15, %v3710_v58  ;;  %v3717_v18 = vld [vmem:[#allocation11 + $0x88] sm:$0xff]  ;;  %v7360_v58 = vpack.c.bf16 %v3746_v45, %v3742_v11 }
 0xa68   :  { %v3204_v63 = vmul.f32 %v6148_v17, %v7206_v37  ;;  %v6150_v33 = vpop.eup %6149  ;;  %v3707_v37 = vld [vmem:[#allocation11 + $0x38] sm:$0xff]  ;;  %v3721_v17 = vld [vmem:[#allocation11 + $0xa8] sm:$0xff] }
 0xa69   :  { %v7317_v4 = vpack.c.bf16 %v3721_v17, %v3717_v18  ;;  %v3753_v15 = vld [vmem:[#allocation11 + $0x1a8] sm:$0xff]  ;;  %v3751_v18 = vld [vmem:[#allocation11 + $0x198] sm:$0xff] }
 0xa6a   :  { %v7248_v7 = vadd.f32 %v3205_v50, %v3204_v63  ;;  %v3719_v50 = vld [vmem:[#allocation11 + $0x98] sm:$0xff] }
 0xa6b   :  { %v3723_v63 = vld [vmem:[#allocation11 + $0xb8] sm:$0xff] }
 0xa6c   :  { %6151 = vtanh.f32 %v7248_v7  ;;  %v3755_v17 = vld [vmem:[#allocation11 + $0x1b8] sm:$0xff] }
 0xa76   :  { %v6152_v10 = vpop.eup %6151 }
 0xa77   :  { %v3208_v41 = vmul.f32 %v6152_v10, %v6150_v33  ;;  %v3720_v33 = vld [vmem:[#allocation11 + $0xa0] sm:$0xff]  ;;  %v7319_v10 = vpack.c.bf16 %v3723_v63, %v3719_v50  ;;  %v7363_v50 = vpack.c.bf16 %v3753_v15, %v3749_v43  ;;  %v7365_v63 = vpack.c.bf16 %v3755_v17, %v3751_v18 }
 0xa79   :  { %3345 = vmatmul.mubr.f32.vlgmr.msra.gmra.mrb[20].mxu0 %v3208_v41  ;;  %3416 = vmatmul.mubr.f32.vlgmr.msra.gmra.mrb[20].mxu1 %v3208_v41 }
 0xa7a   :  { %5542 = vmatpush1.bf16.msra.mxu0 %v7046_v61  ;;  %5574 = vmatpush1.bf16.msra.mxu1 %v7049_v55 }
 0xa7b   :  { %5544 = vmatprep.subr.bf16.mxu0 %v7054_v28  ;;  %5576 = vmatprep.subr.bf16.mxu1 %v7056_v5 }
 0xa7c   :  { %3586 = vmatprep.mubr.f32.mxu0 %v6324_v1  ;;  %3657 = vmatprep.mubr.f32.mxu1 %v6324_v1 }
 0xa7e   :  { %5546 = vmatpush1.bf16.msra.mxu0 %v7058_v3  ;;  %5578 = vmatpush1.bf16.msra.mxu1 %v7061_v39 }
 0xa7f   :  { %5548 = vmatprep.subr.bf16.mxu0 %v7066_v21  ;;  %5580 = vmatprep.subr.bf16.mxu1 %v7068_v51 }
 0xa82   :  { %5550 = vmatpush1.bf16.msra.mxu0 %v7070_v62  ;;  %5582 = vmatpush1.bf16.msra.mxu1 %v7073_v34 }
 0xa83   :  { %5552 = vmatprep.subr.bf16.mxu0 %v7078_v13  ;;  %5584 = vmatprep.subr.bf16.mxu1 %v7080_v59 }
 0xa86   :  { %5554 = vmatpush1.bf16.msra.mxu0 %v7082_v16  ;;  %5586 = vmatpush1.bf16.msra.mxu1 %v7085_v60 }
 0xa87   :  { %5556 = vmatprep.subr.bf16.mxu0 %v7089_v56  ;;  %5588 = vmatprep.subr.bf16.mxu1 %v7091_v19 }
 0xa8a   :  { %5558 = vmatpush1.bf16.msra.mxu0 %v7094_v44  ;;  %5590 = vmatpush1.bf16.msra.mxu1 %v7098_v8 }
 0xa8b   :  { %5560 = vmatprep.subr.bf16.mxu0 %v7100_v36  ;;  %5592 = vmatprep.subr.bf16.mxu1 %v7102_v54 }
 0xa8e   :  { %5562 = vmatpush1.bf16.msra.mxu0 %v7105_v22  ;;  %5594 = vmatpush1.bf16.msra.mxu1 %v7109_v48 }
 0xa8f   :  { %5564 = vmatprep.subr.bf16.mxu0 %v7111_v12  ;;  %5596 = vmatprep.subr.bf16.mxu1 %v7114_v0 }
 0xa92   :  { %5566 = vmatpush1.bf16.msra.mxu0 %v7117_v52  ;;  %5598 = vmatpush1.bf16.msra.mxu1 %v7121_v20 }
 0xa93   :  { %5568 = vmatprep.subr.bf16.mxu0 %v7126_v9  ;;  %5600 = vmatprep.subr.bf16.mxu1 %v7128_v40  ;;  %v3701_v9 = vld [vmem:[#allocation11 + $0x8] sm:$0xff] }
 0xa94   :  { %v3705_v40 = vld [vmem:[#allocation11 + $0x28] sm:$0xff] }
 0xa96   :  { %5570 = vmatpush1.bf16.msra.mxu0 %v7130_v27  ;;  %5602 = vmatpush1.bf16.msra.mxu1 %v7133_v30  ;;  %v3703_v27 = vld [vmem:[#allocation11 + $0x18] sm:$0xff]  ;;  %v7293_v30 = vpack.c.bf16 %v3705_v40, %v3701_v9  ;;  %v3738_v9 = vld [vmem:[#allocation11 + $0x130] sm:$0xff] }
 0xa97   :  { %v7295_v32 = vpack.c.bf16 %v3707_v37, %v3703_v27  ;;  %v3741_v27 = vld [vmem:[#allocation11 + $0x148] sm:$0xff] }
 0xa98   :  { %5604 = vmatprep.subr.bf16.mxu0 %v7293_v30  ;;  %v3745_v37 = vld [vmem:[#allocation11 + $0x168] sm:$0xff] }
 0xa99   :  { %5636 = vmatprep.subr.bf16.mxu1 %v7295_v32  ;;  %v7352_v42 = vpack.c.bf16 %v3745_v37, %v3741_v27 }
 0xb4c   :  { %v3346_v61 = vpop.f32.mrb[20].mxu0  ;;  %v3417_v55 = vpop.f32.mrb[20].mxu1 }
 0xb4d   :  { %v5895_v28 = vadd.f32 %v3346_v61, %v7188_v26  ;;  %v3348_v5 = vpop.f32.mrb[21].mxu0  ;;  %v3419_v3 = vpop.f32.mrb[21].mxu1  ;;  %v5911_v13 = vadd.f32 %v3417_v55, %v7203_v14  ;;  %v3718_v61 = vld [vmem:[#allocation11 + $0x90] sm:$0xff] }
 0xb4e   :  { %v5896_v39 = vadd.f32 %v3348_v5, %v7192_v6  ;;  %v5912_v62 = vadd.f32 %v3419_v3, %v7198_v24  ;;  %v3722_v55 = vld [vmem:[#allocation11 + $0xb0] sm:$0xff]  ;;  %v3725_v5 = vld [vmem:[#allocation11 + $0xc8] sm:$0xff] }
 0xb4f   :  { %v4743_v21 = vmul.f32 -1.442695, %v5895_v28  ;;  %v7324_v28 = vpack.c.bf16 %v3722_v55, %v3718_v61  ;;  %v3729_v3 = vld [vmem:[#allocation11 + $0xe8] sm:$0xff]  ;;  %v3750_v61 = vld [vmem:[#allocation11 + $0x190] sm:$0xff] }
 0xb50   :  { %v4744_v51 = vmul.f32 -1.442695, %v5896_v39  ;;  %v4745_v34 = vmul.f32 -1.442695, %v5912_v62  ;;  %v3727_v39 = vld [vmem:[#allocation11 + $0xd8] sm:$0xff]  ;;  %v3724_v62 = vld [vmem:[#allocation11 + $0xc0] sm:$0xff] }
 0xb51   :  { %6153 = vpow2.f32 %v4743_v21  ;;  %v7329_v21 = vpack.c.bf16 %v3729_v3, %v3725_v5  ;;  %v3754_v5 = vld [vmem:[#allocation11 + $0x1b0] sm:$0xff]  ;;  %v3757_v3 = vld [vmem:[#allocation11 + $0x1c8] sm:$0xff] }
 0xb52   :  { %6155 = vpow2.f32 %v4744_v51  ;;  %v3731_v51 = vld [vmem:[#allocation11 + $0xf8] sm:$0xff] }
 0xb53   :  { %6157 = vpow2.f32 %v4745_v34  ;;  %v3728_v34 = vld [vmem:[#allocation11 + $0xe0] sm:$0xff] }
 0xb54   :  { %6159 = vtanh.f32 %v5911_v13  ;;  %v7331_v13 = vpack.c.bf16 %v3731_v51, %v3727_v39  ;;  %v3761_v39 = vld [vmem:[#allocation11 + $0x1e8] sm:$0xff]  ;;  %v7372_v51 = vpack.c.bf16 %v3754_v5, %v3750_v61 }
 0xb5b   :  { %v6154_v59 = vpop.eup %6153 }
 0xb5c   :  { %v6156_v16 = vpop.eup %6155  ;;  %v3429_v60 = vadd.f32 1.0, %v6154_v59  ;;  %v7333_v59 = vpack.c.bf16 %v3728_v34, %v3724_v62  ;;  %v7374_v62 = vpack.c.bf16 %v3761_v39, %v3757_v3  ;;  %v3759_v34 = vld [vmem:[#allocation11 + $0x1d8] sm:$0xff] }
 0xb5d   :  { %v3435_v56 = vadd.f32 1.0, %v6156_v16  ;;  %v6158_v19 = vpop.eup %6157  ;;  %v3726_v16 = vld [vmem:[#allocation11 + $0xd0] sm:$0xff] }
 0xb5e   :  { %6161 = vrcp.f32 %v3429_v60  ;;  %v6160_v44 = vpop.eup %6159  ;;  %v3442_v22 = vadd.f32 1.0, %v6158_v19  ;;  %v3730_v60 = vld [vmem:[#allocation11 + $0xf0] sm:$0xff]  ;;  %v3733_v19 = vld [vmem:[#allocation11 + $0x108] sm:$0xff] }
 0xb5f   :  { %6163 = vrcp.f32 %v3435_v56  ;;  %v7336_v56 = vpack.c.bf16 %v3730_v60, %v3726_v16  ;;  %v3763_v16 = vld [vmem:[#allocation11 + $0x1f8] sm:$0xff]  ;;  %v3756_v60 = vld [vmem:[#allocation11 + $0x1c0] sm:$0xff] }
 0xb60   :  { %6165 = vrcp.f32 %v3442_v22  ;;  %v3732_v22 = vld [vmem:[#allocation11 + $0x100] sm:$0xff] }
 0xb68   :  { %v6162_v8 = vpop.eup %6161 }
 0xb69   :  { %v6164_v36 = vpop.eup %6163  ;;  %v3447_v54 = vmul.f32 %v6162_v8, %v6160_v44  ;;  %v3737_v44 = vld [vmem:[#allocation11 + $0x128] sm:$0xff]  ;;  %v3735_v8 = vld [vmem:[#allocation11 + $0x118] sm:$0xff] }
 0xb6a   :  { %v3446_v48 = vmul.f32 %v6164_v36, %v7248_v7  ;;  %v6166_v0 = vpop.eup %6165  ;;  %v3716_v7 = vld [vmem:[#allocation11 + $0x80] sm:$0xff]  ;;  %v7341_v36 = vpack.c.bf16 %v3737_v44, %v3733_v19  ;;  %v7377_v19 = vpack.c.bf16 %v3763_v16, %v3759_v34 }
 0xb6b   :  { %v7321_v41 = vpack.c.bf16 %v3720_v33, %v3716_v7  ;;  %v3748_v7 = vld [vmem:[#allocation11 + $0x180] sm:$0xff] }
 0xb6c   :  { %v7288_v12 = vadd.f32 %v3447_v54, %v3446_v48  ;;  %v3739_v54 = vld [vmem:[#allocation11 + $0x138] sm:$0xff]  ;;  %v3736_v48 = vld [vmem:[#allocation11 + $0x120] sm:$0xff] }
 0xb6d   :  { %v3752_v33 = vld [vmem:[#allocation11 + $0x1a0] sm:$0xff] }
 0xb6e   :  { %6167 = vtanh.f32 %v7288_v12  ;;  %v7368_v55 = vpack.c.bf16 %v3752_v33, %v3748_v7  ;;  %v3760_v44 = vld [vmem:[#allocation11 + $0x1e0] sm:$0xff] }
 0xb78   :  { %v6168_v52 = vpop.eup %6167 }
 0xb79   :  { %v3450_v20 = vmul.f32 %v6168_v52, %v6166_v0  ;;  %v7343_v0 = vpack.c.bf16 %v3739_v54, %v3735_v8  ;;  %v7345_v52 = vpack.c.bf16 %v3736_v48, %v3732_v22  ;;  %v3758_v8 = vld [vmem:[#allocation11 + $0x1d0] sm:$0xff]  ;;  %v7380_v22 = vpack.c.bf16 %v3760_v44, %v3756_v60 }
 0xb7a   :  { %v3762_v54 = vld [vmem:[#allocation11 + $0x1f0] sm:$0xff] }
 0xb7b   :  { %3587 = vmatmul.mubr.f32.vlgmr.msra.gmra.mrb[22].mxu0 %v3450_v20  ;;  %3658 = vmatmul.mubr.f32.vlgmr.msra.gmra.mrb[22].mxu1 %v3450_v20  ;;  %v3734_v20 = vld [vmem:[#allocation11 + $0x110] sm:$0xff]  ;;  %v7384_v48 = vpack.c.bf16 %v3762_v54, %v3758_v8 }
 0xb7c   :  { %3828 = vmatprep.mubr.f32.mxu0 %v6324_v1  ;;  %3899 = vmatprep.mubr.f32.mxu1 %v6324_v1  ;;  %v7348_v40 = vpack.c.bf16 %v3738_v9, %v3734_v20 }
 0xb7d   :  { %5606 = vmatpush1.bf16.msra.mxu0 %v7297_v25  ;;  %5638 = vmatpush1.bf16.msra.mxu1 %v7300_v31 }
 0xb7e   :  { %5608 = vmatprep.subr.bf16.mxu0 %v7305_v2  ;;  %5640 = vmatprep.subr.bf16.mxu1 %v7307_v53 }
 0xb81   :  { %5610 = vmatpush1.bf16.msra.mxu0 %v7309_v57  ;;  %5642 = vmatpush1.bf16.msra.mxu1 %v7312_v49 }
 0xb82   :  { %5612 = vmatprep.subr.bf16.mxu0 %v7317_v4  ;;  %5644 = vmatprep.subr.bf16.mxu1 %v7319_v10 }
 0xb85   :  { %5614 = vmatpush1.bf16.msra.mxu0 %v7321_v41  ;;  %5646 = vmatpush1.bf16.msra.mxu1 %v7324_v28 }
 0xb86   :  { %5616 = vmatprep.subr.bf16.mxu0 %v7329_v21  ;;  %5648 = vmatprep.subr.bf16.mxu1 %v7331_v13 }
 0xb89   :  { %5618 = vmatpush1.bf16.msra.mxu0 %v7333_v59  ;;  %5650 = vmatpush1.bf16.msra.mxu1 %v7336_v56 }
 0xb8a   :  { %5620 = vmatprep.subr.bf16.mxu0 %v7341_v36  ;;  %5652 = vmatprep.subr.bf16.mxu1 %v7343_v0 }
 0xb8d   :  { %5622 = vmatpush1.bf16.msra.mxu0 %v7345_v52  ;;  %5654 = vmatpush1.bf16.msra.mxu1 %v7348_v40 }
 0xb8e   :  { %5624 = vmatprep.subr.bf16.mxu0 %v7352_v42  ;;  %5656 = vmatprep.subr.bf16.mxu1 %v7355_v29 }
 0xb91   :  { %5626 = vmatpush1.bf16.msra.mxu0 %v7357_v47  ;;  %5658 = vmatpush1.bf16.msra.mxu1 %v7360_v58 }
 0xb92   :  { %5628 = vmatprep.subr.bf16.mxu0 %v7363_v50  ;;  %5660 = vmatprep.subr.bf16.mxu1 %v7365_v63 }
 0xb95   :  { %5630 = vmatpush1.bf16.msra.mxu0 %v7368_v55  ;;  %5662 = vmatpush1.bf16.msra.mxu1 %v7372_v51 }
 0xb96   :  { %5632 = vmatprep.subr.bf16.mxu0 %v7374_v62  ;;  %5664 = vmatprep.subr.bf16.mxu1 %v7377_v19 }
 0xb99   :  { %5634 = vmatpush1.bf16.msra.mxu0 %v7380_v22  ;;  %5666 = vmatpush1.bf16.msra.mxu1 %v7384_v48 }
 0xb9a   :  { %5668 = vmatprep.subr.bf16.mxu0 %v7293_v30  ;;  %5700 = vmatprep.subr.bf16.mxu1 %v7295_v32 }
 0xc4e   :  { %v3588_v20 = vpop.f32.mrb[22].mxu0  ;;  %v3659_v9 = vpop.f32.mrb[22].mxu1 }
 0xc4f   :  { %v5897_v27 = vadd.f32 %v3588_v20, %v7188_v26  ;;  %v3590_v37 = vpop.f32.mrb[23].mxu0  ;;  %v3661_v23 = vpop.f32.mrb[23].mxu1  ;;  %v5913_v43 = vadd.f32 %v3659_v9, %v7203_v14 }
 0xc50   :  { %v5898_v38 = vadd.f32 %v3590_v37, %v7192_v6  ;;  %v5914_v11 = vadd.f32 %v3661_v23, %v7198_v24 }
 0xc51   :  { %v4746_v35 = vmul.f32 -1.442695, %v5897_v27 }
 0xc52   :  { %v4747_v46 = vmul.f32 -1.442695, %v5898_v38  ;;  %v4748_v45 = vmul.f32 -1.442695, %v5914_v11 }
 0xc53   :  { %6169 = vpow2.f32 %v4746_v35 }
 0xc54   :  { %6171 = vpow2.f32 %v4747_v46 }
 0xc55   :  { %6173 = vpow2.f32 %v4748_v45 }
 0xc56   :  { %6175 = vtanh.f32 %v5913_v43 }
 0xc5d   :  { %v6170_v15 = vpop.eup %6169 }
 0xc5e   :  { %v6172_v18 = vpop.eup %6171  ;;  %v3671_v17 = vadd.f32 1.0, %v6170_v15 }
 0xc5f   :  { %v3677_v7 = vadd.f32 1.0, %v6172_v18  ;;  %v6174_v33 = vpop.eup %6173 }
 0xc60   :  { %6177 = vrcp.f32 %v3671_v17  ;;  %v6176_v61 = vpop.eup %6175  ;;  %v3684_v34 = vadd.f32 1.0, %v6174_v33 }
 0xc61   :  { %6179 = vrcp.f32 %v3677_v7 }
 0xc62   :  { %6181 = vrcp.f32 %v3684_v34 }
 0xc6a   :  { %v6178_v5 = vpop.eup %6177 }
 0xc6b   :  { %v6180_v3 = vpop.eup %6179  ;;  %v3689_v39 = vmul.f32 %v6178_v5, %v6176_v61 }
 0xc6c   :  { %v3688_v16 = vmul.f32 %v6180_v3, %v7288_v12  ;;  %v6182_v44 = vpop.eup %6181 }
 0xc6e   :  { %v7396_v60 = vadd.f32 %v3689_v39, %v3688_v16 }
 0xc70   :  { %6183 = vtanh.f32 %v7396_v60 }
 0xc7a   :  { %v6184_v8 = vpop.eup %6183 }
 0xc7b   :  { %v3692_v54 = vmul.f32 %v6184_v8, %v6182_v44 }
 0xc7d   :  { %3829 = vmatmul.mubr.f32.vlgmr.msra.gmra.mrb[24].mxu0 %v3692_v54  ;;  %3900 = vmatmul.mubr.f32.vlgmr.msra.gmra.mrb[24].mxu1 %v3692_v54 }
 0xc7e   :  { %5670 = vmatpush1.bf16.msra.mxu0 %v7297_v25  ;;  %5702 = vmatpush1.bf16.msra.mxu1 %v7300_v31 }
 0xc7f   :  { %5672 = vmatprep.subr.bf16.mxu0 %v7305_v2  ;;  %5704 = vmatprep.subr.bf16.mxu1 %v7307_v53 }
 0xc80   :  { %4070 = vmatprep.mubr.f32.mxu0 %v6324_v1  ;;  %4141 = vmatprep.mubr.f32.mxu1 %v6324_v1 }
 0xc82   :  { %5674 = vmatpush1.bf16.msra.mxu0 %v7309_v57  ;;  %5706 = vmatpush1.bf16.msra.mxu1 %v7312_v49 }
 0xc83   :  { %5676 = vmatprep.subr.bf16.mxu0 %v7317_v4  ;;  %5708 = vmatprep.subr.bf16.mxu1 %v7319_v10 }
 0xc86   :  { %5678 = vmatpush1.bf16.msra.mxu0 %v7321_v41  ;;  %5710 = vmatpush1.bf16.msra.mxu1 %v7324_v28 }
 0xc87   :  { %5680 = vmatprep.subr.bf16.mxu0 %v7329_v21  ;;  %5712 = vmatprep.subr.bf16.mxu1 %v7331_v13 }
 0xc8a   :  { %5682 = vmatpush1.bf16.msra.mxu0 %v7333_v59  ;;  %5714 = vmatpush1.bf16.msra.mxu1 %v7336_v56 }
 0xc8b   :  { %5684 = vmatprep.subr.bf16.mxu0 %v7341_v36  ;;  %5716 = vmatprep.subr.bf16.mxu1 %v7343_v0 }
 0xc8e   :  { %5686 = vmatpush1.bf16.msra.mxu0 %v7345_v52  ;;  %5718 = vmatpush1.bf16.msra.mxu1 %v7348_v40 }
 0xc8f   :  { %5688 = vmatprep.subr.bf16.mxu0 %v7352_v42  ;;  %5720 = vmatprep.subr.bf16.mxu1 %v7355_v29 }
 0xc92   :  { %5690 = vmatpush1.bf16.msra.mxu0 %v7357_v47  ;;  %5722 = vmatpush1.bf16.msra.mxu1 %v7360_v58 }
 0xc93   :  { %5692 = vmatprep.subr.bf16.mxu0 %v7363_v50  ;;  %5724 = vmatprep.subr.bf16.mxu1 %v7365_v63 }
 0xc96   :  { %5694 = vmatpush1.bf16.msra.mxu0 %v7368_v55  ;;  %5726 = vmatpush1.bf16.msra.mxu1 %v7372_v51 }
 0xc97   :  { %5696 = vmatprep.subr.bf16.mxu0 %v7374_v62  ;;  %5728 = vmatprep.subr.bf16.mxu1 %v7377_v19 }
 0xc9a   :  { %5698 = vmatpush1.bf16.msra.mxu0 %v7380_v22  ;;  %5730 = vmatpush1.bf16.msra.mxu1 %v7384_v48 }
 0xc9b   :  { %5732 = vmatprep.subr.bf16.mxu0 %v7293_v30  ;;  %5764 = vmatprep.subr.bf16.mxu1 %v7295_v32 }
 0xd50   :  { %v3830_v12 = vpop.f32.mrb[24].mxu0  ;;  %v3901_v20 = vpop.f32.mrb[24].mxu1 }
 0xd51   :  { %v5899_v9 = vadd.f32 %v3830_v12, %v7188_v26  ;;  %v3832_v27 = vpop.f32.mrb[25].mxu0  ;;  %v3903_v37 = vpop.f32.mrb[25].mxu1  ;;  %v5915_v45 = vadd.f32 %v3901_v20, %v7203_v14 }
 0xd52   :  { %v5900_v23 = vadd.f32 %v3832_v27, %v7192_v6  ;;  %v5916_v46 = vadd.f32 %v3903_v37, %v7198_v24 }
 0xd53   :  { %v4749_v38 = vmul.f32 -1.442695, %v5899_v9 }
 0xd54   :  { %v4750_v35 = vmul.f32 -1.442695, %v5900_v23  ;;  %v4751_v11 = vmul.f32 -1.442695, %v5916_v46 }
 0xd55   :  { %6185 = vpow2.f32 %v4749_v38 }
 0xd56   :  { %6187 = vpow2.f32 %v4750_v35 }
 0xd57   :  { %6189 = vpow2.f32 %v4751_v11 }
 0xd58   :  { %6191 = vtanh.f32 %v5915_v45 }
 0xd5f   :  { %v6186_v43 = vpop.eup %6185 }
 0xd60   :  { %v6188_v15 = vpop.eup %6187  ;;  %v3913_v18 = vadd.f32 1.0, %v6186_v43 }
 0xd61   :  { %v3919_v17 = vadd.f32 1.0, %v6188_v15  ;;  %v6190_v7 = vpop.eup %6189 }
 0xd62   :  { %6193 = vrcp.f32 %v3913_v18  ;;  %v6192_v33 = vpop.eup %6191  ;;  %v3926_v39 = vadd.f32 1.0, %v6190_v7 }
 0xd63   :  { %6195 = vrcp.f32 %v3919_v17 }
 0xd64   :  { %6197 = vrcp.f32 %v3926_v39 }
 0xd6c   :  { %v6194_v61 = vpop.eup %6193 }
 0xd6d   :  { %v6196_v5 = vpop.eup %6195  ;;  %v3931_v3 = vmul.f32 %v6194_v61, %v6192_v33 }
 0xd6e   :  { %v3930_v34 = vmul.f32 %v6196_v5, %v7396_v60  ;;  %v6198_v44 = vpop.eup %6197 }
 0xd70   :  { %v7438_v16 = vadd.f32 %v3931_v3, %v3930_v34 }
 0xd72   :  { %6199 = vtanh.f32 %v7438_v16 }
 0xd7c   :  { %v6200_v8 = vpop.eup %6199 }
 0xd7d   :  { %v3934_v54 = vmul.f32 %v6200_v8, %v6198_v44 }
 0xd7f   :  { %4071 = vmatmul.mubr.f32.vlgmr.msra.gmra.mrb[26].mxu0 %v3934_v54  ;;  %4142 = vmatmul.mubr.f32.vlgmr.msra.gmra.mrb[26].mxu1 %v3934_v54 }
 0xd80   :  { %5734 = vmatpush1.bf16.msra.mxu0 %v7297_v25  ;;  %5766 = vmatpush1.bf16.msra.mxu1 %v7300_v31 }
 0xd81   :  { %5736 = vmatprep.subr.bf16.mxu0 %v7305_v2  ;;  %5768 = vmatprep.subr.bf16.mxu1 %v7307_v53 }
 0xd82   :  { %4312 = vmatprep.mubr.f32.mxu0 %v6324_v1  ;;  %4383 = vmatprep.mubr.f32.mxu1 %v6324_v1 }
 0xd84   :  { %5738 = vmatpush1.bf16.msra.mxu0 %v7309_v57  ;;  %5770 = vmatpush1.bf16.msra.mxu1 %v7312_v49 }
 0xd85   :  { %5740 = vmatprep.subr.bf16.mxu0 %v7317_v4  ;;  %5772 = vmatprep.subr.bf16.mxu1 %v7319_v10 }
 0xd88   :  { %5742 = vmatpush1.bf16.msra.mxu0 %v7321_v41  ;;  %5774 = vmatpush1.bf16.msra.mxu1 %v7324_v28 }
 0xd89   :  { %5744 = vmatprep.subr.bf16.mxu0 %v7329_v21  ;;  %5776 = vmatprep.subr.bf16.mxu1 %v7331_v13 }
 0xd8c   :  { %5746 = vmatpush1.bf16.msra.mxu0 %v7333_v59  ;;  %5778 = vmatpush1.bf16.msra.mxu1 %v7336_v56 }
 0xd8d   :  { %5748 = vmatprep.subr.bf16.mxu0 %v7341_v36  ;;  %5780 = vmatprep.subr.bf16.mxu1 %v7343_v0 }
 0xd90   :  { %5750 = vmatpush1.bf16.msra.mxu0 %v7345_v52  ;;  %5782 = vmatpush1.bf16.msra.mxu1 %v7348_v40 }
 0xd91   :  { %5752 = vmatprep.subr.bf16.mxu0 %v7352_v42  ;;  %5784 = vmatprep.subr.bf16.mxu1 %v7355_v29 }
 0xd94   :  { %5754 = vmatpush1.bf16.msra.mxu0 %v7357_v47  ;;  %5786 = vmatpush1.bf16.msra.mxu1 %v7360_v58 }
 0xd95   :  { %5756 = vmatprep.subr.bf16.mxu0 %v7363_v50  ;;  %5788 = vmatprep.subr.bf16.mxu1 %v7365_v63 }
 0xd98   :  { %5758 = vmatpush1.bf16.msra.mxu0 %v7368_v55  ;;  %5790 = vmatpush1.bf16.msra.mxu1 %v7372_v51 }
 0xd99   :  { %5760 = vmatprep.subr.bf16.mxu0 %v7374_v62  ;;  %5792 = vmatprep.subr.bf16.mxu1 %v7377_v19 }
 0xd9c   :  { %5762 = vmatpush1.bf16.msra.mxu0 %v7380_v22  ;;  %5794 = vmatpush1.bf16.msra.mxu1 %v7384_v48 }
 0xd9d   :  { %5796 = vmatprep.subr.bf16.mxu0 %v7293_v30  ;;  %5828 = vmatprep.subr.bf16.mxu1 %v7295_v32 }
 0xe52   :  { %v4072_v60 = vpop.f32.mrb[26].mxu0  ;;  %v4143_v12 = vpop.f32.mrb[26].mxu1 }
 0xe53   :  { %v5901_v20 = vadd.f32 %v4072_v60, %v7188_v26  ;;  %v4074_v9 = vpop.f32.mrb[27].mxu0  ;;  %v4145_v27 = vpop.f32.mrb[27].mxu1  ;;  %v5917_v11 = vadd.f32 %v4143_v12, %v7203_v14 }
 0xe54   :  { %v5902_v37 = vadd.f32 %v4074_v9, %v7192_v6  ;;  %v5918_v35 = vadd.f32 %v4145_v27, %v7198_v24 }
 0xe55   :  { %v4752_v23 = vmul.f32 -1.442695, %v5901_v20 }
 0xe56   :  { %v4753_v38 = vmul.f32 -1.442695, %v5902_v37  ;;  %v4754_v46 = vmul.f32 -1.442695, %v5918_v35 }
 0xe57   :  { %6201 = vpow2.f32 %v4752_v23 }
 0xe58   :  { %6203 = vpow2.f32 %v4753_v38 }
 0xe59   :  { %6205 = vpow2.f32 %v4754_v46 }
 0xe5a   :  { %6207 = vtanh.f32 %v5917_v11 }
 0xe61   :  { %v6202_v30 = vpop.eup %6201 }
 0xe62   :  { %v6204_v45 = vpop.eup %6203  ;;  %v4155_v32 = vadd.f32 1.0, %v6202_v30 }
 0xe63   :  { %v4161_v43 = vadd.f32 1.0, %v6204_v45  ;;  %v6206_v15 = vpop.eup %6205 }
 0xe64   :  { %6209 = vrcp.f32 %v4155_v32  ;;  %v6208_v18 = vpop.eup %6207  ;;  %v4168_v61 = vadd.f32 1.0, %v6206_v15  ;;  %v4761_v32 = vld [vmem:[%s7537_s7] ss:$0 sm:$0xff] }
 0xe65   :  { %6211 = vrcp.f32 %v4161_v43 }
 0xe66   :  { %6213 = vrcp.f32 %v4168_v61 }
 0xe6e   :  { %v6210_v17 = vpop.eup %6209 }
 0xe6f   :  { %v6212_v7 = vpop.eup %6211  ;;  %v4173_v33 = vmul.f32 %v6210_v17, %v6208_v18  ;;  %v4762_v18 = vld [vmem:[#allocation6] ss:$0 sm:$0xff] }
 0xe70   :  { %v4172_v5 = vmul.f32 %v6212_v7, %v7438_v16  ;;  %v6214_v39 = vpop.eup %6213 }
 0xe72   :  { %v7480_v3 = vadd.f32 %v4173_v33, %v4172_v5 }
 0xe74   :  { %6215 = vtanh.f32 %v7480_v3 }
 0xe7e   :  { %v6216_v34 = vpop.eup %6215 }
 0xe7f   :  { %v4176_v44 = vmul.f32 %v6216_v34, %v6214_v39 }
 0xe81   :  { %4313 = vmatmul.mubr.f32.vlgmr.msra.gmra.mrb[28].mxu0 %v4176_v44  ;;  %4384 = vmatmul.mubr.f32.vlgmr.msra.gmra.mrb[28].mxu1 %v4176_v44 }
 0xe82   :  { %5798 = vmatpush1.bf16.msra.mxu0 %v7297_v25  ;;  %5830 = vmatpush1.bf16.msra.mxu1 %v7300_v31 }
 0xe83   :  { %5800 = vmatprep.subr.bf16.mxu0 %v7305_v2  ;;  %5832 = vmatprep.subr.bf16.mxu1 %v7307_v53 }
 0xe84   :  { %4554 = vmatprep.mubr.f32.mxu0 %v6324_v1  ;;  %4625 = vmatprep.mubr.f32.mxu1 %v6324_v1 }
 0xe86   :  { %5802 = vmatpush1.bf16.msra.mxu0 %v7309_v57  ;;  %5834 = vmatpush1.bf16.msra.mxu1 %v7312_v49 }
 0xe87   :  { %5804 = vmatprep.subr.bf16.mxu0 %v7317_v4  ;;  %5836 = vmatprep.subr.bf16.mxu1 %v7319_v10 }
 0xe8a   :  { %5806 = vmatpush1.bf16.msra.mxu0 %v7321_v41  ;;  %5838 = vmatpush1.bf16.msra.mxu1 %v7324_v28 }
 0xe8b   :  { %5808 = vmatprep.subr.bf16.mxu0 %v7329_v21  ;;  %5840 = vmatprep.subr.bf16.mxu1 %v7331_v13 }
 0xe8e   :  { %5810 = vmatpush1.bf16.msra.mxu0 %v7333_v59  ;;  %5842 = vmatpush1.bf16.msra.mxu1 %v7336_v56 }
 0xe8f   :  { %5812 = vmatprep.subr.bf16.mxu0 %v7341_v36  ;;  %5844 = vmatprep.subr.bf16.mxu1 %v7343_v0 }
 0xe92   :  { %5814 = vmatpush1.bf16.msra.mxu0 %v7345_v52  ;;  %5846 = vmatpush1.bf16.msra.mxu1 %v7348_v40 }
 0xe93   :  { %5816 = vmatprep.subr.bf16.mxu0 %v7352_v42  ;;  %5848 = vmatprep.subr.bf16.mxu1 %v7355_v29 }
 0xe96   :  { %5818 = vmatpush1.bf16.msra.mxu0 %v7357_v47  ;;  %5850 = vmatpush1.bf16.msra.mxu1 %v7360_v58 }
 0xe97   :  { %5820 = vmatprep.subr.bf16.mxu0 %v7363_v50  ;;  %5852 = vmatprep.subr.bf16.mxu1 %v7365_v63 }
 0xe9a   :  { %5822 = vmatpush1.bf16.msra.mxu0 %v7368_v55  ;;  %5854 = vmatpush1.bf16.msra.mxu1 %v7372_v51 }
 0xe9b   :  { %5824 = vmatprep.subr.bf16.mxu0 %v7374_v62  ;;  %5856 = vmatprep.subr.bf16.mxu1 %v7377_v19 }
 0xe9e   :  { %5826 = vmatpush1.bf16.msra.mxu0 %v7380_v22  ;;  %5858 = vmatpush1.bf16.msra.mxu1 %v7384_v48 }
 0xf54   :  { %v4314_v1 = vpop.f32.mrb[28].mxu0  ;;  %v4385_v25 = vpop.f32.mrb[28].mxu1 }
 0xf55   :  { %v5903_v31 = vadd.f32 %v4314_v1, %v7188_v26  ;;  %v4316_v2 = vpop.f32.mrb[29].mxu0  ;;  %v4387_v53 = vpop.f32.mrb[29].mxu1  ;;  %v5919_v28 = vadd.f32 %v4385_v25, %v7203_v14 }
 0xf56   :  { %v5904_v57 = vadd.f32 %v4316_v2, %v7192_v6  ;;  %v5920_v10 = vadd.f32 %v4387_v53, %v7198_v24 }
 0xf57   :  { %v4755_v49 = vmul.f32 -1.442695, %v5903_v31 }
 0xf58   :  { %v4756_v4 = vmul.f32 -1.442695, %v5904_v57  ;;  %v4757_v41 = vmul.f32 -1.442695, %v5920_v10 }
 0xf59   :  { %6217 = vpow2.f32 %v4755_v49 }
 0xf5a   :  { %6219 = vpow2.f32 %v4756_v4 }
 0xf5b   :  { %6221 = vpow2.f32 %v4757_v41 }
 0xf5c   :  { %6223 = vtanh.f32 %v5919_v28 }
 0xf63   :  { %v6218_v21 = vpop.eup %6217 }
 0xf64   :  { %v6220_v13 = vpop.eup %6219  ;;  %v4397_v59 = vadd.f32 1.0, %v6218_v21 }
 0xf65   :  { %v4403_v56 = vadd.f32 1.0, %v6220_v13  ;;  %v6222_v36 = vpop.eup %6221 }
 0xf66   :  { %6225 = vrcp.f32 %v4397_v59  ;;  %v6224_v0 = vpop.eup %6223  ;;  %v4410_v29 = vadd.f32 1.0, %v6222_v36 }
 0xf67   :  { %6227 = vrcp.f32 %v4403_v56 }
 0xf68   :  { %6229 = vrcp.f32 %v4410_v29 }
 0xf70   :  { %v6226_v52 = vpop.eup %6225 }
 0xf71   :  { %v6228_v40 = vpop.eup %6227  ;;  %v4415_v42 = vmul.f32 %v6226_v52, %v6224_v0 }
 0xf72   :  { %v4414_v47 = vmul.f32 %v6228_v40, %v7480_v3  ;;  %v6230_v50 = vpop.eup %6229 }
 0xf74   :  { %v4416_v58 = vadd.f32 %v4415_v42, %v4414_v47 }
 0xf76   :  { %6231 = vtanh.f32 %v4416_v58 }
 0xf80   :  { %v6232_v63 = vpop.eup %6231 }
 0xf81   :  { %v4418_v55 = vmul.f32 %v6232_v63, %v6230_v50 }
 0xf83   :  { %4555 = vmatmul.mubr.f32.vlgmr.msra.gmra.mrb[30].mxu0 %v4418_v55  ;;  %4626 = vmatmul.mubr.f32.vlgmr.msra.gmra.mrb[30].mxu1 %v4418_v55 }
0x1056   :  { %v4556_v51 = vpop.f32.mrb[30].mxu0  ;;  %v4627_v62 = vpop.f32.mrb[30].mxu1 }
0x1057   :  { %v5905_v19 = vadd.f32 %v4556_v51, %v7188_v26  ;;  %v4558_v22 = vpop.f32.mrb[31].mxu0  ;;  %v4629_v48 = vpop.f32.mrb[31].mxu1  ;;  %v5921_v20 = vadd.f32 %v4627_v62, %v7203_v14 }
0x1058   :  { %v5906_v16 = vadd.f32 %v4558_v22, %v7192_v6  ;;  %v5922_v60 = vadd.f32 %v4629_v48, %v7198_v24 }
0x1059   :  { %v4758_v8 = vmul.f32 -1.442695, %v5905_v19 }
0x105a   :  { %v4759_v54 = vmul.f32 -1.442695, %v5906_v16  ;;  %v4760_v12 = vmul.f32 -1.442695, %v5922_v60 }
0x105b   :  { %6233 = vpow2.f32 %v4758_v8 }
0x105c   :  { %6235 = vpow2.f32 %v4759_v54 }
0x105d   :  { %6237 = vpow2.f32 %v4760_v12 }
0x105e   :  { %6239 = vtanh.f32 %v5921_v20 }
0x1065   :  { %v6234_v9 = vpop.eup %6233 }
0x1066   :  { %v6236_v27 = vpop.eup %6235  ;;  %v4639_v37 = vadd.f32 1.0, %v6234_v9 }
0x1067   :  { %v4645_v23 = vadd.f32 1.0, %v6236_v27  ;;  %v6238_v26 = vpop.eup %6237 }
0x1068   :  { %6241 = vrcp.f32 %v4639_v37  ;;  %v6240_v38 = vpop.eup %6239  ;;  %v4652_v11 = vadd.f32 1.0, %v6238_v26 }
0x1069   :  { %6243 = vrcp.f32 %v4645_v23 }
0x106a   :  { %6245 = vrcp.f32 %v4652_v11 }
0x1072   :  { %v6242_v6 = vpop.eup %6241 }
0x1073   :  { %v6244_v35 = vpop.eup %6243  ;;  %v4657_v46 = vmul.f32 %v6242_v6, %v6240_v38 }
0x1074   :  { %v4656_v30 = vmul.f32 %v6244_v35, %v4416_v58  ;;  %v6246_v24 = vpop.eup %6245 }
0x1076   :  { %v4658_v45 = vadd.f32 %v4657_v46, %v4656_v30 }
0x1078   :  { %6247 = vtanh.f32 %v4658_v45 }
0x1082   :  { %v6248_v14 = vpop.eup %6247 }
0x1083   :  { %v4660_v43 = vmul.f32 %v6248_v14, %v6246_v24 }
0x1085   :  { %v4671_v15 = vmul.f32 %v4761_v32, %v4660_v43 }
0x1087   :  { %4672 = vadd.xlane.f32.xlu0 %v4671_v15 }
0x1114   :  { %v4673_v17 = vpop.xlane.xlu0 %4672 }
0x1115   :  { %v4681_v7 = vadd.f32 %v4762_v18, %v4673_v17 }
0x1117   :  { %4683 = vst.msk [vmem:[%s7539_s9] sm:$0xff] %vm4682_vm1, %v4681_v7 }
0x1118   :  { %4688 = vsyncpa [#allocation8], 1 }
0x1119   :  { %4689 = vsyncpa [#allocation10], 1 }

</bundles_post_ra>
